<compile_context>
chip_gen: v5e
topology: v5e:2x2
jax: 0.10.0
libtpu: 0.0.40
codegen_flags: <defaults>
</compile_context>

<pallas_src>
import functools

import jax
import jax.numpy as jnp
from jax.experimental import pallas as pl
from jax.experimental.pallas import tpu as pltpu

EPS = 1e-5


def _residual_block_kernel(H, W, C,
                           x_ref, w1_ref, b1_ref, g1_ref, be1_ref,
                           w2_ref, b2_ref, g2_ref, be2_ref,
                           gavg_ref, masks_ref,
                           out_ref, col_ref):
    HW = H * W
    gavg = gavg_ref[...]                                 # (C, C) group-averaging

    def conv3x3(v, w_ref, b_ref):
        # v: (C, HW) f32.  Build the bf16 im2col K-stack with XLU rolls +
        # precomputed validity masks (zero-pad 'SAME' semantics), then one
        # K = 9*C bf16 MXU matmul with f32 accumulation.
        for k in range(9):
            dy, dx = k // 3 - 1, k % 3 - 1
            off = dy * W + dx
            if off == 0:
                slab = v                                 # center tap: no shift/mask
            else:
                # slab[p] = v[p + off]  (jnp.roll convention -> shift = -off)
                slab = pltpu.roll(v, shift=(-off) % HW, axis=1)
                slab = slab * masks_ref[k:k + 1, :]      # kill out-of-image taps
            col_ref[k * C:(k + 1) * C, :] = slab.astype(jnp.bfloat16)
        return jnp.dot(w_ref[...], col_ref[...],
                       preferred_element_type=jnp.float32) + b_ref[...]

    def group_norm(h, gamma, beta):
        # One-pass stats: per-channel [sum, sum_sq] (cross-lane XLU reduces),
        # group aggregate + broadcast via a single tiny (C,C)@(C,2) matmul,
        # then a fused  h * scale + shift  over the full (C, HW) tile.
        s = jnp.sum(h, axis=1, keepdims=True)                        # (C, 1)
        ss = jnp.sum(h * h, axis=1, keepdims=True)                   # (C, 1)
        gstats = jnp.dot(gavg, jnp.concatenate([s, ss], axis=1),
                         preferred_element_type=jnp.float32)         # (C, 2)
        mean = gstats[:, 0:1]
        var = jnp.maximum(gstats[:, 1:2] - mean * mean, 0.0)
        scale = jax.lax.rsqrt(var + EPS) * gamma                     # (C, 1)
        shift = beta - mean * scale                                  # (C, 1)
        return h * scale + shift

    x = x_ref[0]                                         # (C, HW) f32

    h = conv3x3(x, w1_ref, b1_ref)
    h = group_norm(h, g1_ref[...], be1_ref[...])
    h = h * jax.nn.sigmoid(h)                            # SiLU (exp on EUP)

    h = conv3x3(h, w2_ref, b2_ref)
    h = group_norm(h, g2_ref[...], be2_ref[...])

    y = x + h
    out_ref[0] = y * jax.nn.sigmoid(y)                   # residual + SiLU


def residual_block(x_nchw, w1_hwio, b1, g1, be1, w2_hwio, b2, g2, be2, num_groups):
    N, C, H, W = x_nchw.shape
    G = num_groups
    HW = H * W
    # NOTE: HW must be a lane multiple; resolutions like 28x28 would need padding.
    assert C % G == 0 and C % 8 == 0 and HW % 128 == 0
    cg = C // G

    # Free reshape only: no transpose, no padding in HBM.
    x = x_nchw.reshape(N, C, HW).astype(jnp.float32)

    def wmat(w_hwio):
        # (kh, kw, ci, co) -> (co, (kh*3+kw)*C + ci), matching the K-stack order.
        # bf16 operands for the MXU (f32 accumulation in-kernel).
        return (jnp.transpose(w_hwio, (3, 0, 1, 2))
                .reshape(C, 9 * C).astype(jnp.bfloat16))

    def colv(v):
        return v.reshape(C, 1).astype(jnp.float32)

    w1m, w2m = wmat(w1_hwio), wmat(w2_hwio)
    b1r, b2r = colv(b1), colv(b2)
    g1r, g2r = colv(g1), colv(g2)
    be1r, be2r = colv(be1), colv(be2)

    # Group-averaging matrix: gavg @ per-channel stats = per-channel group mean.
    ch = jnp.arange(C)
    same_group = (ch[:, None] // cg) == (ch[None, :] // cg)
    gavg = same_group.astype(jnp.float32) / float(cg * HW)           # (C, C)

    # Validity masks for the 9 taps (zero-pad semantics of 'SAME' 3x3 conv).
    yy = jnp.arange(HW, dtype=jnp.int32) // W
    xx = jnp.arange(HW, dtype=jnp.int32) % W
    rows = []
    for k in range(9):
        dy, dx = k // 3 - 1, k % 3 - 1
        ok = (yy + dy >= 0) & (yy + dy < H) & (xx + dx >= 0) & (xx + dx < W)
        rows.append(ok.astype(jnp.float32))
    masks = jnp.stack(rows)                                          # (9, HW)

    kernel = functools.partial(_residual_block_kernel, H, W, C)

    def const2(shape):
        return pl.BlockSpec(shape, lambda n: (0, 0))

    # Advisory cost estimate (keeps XLA scheduling sane around the custom call).
    flops = N * (2 * (2 * C * 9 * C * HW) + 2 * (2 * C * C * 2) + 10 * C * HW)
    cost = pl.CostEstimate(
        flops=flops,
        transcendentals=N * (3 * C * HW + 2 * C),
        bytes_accessed=(N * 2 * C * HW * 4 + 2 * C * 9 * C * 2
                        + 8 * C * 4 + C * C * 4 + 9 * HW * 4))

    y = pl.pallas_call(
        kernel,
        out_shape=jax.ShapeDtypeStruct((N, C, HW), jnp.float32),
        grid_spec=pltpu.PrefetchScalarGridSpec(
            num_scalar_prefetch=0,
            grid=(N,),
            in_specs=[
                pl.BlockSpec((1, C, HW), lambda n: (n, 0, 0)),
                const2((C, 9 * C)), const2((C, 1)), const2((C, 1)), const2((C, 1)),
                const2((C, 9 * C)), const2((C, 1)), const2((C, 1)), const2((C, 1)),
                const2((C, C)), const2((9, HW)),
            ],
            out_specs=pl.BlockSpec((1, C, HW), lambda n: (n, 0, 0)),
            scratch_shapes=[pltpu.VMEM((9 * C, HW), jnp.bfloat16)],  # bf16 K-stack
        ),
        compiler_params=pltpu.CompilerParams(dimension_semantics=("parallel",)),
        cost_estimate=cost,
    )(x, w1m, b1r, g1r, be1r, w2m, b2r, g2r, be2r, gavg, masks)

    # TODO(synk): at production shapes (large C*HW) switch the convs to per-tap
    # accumulated (C,C)@(C,HW) matmuls or add an H-tiled grid axis with halo and
    # set vmem_limit_bytes explicitly (the (9C,HW) K-stack would exceed v7x's
    # 64 MiB VMEM); fold several samples per grid step only when
    # N > 2 * num_tensorcores (keeps both v7x cores busy).
    return y.reshape(N, C, H, W)


def ref_residual_block(x_nchw, w1_hwio, b1, g1, be1, w2_hwio, b2, g2, be2, G):
    """Pure-JAX f32 reference (matches PyTorch semantics)."""
    x = jnp.transpose(x_nchw, (0, 2, 3, 1))

    def conv(v, w, b):
        y = jax.lax.conv_general_dilated(
            v, w, window_strides=(1, 1), padding="SAME",
            dimension_numbers=("NHWC", "HWIO", "NHWC"))
        return y + b[None, None, None, :]

    def gn(v, gamma, beta):
        N, H, W, C = v.shape
        cg = C // G
        vr = v.reshape(N, H, W, G, cg)
        mean = vr.mean(axis=(1, 2, 4), keepdims=True)
        var = vr.var(axis=(1, 2, 4), keepdims=True)
        vn = (vr - mean) / jnp.sqrt(var + EPS)
        return vn.reshape(N, H, W, C) * gamma + beta

    h = jax.nn.silu(gn(conv(x, w1_hwio, b1), g1, be1))
    h = gn(conv(h, w2_hwio, b2), g2, be2)
    y = jax.nn.silu(x + h)
    return jnp.transpose(y, (0, 3, 1, 2))


if __name__ == "__main__":
    # Small shapes consistent with the module: channels divisible by num_groups=16.
    N, C, H, W = 2, 32, 16, 16
    G = 16

    key = jax.random.PRNGKey(0)
    ks = jax.random.split(key, 9)
    x = jax.random.normal(ks[0], (N, C, H, W), jnp.float32)            # NCHW input

    # Deterministic synthetic parameters (shapes from nn.Conv2d / nn.GroupNorm).
    w1 = 0.1 * jax.random.normal(ks[1], (3, 3, C, C), jnp.float32)     # HWIO
    b1 = 0.1 * jax.random.normal(ks[2], (C,), jnp.float32)
    g1 = 1.0 + 0.1 * jax.random.normal(ks[3], (C,), jnp.float32)
    be1 = 0.1 * jax.random.normal(ks[4], (C,), jnp.float32)
    w2 = 0.1 * jax.random.normal(ks[5], (3, 3, C, C), jnp.float32)     # HWIO
    b2 = 0.1 * jax.random.normal(ks[6], (C,), jnp.float32)
    g2 = 1.0 + 0.1 * jax.random.normal(ks[7], (C,), jnp.float32)
    be2 = 0.1 * jax.random.normal(ks[8], (C,), jnp.float32)

    y = residual_block(x, w1, b1, g1, be1, w2, b2, g2, be2, G)
    y = jax.block_until_ready(y)

    y_ref = ref_residual_block(x, w1, b1, g1, be1, w2, b2, g2, be2, G)
    y_ref = jax.block_until_ready(y_ref)

    assert y.shape == (N, C, H, W)
    # bf16 MXU operands + one-pass variance vs. the f32 reference: tolerance is
    # loosened (structural bugs would produce O(1) errors, far above this).
    err = jnp.abs(y - y_ref)
    assert jnp.allclose(y, y_ref, atol=5e-2, rtol=5e-2), float(jnp.max(err))
    assert float(jnp.mean(err)) < 1e-2, float(jnp.mean(err))
    print("KERNEL_OK")
</pallas_src>

<mosaic_0001>
module attributes {stable_mosaic.version = 11 : i64} {
  func.func @_residual_block_kernel(%arg0: i32, %arg1: memref<1x32x256xf32, #tpu.memory_space<vmem>>, %arg2: memref<32x288xbf16, #tpu.memory_space<vmem>>, %arg3: memref<32x1xf32, #tpu.memory_space<vmem>>, %arg4: memref<32x1xf32, #tpu.memory_space<vmem>>, %arg5: memref<32x1xf32, #tpu.memory_space<vmem>>, %arg6: memref<32x288xbf16, #tpu.memory_space<vmem>>, %arg7: memref<32x1xf32, #tpu.memory_space<vmem>>, %arg8: memref<32x1xf32, #tpu.memory_space<vmem>>, %arg9: memref<32x1xf32, #tpu.memory_space<vmem>>, %arg10: memref<32x32xf32, #tpu.memory_space<vmem>>, %arg11: memref<9x256xf32, #tpu.memory_space<vmem>>, %arg12: memref<1x32x256xf32, #tpu.memory_space<vmem>>, %arg13: memref<288x256xbf16, #tpu.memory_space<vmem>>) attributes {dimension_semantics = [#tpu.dimension_semantics<parallel>], iteration_bounds = array<i64: 2>, scalar_prefetch = 0 : i64, scratch_operands = 1 : i64, tpu.core_type = #tpu.core_type<tc>, window_params = [{transform_indices = @transform_0, window_bounds = array<i64: 1, 32, 256>}, {pipeline_mode = #tpu.pipeline_mode<synchronous>, transform_indices = @transform_1, window_bounds = array<i64: 32, 288>}, {pipeline_mode = #tpu.pipeline_mode<synchronous>, transform_indices = @transform_2, window_bounds = array<i64: 32, 1>}, {pipeline_mode = #tpu.pipeline_mode<synchronous>, transform_indices = @transform_3, window_bounds = array<i64: 32, 1>}, {pipeline_mode = #tpu.pipeline_mode<synchronous>, transform_indices = @transform_4, window_bounds = array<i64: 32, 1>}, {pipeline_mode = #tpu.pipeline_mode<synchronous>, transform_indices = @transform_5, window_bounds = array<i64: 32, 288>}, {pipeline_mode = #tpu.pipeline_mode<synchronous>, transform_indices = @transform_6, window_bounds = array<i64: 32, 1>}, {pipeline_mode = #tpu.pipeline_mode<synchronous>, transform_indices = @transform_7, window_bounds = array<i64: 32, 1>}, {pipeline_mode = #tpu.pipeline_mode<synchronous>, transform_indices = @transform_8, window_bounds = array<i64: 32, 1>}, {pipeline_mode = #tpu.pipeline_mode<synchronous>, transform_indices = @transform_9, window_bounds = array<i64: 32, 32>}, {pipeline_mode = #tpu.pipeline_mode<synchronous>, transform_indices = @transform_10, window_bounds = array<i64: 9, 256>}, {transform_indices = @transform_11, window_bounds = array<i64: 1, 32, 256>}]} {
    %c0 = arith.constant 0 : index
    %c0_0 = arith.constant 0 : index
    %0 = vector.load %arg10[%c0, %c0_0] : memref<32x32xf32, #tpu.memory_space<vmem>>, vector<32x32xf32>
    %c0_1 = arith.constant 0 : index
    %c0_2 = arith.constant 0 : index
    %c0_3 = arith.constant 0 : index
    %1 = vector.load %arg1[%c0_1, %c0_2, %c0_3] : memref<1x32x256xf32, #tpu.memory_space<vmem>>, vector<1x32x256xf32>
    %2 = vector.shape_cast %1 : vector<1x32x256xf32> to vector<32x256xf32>
    %c17_i32 = arith.constant 17 : i32
    %3 = tpu.dynamic_rotate %2 by %c17_i32 dim 1 : vector<32x256xf32>, i32 -> vector<32x256xf32>
    %c0_4 = arith.constant 0 : index
    %c0_5 = arith.constant 0 : index
    %4 = vector.load %arg11[%c0_4, %c0_5] : memref<9x256xf32, #tpu.memory_space<vmem>>, vector<1x256xf32>
    %5 = vector.broadcast %4 : vector<1x256xf32> to vector<32x256xf32>
    %6 = arith.mulf %3, %5 : vector<32x256xf32>
    %7 = arith.truncf %6 : vector<32x256xf32> to vector<32x256xbf16>
    %c0_6 = arith.constant 0 : index
    %c0_7 = arith.constant 0 : index
    %8 = vector.load %arg13[%c0_6, %c0_7] : memref<288x256xbf16, #tpu.memory_space<vmem>>, vector<32x256xbf16>
    tpu.vector_store %arg13[%c0_6, %c0_7], %7 {strides = array<i32>} : memref<288x256xbf16, #tpu.memory_space<vmem>>, vector<32x256xbf16>,
    %c16_i32 = arith.constant 16 : i32
    %9 = tpu.dynamic_rotate %2 by %c16_i32 dim 1 : vector<32x256xf32>, i32 -> vector<32x256xf32>
    %c1 = arith.constant 1 : index
    %c0_8 = arith.constant 0 : index
    %10 = vector.load %arg11[%c1, %c0_8] : memref<9x256xf32, #tpu.memory_space<vmem>>, vector<1x256xf32>
    %11 = vector.broadcast %10 : vector<1x256xf32> to vector<32x256xf32>
    %12 = arith.mulf %9, %11 : vector<32x256xf32>
    %13 = arith.truncf %12 : vector<32x256xf32> to vector<32x256xbf16>
    %c32 = arith.constant 32 : index
    %c0_9 = arith.constant 0 : index
    %14 = vector.load %arg13[%c32, %c0_9] : memref<288x256xbf16, #tpu.memory_space<vmem>>, vector<32x256xbf16>
    tpu.vector_store %arg13[%c32, %c0_9], %13 {strides = array<i32>} : memref<288x256xbf16, #tpu.memory_space<vmem>>, vector<32x256xbf16>,
    %c15_i32 = arith.constant 15 : i32
    %15 = tpu.dynamic_rotate %2 by %c15_i32 dim 1 : vector<32x256xf32>, i32 -> vector<32x256xf32>
    %c2 = arith.constant 2 : index
    %c0_10 = arith.constant 0 : index
    %16 = vector.load %arg11[%c2, %c0_10] : memref<9x256xf32, #tpu.memory_space<vmem>>, vector<1x256xf32>
    %17 = vector.broadcast %16 : vector<1x256xf32> to vector<32x256xf32>
    %18 = arith.mulf %15, %17 : vector<32x256xf32>
    %19 = arith.truncf %18 : vector<32x256xf32> to vector<32x256xbf16>
    %c64 = arith.constant 64 : index
    %c0_11 = arith.constant 0 : index
    %20 = vector.load %arg13[%c64, %c0_11] : memref<288x256xbf16, #tpu.memory_space<vmem>>, vector<32x256xbf16>
    tpu.vector_store %arg13[%c64, %c0_11], %19 {strides = array<i32>} : memref<288x256xbf16, #tpu.memory_space<vmem>>, vector<32x256xbf16>,
    %c1_i32 = arith.constant 1 : i32
    %21 = tpu.dynamic_rotate %2 by %c1_i32 dim 1 : vector<32x256xf32>, i32 -> vector<32x256xf32>
    %c3 = arith.constant 3 : index
    %c0_12 = arith.constant 0 : index
    %22 = vector.load %arg11[%c3, %c0_12] : memref<9x256xf32, #tpu.memory_space<vmem>>, vector<1x256xf32>
    %23 = vector.broadcast %22 : vector<1x256xf32> to vector<32x256xf32>
    %24 = arith.mulf %21, %23 : vector<32x256xf32>
    %25 = arith.truncf %24 : vector<32x256xf32> to vector<32x256xbf16>
    %c96 = arith.constant 96 : index
    %c0_13 = arith.constant 0 : index
    %26 = vector.load %arg13[%c96, %c0_13] : memref<288x256xbf16, #tpu.memory_space<vmem>>, vector<32x256xbf16>
    tpu.vector_store %arg13[%c96, %c0_13], %25 {strides = array<i32>} : memref<288x256xbf16, #tpu.memory_space<vmem>>, vector<32x256xbf16>,
    %27 = arith.truncf %2 : vector<32x256xf32> to vector<32x256xbf16>
    %c128 = arith.constant 128 : index
    %c0_14 = arith.constant 0 : index
    %28 = vector.load %arg13[%c128, %c0_14] : memref<288x256xbf16, #tpu.memory_space<vmem>>, vector<32x256xbf16>
    tpu.vector_store %arg13[%c128, %c0_14], %27 {strides = array<i32>} : memref<288x256xbf16, #tpu.memory_space<vmem>>, vector<32x256xbf16>,
    %c255_i32 = arith.constant 255 : i32
    %29 = tpu.dynamic_rotate %2 by %c255_i32 dim 1 : vector<32x256xf32>, i32 -> vector<32x256xf32>
    %c5 = arith.constant 5 : index
    %c0_15 = arith.constant 0 : index
    %30 = vector.load %arg11[%c5, %c0_15] : memref<9x256xf32, #tpu.memory_space<vmem>>, vector<1x256xf32>
    %31 = vector.broadcast %30 : vector<1x256xf32> to vector<32x256xf32>
    %32 = arith.mulf %29, %31 : vector<32x256xf32>
    %33 = arith.truncf %32 : vector<32x256xf32> to vector<32x256xbf16>
    %c160 = arith.constant 160 : index
    %c0_16 = arith.constant 0 : index
    %34 = vector.load %arg13[%c160, %c0_16] : memref<288x256xbf16, #tpu.memory_space<vmem>>, vector<32x256xbf16>
    tpu.vector_store %arg13[%c160, %c0_16], %33 {strides = array<i32>} : memref<288x256xbf16, #tpu.memory_space<vmem>>, vector<32x256xbf16>,
    %c241_i32 = arith.constant 241 : i32
    %35 = tpu.dynamic_rotate %2 by %c241_i32 dim 1 : vector<32x256xf32>, i32 -> vector<32x256xf32>
    %c6 = arith.constant 6 : index
    %c0_17 = arith.constant 0 : index
    %36 = vector.load %arg11[%c6, %c0_17] : memref<9x256xf32, #tpu.memory_space<vmem>>, vector<1x256xf32>
    %37 = vector.broadcast %36 : vector<1x256xf32> to vector<32x256xf32>
    %38 = arith.mulf %35, %37 : vector<32x256xf32>
    %39 = arith.truncf %38 : vector<32x256xf32> to vector<32x256xbf16>
    %c192 = arith.constant 192 : index
    %c0_18 = arith.constant 0 : index
    %40 = vector.load %arg13[%c192, %c0_18] : memref<288x256xbf16, #tpu.memory_space<vmem>>, vector<32x256xbf16>
    tpu.vector_store %arg13[%c192, %c0_18], %39 {strides = array<i32>} : memref<288x256xbf16, #tpu.memory_space<vmem>>, vector<32x256xbf16>,
    %c240_i32 = arith.constant 240 : i32
    %41 = tpu.dynamic_rotate %2 by %c240_i32 dim 1 : vector<32x256xf32>, i32 -> vector<32x256xf32>
    %c7 = arith.constant 7 : index
    %c0_19 = arith.constant 0 : index
    %42 = vector.load %arg11[%c7, %c0_19] : memref<9x256xf32, #tpu.memory_space<vmem>>, vector<1x256xf32>
    %43 = vector.broadcast %42 : vector<1x256xf32> to vector<32x256xf32>
    %44 = arith.mulf %41, %43 : vector<32x256xf32>
    %45 = arith.truncf %44 : vector<32x256xf32> to vector<32x256xbf16>
    %c224 = arith.constant 224 : index
    %c0_20 = arith.constant 0 : index
    %46 = vector.load %arg13[%c224, %c0_20] : memref<288x256xbf16, #tpu.memory_space<vmem>>, vector<32x256xbf16>
    tpu.vector_store %arg13[%c224, %c0_20], %45 {strides = array<i32>} : memref<288x256xbf16, #tpu.memory_space<vmem>>, vector<32x256xbf16>,
    %c239_i32 = arith.constant 239 : i32
    %47 = tpu.dynamic_rotate %2 by %c239_i32 dim 1 : vector<32x256xf32>, i32 -> vector<32x256xf32>
    %c8 = arith.constant 8 : index
    %c0_21 = arith.constant 0 : index
    %48 = vector.load %arg11[%c8, %c0_21] : memref<9x256xf32, #tpu.memory_space<vmem>>, vector<1x256xf32>
    %49 = vector.broadcast %48 : vector<1x256xf32> to vector<32x256xf32>
    %50 = arith.mulf %47, %49 : vector<32x256xf32>
    %51 = arith.truncf %50 : vector<32x256xf32> to vector<32x256xbf16>
    %c256 = arith.constant 256 : index
    %c0_22 = arith.constant 0 : index
    %52 = vector.load %arg13[%c256, %c0_22] : memref<288x256xbf16, #tpu.memory_space<vmem>>, vector<32x256xbf16>
    tpu.vector_store %arg13[%c256, %c0_22], %51 {strides = array<i32>} : memref<288x256xbf16, #tpu.memory_space<vmem>>, vector<32x256xbf16>,
    %c0_23 = arith.constant 0 : index
    %c0_24 = arith.constant 0 : index
    %53 = vector.load %arg2[%c0_23, %c0_24] : memref<32x288xbf16, #tpu.memory_space<vmem>>, vector<32x288xbf16>
    %c0_25 = arith.constant 0 : index
    %c0_26 = arith.constant 0 : index
    %54 = vector.load %arg13[%c0_25, %c0_26] : memref<288x256xbf16, #tpu.memory_space<vmem>>, vector<288x256xbf16>
    %cst = arith.constant dense<0.000000e+00> : vector<32x256xf32>
    %55 = tpu.matmul %53, %54, %cst {dimension_numbers = #tpu.dot_dimension_numbers<[1], [0], [0], [1], [0, 0, 1, 1], [], []>} : vector<32x288xbf16>, vector<288x256xbf16>, vector<32x256xf32> -> vector<32x256xf32>
    %c0_27 = arith.constant 0 : index
    %c0_28 = arith.constant 0 : index
    %56 = vector.load %arg3[%c0_27, %c0_28] : memref<32x1xf32, #tpu.memory_space<vmem>>, vector<32x1xf32>
    %57 = vector.broadcast %56 : vector<32x1xf32> to vector<32x256xf32>
    %58 = arith.addf %55, %57 : vector<32x256xf32>
    %c0_29 = arith.constant 0 : index
    %c0_30 = arith.constant 0 : index
    %59 = vector.load %arg4[%c0_29, %c0_30] : memref<32x1xf32, #tpu.memory_space<vmem>>, vector<32x1xf32>
    %c0_31 = arith.constant 0 : index
    %c0_32 = arith.constant 0 : index
    %60 = vector.load %arg5[%c0_31, %c0_32] : memref<32x1xf32, #tpu.memory_space<vmem>>, vector<32x1xf32>
    %cst_33 = arith.constant dense<0.000000e+00> : vector<32xf32>
    %61 = vector.multi_reduction <add>, %58, %cst_33 [1] : vector<32x256xf32> to vector<32xf32>
    %62 = vector.shape_cast %61 : vector<32xf32> to vector<32x1xf32>
    %63 = arith.mulf %58, %58 : vector<32x256xf32>
    %cst_34 = arith.constant dense<0.000000e+00> : vector<32xf32>
    %64 = vector.multi_reduction <add>, %63, %cst_34 [1] : vector<32x256xf32> to vector<32xf32>
    %65 = vector.shape_cast %64 : vector<32xf32> to vector<32x1xf32>
    %66 = tpu.concatenate %62, %65 in 1 : vector<32x1xf32>, vector<32x1xf32> -> vector<32x2xf32>
    %cst_35 = arith.constant dense<0.000000e+00> : vector<32x2xf32>
    %67 = tpu.matmul %0, %66, %cst_35 {dimension_numbers = #tpu.dot_dimension_numbers<[1], [0], [0], [1], [0, 0, 1, 1], [], []>} : vector<32x32xf32>, vector<32x2xf32>, vector<32x2xf32> -> vector<32x2xf32>
    %68 = vector.extract_strided_slice %67 {offsets = [0, 0], sizes = [32, 1], strides = [1, 1]} : vector<32x2xf32> to vector<32x1xf32>
    %69 = vector.extract_strided_slice %67 {offsets = [0, 1], sizes = [32, 1], strides = [1, 1]} : vector<32x2xf32> to vector<32x1xf32>
    %70 = arith.mulf %68, %68 : vector<32x1xf32>
    %71 = arith.subf %69, %70 : vector<32x1xf32>
    %cst_36 = arith.constant 0.000000e+00 : f32
    %72 = vector.broadcast %cst_36 : f32 to vector<32x1xf32>
    %73 = arith.maximumf %71, %72 : vector<32x1xf32>
    %cst_37 = arith.constant 9.99999974E-6 : f32
    %74 = vector.broadcast %cst_37 : f32 to vector<32x1xf32>
    %75 = arith.addf %73, %74 : vector<32x1xf32>
    %76 = math.rsqrt %75 : vector<32x1xf32>
    %77 = arith.mulf %76, %59 : vector<32x1xf32>
    %78 = arith.mulf %68, %77 : vector<32x1xf32>
    %79 = arith.subf %60, %78 : vector<32x1xf32>
    %80 = vector.broadcast %77 : vector<32x1xf32> to vector<32x256xf32>
    %81 = arith.mulf %58, %80 : vector<32x256xf32>
    %82 = vector.broadcast %79 : vector<32x1xf32> to vector<32x256xf32>
    %83 = arith.addf %81, %82 : vector<32x256xf32>
    %84 = arith.negf %83 : vector<32x256xf32>
    %85 = math.exp %84 : vector<32x256xf32>
    %cst_38 = arith.constant 1.000000e+00 : f32
    %86 = vector.broadcast %cst_38 : f32 to vector<32x256xf32>
    %87 = arith.addf %86, %85 : vector<32x256xf32>
    %88 = arith.divf %86, %87 : vector<32x256xf32>
    %89 = arith.mulf %83, %88 : vector<32x256xf32>
    %c17_i32_39 = arith.constant 17 : i32
    %90 = tpu.dynamic_rotate %89 by %c17_i32_39 dim 1 : vector<32x256xf32>, i32 -> vector<32x256xf32>
    %c0_40 = arith.constant 0 : index
    %c0_41 = arith.constant 0 : index
    %91 = vector.load %arg11[%c0_40, %c0_41] : memref<9x256xf32, #tpu.memory_space<vmem>>, vector<1x256xf32>
    %92 = vector.broadcast %91 : vector<1x256xf32> to vector<32x256xf32>
    %93 = arith.mulf %90, %92 : vector<32x256xf32>
    %94 = arith.truncf %93 : vector<32x256xf32> to vector<32x256xbf16>
    %c0_42 = arith.constant 0 : index
    %c0_43 = arith.constant 0 : index
    %95 = vector.load %arg13[%c0_42, %c0_43] : memref<288x256xbf16, #tpu.memory_space<vmem>>, vector<32x256xbf16>
    tpu.vector_store %arg13[%c0_42, %c0_43], %94 {strides = array<i32>} : memref<288x256xbf16, #tpu.memory_space<vmem>>, vector<32x256xbf16>,
    %c16_i32_44 = arith.constant 16 : i32
    %96 = tpu.dynamic_rotate %89 by %c16_i32_44 dim 1 : vector<32x256xf32>, i32 -> vector<32x256xf32>
    %c1_45 = arith.constant 1 : index
    %c0_46 = arith.constant 0 : index
    %97 = vector.load %arg11[%c1_45, %c0_46] : memref<9x256xf32, #tpu.memory_space<vmem>>, vector<1x256xf32>
    %98 = vector.broadcast %97 : vector<1x256xf32> to vector<32x256xf32>
    %99 = arith.mulf %96, %98 : vector<32x256xf32>
    %100 = arith.truncf %99 : vector<32x256xf32> to vector<32x256xbf16>
    %c32_47 = arith.constant 32 : index
    %c0_48 = arith.constant 0 : index
    %101 = vector.load %arg13[%c32_47, %c0_48] : memref<288x256xbf16, #tpu.memory_space<vmem>>, vector<32x256xbf16>
    tpu.vector_store %arg13[%c32_47, %c0_48], %100 {strides = array<i32>} : memref<288x256xbf16, #tpu.memory_space<vmem>>, vector<32x256xbf16>,
    %c15_i32_49 = arith.constant 15 : i32
    %102 = tpu.dynamic_rotate %89 by %c15_i32_49 dim 1 : vector<32x256xf32>, i32 -> vector<32x256xf32>
    %c2_50 = arith.constant 2 : index
    %c0_51 = arith.constant 0 : index
    %103 = vector.load %arg11[%c2_50, %c0_51] : memref<9x256xf32, #tpu.memory_space<vmem>>, vector<1x256xf32>
    %104 = vector.broadcast %103 : vector<1x256xf32> to vector<32x256xf32>
    %105 = arith.mulf %102, %104 : vector<32x256xf32>
    %106 = arith.truncf %105 : vector<32x256xf32> to vector<32x256xbf16>
    %c64_52 = arith.constant 64 : index
    %c0_53 = arith.constant 0 : index
    %107 = vector.load %arg13[%c64_52, %c0_53] : memref<288x256xbf16, #tpu.memory_space<vmem>>, vector<32x256xbf16>
    tpu.vector_store %arg13[%c64_52, %c0_53], %106 {strides = array<i32>} : memref<288x256xbf16, #tpu.memory_space<vmem>>, vector<32x256xbf16>,
    %c1_i32_54 = arith.constant 1 : i32
    %108 = tpu.dynamic_rotate %89 by %c1_i32_54 dim 1 : vector<32x256xf32>, i32 -> vector<32x256xf32>
    %c3_55 = arith.constant 3 : index
    %c0_56 = arith.constant 0 : index
    %109 = vector.load %arg11[%c3_55, %c0_56] : memref<9x256xf32, #tpu.memory_space<vmem>>, vector<1x256xf32>
    %110 = vector.broadcast %109 : vector<1x256xf32> to vector<32x256xf32>
    %111 = arith.mulf %108, %110 : vector<32x256xf32>
    %112 = arith.truncf %111 : vector<32x256xf32> to vector<32x256xbf16>
    %c96_57 = arith.constant 96 : index
    %c0_58 = arith.constant 0 : index
    %113 = vector.load %arg13[%c96_57, %c0_58] : memref<288x256xbf16, #tpu.memory_space<vmem>>, vector<32x256xbf16>
    tpu.vector_store %arg13[%c96_57, %c0_58], %112 {strides = array<i32>} : memref<288x256xbf16, #tpu.memory_space<vmem>>, vector<32x256xbf16>,
    %114 = arith.truncf %89 : vector<32x256xf32> to vector<32x256xbf16>
    %c128_59 = arith.constant 128 : index
    %c0_60 = arith.constant 0 : index
    %115 = vector.load %arg13[%c128_59, %c0_60] : memref<288x256xbf16, #tpu.memory_space<vmem>>, vector<32x256xbf16>
    tpu.vector_store %arg13[%c128_59, %c0_60], %114 {strides = array<i32>} : memref<288x256xbf16, #tpu.memory_space<vmem>>, vector<32x256xbf16>,
    %c255_i32_61 = arith.constant 255 : i32
    %116 = tpu.dynamic_rotate %89 by %c255_i32_61 dim 1 : vector<32x256xf32>, i32 -> vector<32x256xf32>
    %c5_62 = arith.constant 5 : index
    %c0_63 = arith.constant 0 : index
    %117 = vector.load %arg11[%c5_62, %c0_63] : memref<9x256xf32, #tpu.memory_space<vmem>>, vector<1x256xf32>
    %118 = vector.broadcast %117 : vector<1x256xf32> to vector<32x256xf32>
    %119 = arith.mulf %116, %118 : vector<32x256xf32>
    %120 = arith.truncf %119 : vector<32x256xf32> to vector<32x256xbf16>
    %c160_64 = arith.constant 160 : index
    %c0_65 = arith.constant 0 : index
    %121 = vector.load %arg13[%c160_64, %c0_65] : memref<288x256xbf16, #tpu.memory_space<vmem>>, vector<32x256xbf16>
    tpu.vector_store %arg13[%c160_64, %c0_65], %120 {strides = array<i32>} : memref<288x256xbf16, #tpu.memory_space<vmem>>, vector<32x256xbf16>,
    %c241_i32_66 = arith.constant 241 : i32
    %122 = tpu.dynamic_rotate %89 by %c241_i32_66 dim 1 : vector<32x256xf32>, i32 -> vector<32x256xf32>
    %c6_67 = arith.constant 6 : index
    %c0_68 = arith.constant 0 : index
    %123 = vector.load %arg11[%c6_67, %c0_68] : memref<9x256xf32, #tpu.memory_space<vmem>>, vector<1x256xf32>
    %124 = vector.broadcast %123 : vector<1x256xf32> to vector<32x256xf32>
    %125 = arith.mulf %122, %124 : vector<32x256xf32>
    %126 = arith.truncf %125 : vector<32x256xf32> to vector<32x256xbf16>
    %c192_69 = arith.constant 192 : index
    %c0_70 = arith.constant 0 : index
    %127 = vector.load %arg13[%c192_69, %c0_70] : memref<288x256xbf16, #tpu.memory_space<vmem>>, vector<32x256xbf16>
    tpu.vector_store %arg13[%c192_69, %c0_70], %126 {strides = array<i32>} : memref<288x256xbf16, #tpu.memory_space<vmem>>, vector<32x256xbf16>,
    %c240_i32_71 = arith.constant 240 : i32
    %128 = tpu.dynamic_rotate %89 by %c240_i32_71 dim 1 : vector<32x256xf32>, i32 -> vector<32x256xf32>
    %c7_72 = arith.constant 7 : index
    %c0_73 = arith.constant 0 : index
    %129 = vector.load %arg11[%c7_72, %c0_73] : memref<9x256xf32, #tpu.memory_space<vmem>>, vector<1x256xf32>
    %130 = vector.broadcast %129 : vector<1x256xf32> to vector<32x256xf32>
    %131 = arith.mulf %128, %130 : vector<32x256xf32>
    %132 = arith.truncf %131 : vector<32x256xf32> to vector<32x256xbf16>
    %c224_74 = arith.constant 224 : index
    %c0_75 = arith.constant 0 : index
    %133 = vector.load %arg13[%c224_74, %c0_75] : memref<288x256xbf16, #tpu.memory_space<vmem>>, vector<32x256xbf16>
    tpu.vector_store %arg13[%c224_74, %c0_75], %132 {strides = array<i32>} : memref<288x256xbf16, #tpu.memory_space<vmem>>, vector<32x256xbf16>,
    %c239_i32_76 = arith.constant 239 : i32
    %134 = tpu.dynamic_rotate %89 by %c239_i32_76 dim 1 : vector<32x256xf32>, i32 -> vector<32x256xf32>
    %c8_77 = arith.constant 8 : index
    %c0_78 = arith.constant 0 : index
    %135 = vector.load %arg11[%c8_77, %c0_78] : memref<9x256xf32, #tpu.memory_space<vmem>>, vector<1x256xf32>
    %136 = vector.broadcast %135 : vector<1x256xf32> to vector<32x256xf32>
    %137 = arith.mulf %134, %136 : vector<32x256xf32>
    %138 = arith.truncf %137 : vector<32x256xf32> to vector<32x256xbf16>
    %c256_79 = arith.constant 256 : index
    %c0_80 = arith.constant 0 : index
    %139 = vector.load %arg13[%c256_79, %c0_80] : memref<288x256xbf16, #tpu.memory_space<vmem>>, vector<32x256xbf16>
    tpu.vector_store %arg13[%c256_79, %c0_80], %138 {strides = array<i32>} : memref<288x256xbf16, #tpu.memory_space<vmem>>, vector<32x256xbf16>,
    %c0_81 = arith.constant 0 : index
    %c0_82 = arith.constant 0 : index
    %140 = vector.load %arg6[%c0_81, %c0_82] : memref<32x288xbf16, #tpu.memory_space<vmem>>, vector<32x288xbf16>
    %c0_83 = arith.constant 0 : index
    %c0_84 = arith.constant 0 : index
    %141 = vector.load %arg13[%c0_83, %c0_84] : memref<288x256xbf16, #tpu.memory_space<vmem>>, vector<288x256xbf16>
    %cst_85 = arith.constant dense<0.000000e+00> : vector<32x256xf32>
    %142 = tpu.matmul %140, %141, %cst_85 {dimension_numbers = #tpu.dot_dimension_numbers<[1], [0], [0], [1], [0, 0, 1, 1], [], []>} : vector<32x288xbf16>, vector<288x256xbf16>, vector<32x256xf32> -> vector<32x256xf32>
    %c0_86 = arith.constant 0 : index
    %c0_87 = arith.constant 0 : index
    %143 = vector.load %arg7[%c0_86, %c0_87] : memref<32x1xf32, #tpu.memory_space<vmem>>, vector<32x1xf32>
    %144 = vector.broadcast %143 : vector<32x1xf32> to vector<32x256xf32>
    %145 = arith.addf %142, %144 : vector<32x256xf32>
    %c0_88 = arith.constant 0 : index
    %c0_89 = arith.constant 0 : index
    %146 = vector.load %arg8[%c0_88, %c0_89] : memref<32x1xf32, #tpu.memory_space<vmem>>, vector<32x1xf32>
    %c0_90 = arith.constant 0 : index
    %c0_91 = arith.constant 0 : index
    %147 = vector.load %arg9[%c0_90, %c0_91] : memref<32x1xf32, #tpu.memory_space<vmem>>, vector<32x1xf32>
    %cst_92 = arith.constant dense<0.000000e+00> : vector<32xf32>
    %148 = vector.multi_reduction <add>, %145, %cst_92 [1] : vector<32x256xf32> to vector<32xf32>
    %149 = vector.shape_cast %148 : vector<32xf32> to vector<32x1xf32>
    %150 = arith.mulf %145, %145 : vector<32x256xf32>
    %cst_93 = arith.constant dense<0.000000e+00> : vector<32xf32>
    %151 = vector.multi_reduction <add>, %150, %cst_93 [1] : vector<32x256xf32> to vector<32xf32>
    %152 = vector.shape_cast %151 : vector<32xf32> to vector<32x1xf32>
    %153 = tpu.concatenate %149, %152 in 1 : vector<32x1xf32>, vector<32x1xf32> -> vector<32x2xf32>
    %cst_94 = arith.constant dense<0.000000e+00> : vector<32x2xf32>
    %154 = tpu.matmul %0, %153, %cst_94 {dimension_numbers = #tpu.dot_dimension_numbers<[1], [0], [0], [1], [0, 0, 1, 1], [], []>} : vector<32x32xf32>, vector<32x2xf32>, vector<32x2xf32> -> vector<32x2xf32>
    %155 = vector.extract_strided_slice %154 {offsets = [0, 0], sizes = [32, 1], strides = [1, 1]} : vector<32x2xf32> to vector<32x1xf32>
    %156 = vector.extract_strided_slice %154 {offsets = [0, 1], sizes = [32, 1], strides = [1, 1]} : vector<32x2xf32> to vector<32x1xf32>
    %157 = arith.mulf %155, %155 : vector<32x1xf32>
    %158 = arith.subf %156, %157 : vector<32x1xf32>
    %cst_95 = arith.constant 0.000000e+00 : f32
    %159 = vector.broadcast %cst_95 : f32 to vector<32x1xf32>
    %160 = arith.maximumf %158, %159 : vector<32x1xf32>
    %cst_96 = arith.constant 9.99999974E-6 : f32
    %161 = vector.broadcast %cst_96 : f32 to vector<32x1xf32>
    %162 = arith.addf %160, %161 : vector<32x1xf32>
    %163 = math.rsqrt %162 : vector<32x1xf32>
    %164 = arith.mulf %163, %146 : vector<32x1xf32>
    %165 = arith.mulf %155, %164 : vector<32x1xf32>
    %166 = arith.subf %147, %165 : vector<32x1xf32>
    %167 = vector.broadcast %164 : vector<32x1xf32> to vector<32x256xf32>
    %168 = arith.mulf %145, %167 : vector<32x256xf32>
    %169 = vector.broadcast %166 : vector<32x1xf32> to vector<32x256xf32>
    %170 = arith.addf %168, %169 : vector<32x256xf32>
    %171 = arith.addf %2, %170 : vector<32x256xf32>
    %172 = arith.negf %171 : vector<32x256xf32>
    %173 = math.exp %172 : vector<32x256xf32>
    %cst_97 = arith.constant 1.000000e+00 : f32
    %174 = vector.broadcast %cst_97 : f32 to vector<32x256xf32>
    %175 = arith.addf %174, %173 : vector<32x256xf32>
    %176 = arith.divf %174, %175 : vector<32x256xf32>
    %177 = arith.mulf %171, %176 : vector<32x256xf32>
    %c0_98 = arith.constant 0 : index
    %c0_99 = arith.constant 0 : index
    %c0_100 = arith.constant 0 : index
    %178 = vector.load %arg12[%c0_98, %c0_99, %c0_100] : memref<1x32x256xf32, #tpu.memory_space<vmem>>, vector<1x32x256xf32>
    %179 = vector.shape_cast %178 : vector<1x32x256xf32> to vector<32x256xf32>
    %180 = vector.shape_cast %177 : vector<32x256xf32> to vector<1x32x256xf32>
    tpu.vector_store %arg12[%c0_98, %c0_99, %c0_100], %180 {strides = array<i32>} : memref<1x32x256xf32, #tpu.memory_space<vmem>>, vector<1x32x256xf32>,
    return
  }
  func.func @transform_0(%arg0: i32) -> (i32, i32, i32) {
    %c0_i32 = arith.constant 0 : i32
    %c0_i32_0 = arith.constant 0 : i32
    %c0_i32_1 = arith.constant 0 : i32
    return %arg0, %c0_i32, %c0_i32_0 : i32, i32, i32
  }
  func.func @transform_1(%arg0: i32) -> (i32, i32) {
    %c0_i32 = arith.constant 0 : i32
    %c0_i32_0 = arith.constant 0 : i32
    %c0_i32_1 = arith.constant 0 : i32
    return %c0_i32, %c0_i32_0 : i32, i32
  }
  func.func @transform_2(%arg0: i32) -> (i32, i32) {
    %c0_i32 = arith.constant 0 : i32
    %c0_i32_0 = arith.constant 0 : i32
    %c0_i32_1 = arith.constant 0 : i32
    return %c0_i32, %c0_i32_0 : i32, i32
  }
  func.func @transform_3(%arg0: i32) -> (i32, i32) {
    %c0_i32 = arith.constant 0 : i32
    %c0_i32_0 = arith.constant 0 : i32
    %c0_i32_1 = arith.constant 0 : i32
    return %c0_i32, %c0_i32_0 : i32, i32
  }
  func.func @transform_4(%arg0: i32) -> (i32, i32) {
    %c0_i32 = arith.constant 0 : i32
    %c0_i32_0 = arith.constant 0 : i32
    %c0_i32_1 = arith.constant 0 : i32
    return %c0_i32, %c0_i32_0 : i32, i32
  }
  func.func @transform_5(%arg0: i32) -> (i32, i32) {
    %c0_i32 = arith.constant 0 : i32
    %c0_i32_0 = arith.constant 0 : i32
    %c0_i32_1 = arith.constant 0 : i32
    return %c0_i32, %c0_i32_0 : i32, i32
  }
  func.func @transform_6(%arg0: i32) -> (i32, i32) {
    %c0_i32 = arith.constant 0 : i32
    %c0_i32_0 = arith.constant 0 : i32
    %c0_i32_1 = arith.constant 0 : i32
    return %c0_i32, %c0_i32_0 : i32, i32
  }
  func.func @transform_7(%arg0: i32) -> (i32, i32) {
    %c0_i32 = arith.constant 0 : i32
    %c0_i32_0 = arith.constant 0 : i32
    %c0_i32_1 = arith.constant 0 : i32
    return %c0_i32, %c0_i32_0 : i32, i32
  }
  func.func @transform_8(%arg0: i32) -> (i32, i32) {
    %c0_i32 = arith.constant 0 : i32
    %c0_i32_0 = arith.constant 0 : i32
    %c0_i32_1 = arith.constant 0 : i32
    return %c0_i32, %c0_i32_0 : i32, i32
  }
  func.func @transform_9(%arg0: i32) -> (i32, i32) {
    %c0_i32 = arith.constant 0 : i32
    %c0_i32_0 = arith.constant 0 : i32
    %c0_i32_1 = arith.constant 0 : i32
    return %c0_i32, %c0_i32_0 : i32, i32
  }
  func.func @transform_10(%arg0: i32) -> (i32, i32) {
    %c0_i32 = arith.constant 0 : i32
    %c0_i32_0 = arith.constant 0 : i32
    %c0_i32_1 = arith.constant 0 : i32
    return %c0_i32, %c0_i32_0 : i32, i32
  }
  func.func @transform_11(%arg0: i32) -> (i32, i32, i32) {
    %c0_i32 = arith.constant 0 : i32
    %c0_i32_0 = arith.constant 0 : i32
    %c0_i32_1 = arith.constant 0 : i32
    return %arg0, %c0_i32, %c0_i32_0 : i32, i32, i32
  }
}

</mosaic_0001>

<bundles_post_ra>
// kernel: tpu_custom_call.1
= control target key start
LH: loop header
LB: loop body
LE: loop exit
PB: predicated region body
PF: predicated region fallthrough
CT: control target
= control target key end

     0   :  { %s5249_s0 = inlined_call_operand.vmem [shape: f32[2,32,256], index: 0, kind: input, shape index: {}]   ;;  %s5250_s1 = inlined_call_operand.vmem [shape: bf16[32,288], index: 1, kind: input, shape index: {}]   ;;  %s5251_s2 = inlined_call_operand.vmem [shape: f32[32,1], index: 2, kind: input, shape index: {}]   ;;  %s5252_s3 = inlined_call_operand.vmem [shape: f32[32,1], index: 3, kind: input, shape index: {}]   ;;  %s5253_s4 = inlined_call_operand.vmem [shape: f32[32,1], index: 4, kind: input, shape index: {}]   ;;  %s5254_s5 = inlined_call_operand.hbm [shape: bf16[32,288], index: 5, kind: input, shape index: {}]   ;;  %s5255_s6 = inlined_call_operand.vmem [shape: f32[32,1], index: 6, kind: input, shape index: {}]   ;;  %s5256_s7 = inlined_call_operand.vmem [shape: f32[32,1], index: 7, kind: input, shape index: {}]   ;;  %s5257_s8 = inlined_call_operand.vmem [shape: f32[32,1], index: 8, kind: input, shape index: {}]   ;;  %s5258_s9 = inlined_call_operand.hbm [shape: f32[32,32], index: 9, kind: input, shape index: {}]   ;;  %s5259_s10 = inlined_call_operand.hbm [shape: f32[9,256], index: 10, kind: input, shape index: {}]   ;;  %s5260_s11 = inlined_call_operand.hbm [shape: f32[2,32,256], index: 11, kind: output, shape index: {}]  }
   0x1   :  { %5269 = sst [smem:[#allocation19_spill]] %s5254_s5 }
   0x2   :  { %5270 = sst [smem:[#allocation20_spill]] %s5258_s9 }
   0x3   :  { %16 = vsyncpa [#allocation4], 0 }
   0x4   :  { %17 = vsyncpa [#allocation7], 0 }
   0x5   :  { %18 = vsyncpa [#allocation5], 0 }
   0x6   :  { %20 = vsyncpa [#allocation5 + $0x1], 0  ;;  %s3864_s17 = smov 0   ;;  %s3866_s18 = smov 0  }
   0x7   :  { %s3868_s19 = smov 0   ;;  %s3870_s20 = smov 0  }
   0x8 LB: > { %5271 = sst [smem:[#allocation13_spill]] %s3770_s17  ;;  %s3885_s21 = sadd.s32 4294967295, %s3782_s20   ;;  %s3782_s20 = sphi %s3870_s20, %s5298_s20   ;;  %s3778_s19 = sphi %s3868_s19, %s5300_s19   ;;  %s3774_s18 = sphi %s3866_s18, %s5302_s18   ;;  %s3770_s17 = sphi %s3864_s17, %s5301_s17  }
   0x9   : > { %5272 = sst [smem:[#allocation14_spill]] %s3778_s19  ;;  %s2954_s22 = sadd.s32 4294967294, %s3782_s20  }
   0xa   : > { %5273 = sst [smem:[#allocation15_spill]] %s3782_s20  ;;  %s3889_s23 = sadd.s32 1, %s3782_s20  }
   0xb   : > { %5274 = sst [smem:[#allocation16_spill]] %s3889_s23  ;;  %s269_s24 = sadd.s32 1, %s3778_s19 }
   0xc   : > { %s266_s25 = ssub.s32 %s3782_s20, %s3889_s23  ;;  %p279_p0 = scmp.ne.s32.totalorder %s3778_s19, %s3774_s18 }
   0xd   : > { %p267_p1 = scmp.eq.s32.totalorder %s266_s25, 0  ;;  %p280_p2 = scmp.eq.s32.totalorder %s3885_s21, 1 }
   0xe   : > { %p285_p3 = scmp.ne.s32.totalorder %s3774_s18, %s3770_s17  ;;  %p286_p4 = scmp.eq.s32.totalorder %s2954_s22, 1 }
   0xf   : > { %s3900_s26 = scalar_select %p267_p1, %s3778_s19, %s269_s24  }
  0x10   : > { %p3902_p5 = por %p280_p2, %p279_p0  ;;  %p3906_p6 = por %p286_p4, %p285_p3 }
  0x11   : > { %5275 = sst [smem:[#allocation17_spill]] %s3900_s26  ;;  %p2955_p7 = scmp.ge.s32.totalorder %s3782_s20, 1 }
  0x12   : > { %s5277_s28 = scalar_select %p3906_p6, 1, 0 }
  0x13   : > { %p293_p8 = scmp.lt.s32.totalorder %s3782_s20, 3  ;;  %p3456_p9 = scmp.eq.s32.totalorder %s3885_s21, 0 }
  0x14   : > { %5278 = sst [smem:[#allocation18_spill]] %s5277_s28  ;;  %s3784_s14 = smov [#allocation6]  }
  0x15   : > { %p3913_p10 = pnand %p2955_p7, %p293_p8  ;;  %s5280_s9 = sld [smem:[#allocation20_spill]] }
  0x16   : > { %s341_s15 = sshll.u32 %s3784_s14, 4  ;;  %s5282_s5 = sld [smem:[#allocation19_spill]]  ;;  %s342_s15 = int_to_ptr.vmem [resolvable:$true] %s341_s15 }
  0x17   : > { %p3442_p11 = pneg %p3913_p10  ;;  %s3785_s30 = smov 128  }
  0x18   : > { %s3786_s12 = smov 8   ;;  %s3788_s26 = smov 192  }
  0x19   : > { %p3924_p12 = pnand %p3456_p9, %p3442_p11  ;;  %s3789_s19 = smov 12  }
  0x1a   : > { %s353_s22 = sshll.u32 %s5259_s10, 4  ;;  %s3790_s24 = smov [#allocation8]   ;;  %s354_s22 = int_to_ptr.hbm [resolvable:$true] %s353_s22 }
  0x1b   : > { %s339_s13 = sshll.u32 %s5280_s9, 4  ;;  %s3787_s9 = smov [#allocation3]   ;;  %s340_s13 = int_to_ptr.hbm [resolvable:$true] %s339_s13 }
  0x1c   : > { %s316_s25 = sshll.u32 %s5282_s5, 4  ;;  %s318_s14 = sshll.u32 %s3787_s9, 4  ;;  %s317_s25 = int_to_ptr.hbm [resolvable:$true] %s316_s25  ;;  %s319_s14 = int_to_ptr.vmem [resolvable:$true] %s318_s14 }
  0x1d   : > { %3448 = dma.hbm_to_vmem [thread:$0]  (!%p3924_p12), %s340_s13, 512, %s342_s15, [#allocation7], %s3785_s30, %s3785_s30, %s3786_s12  }
  0x1e   : > { %3445 = dma.hbm_to_vmem [thread:$0]  (!%p3924_p12), %s317_s25, 768, %s319_s14, [#allocation4], %s3788_s26, %s3788_s26, %s3789_s19  }
  0x1f   : > { %s355_s5 = sshll.u32 %s3790_s24, 4  ;;  %s3791_s17 = smov 256   ;;  %s356_s5 = int_to_ptr.vmem [resolvable:$true] %s355_s5 }
  0x20   : > { %s3792_s20 = smov 16   ;;  %379 = sbr.rel (%p3913_p10) target bundleno = 2352 (0x930), region = 64 }
  0x21   : > { %3451 = dma.hbm_to_vmem [thread:$0]  (!%p3924_p12), %s354_s22, 512, %s356_s5, [#allocation7], %s3791_s17, %s3791_s17, %s3792_s20  }
  0x25   : > { %3757 = dma.done.wait (%p3456_p9), [#allocation4], 768  }
  0x26   : > { %3759 = vsyncadd (%p3456_p9), [#allocation4], 4294966528 }
  0x27   : > { %3761 = dma.done.wait (%p3456_p9), [#allocation7], 1024  }
  0x28   : > { %3763 = vsyncadd (%p3456_p9), [#allocation7], 4294966272  ;;  %p430_p13 = scmp.lt.s32.totalorder %s3885_s21, 1  ;;  %s3793_s23 = smov 112   ;;  %v464_v10 = vlaneseq  ;;  %vm5268_vm7 = vcmask 261120   ;;  %vm5267_vm9 = vcmask 7168  }
  0x29   : > { %s3794_s26 = smov 111   ;;  %s3795_s28 = smov 1   ;;  %v771_v13 = vld [vmem:[#allocation8 + $0x7] ss:$8 sm:$0x3] }
  0x2a   : > { %s431_s9 = scalar_select %p430_p13, %s3885_s21, 1  ;;  %v4067_v12 = vand.u32 127, %v464_v10  ;;  %v4074_v14 = vperm.slane %v771_v13, 0  ;;  %v4076_v15 = vperm.slane %v771_v13, 1 }
  0x2b   : > { %s3796_s29 = smov 113   ;;  %s3797_s13 = smov 15   ;;  %v819_v31 = vld [vmem:[#allocation8 + $0x10] ss:$8 sm:$0x3] }
  0x2c   : > { %s3340_s5 = sshll.u32 %s431_s9, 6  ;;  %s3798_s15 = smov 127   ;;  %vm761_vm0 = vcmp.lt.s32.totalorder %v4067_v12, 112  ;;  %vm809_vm1 = vcmp.lt.s32.totalorder %v4067_v12, 111  ;;  %v4105_v33 = vperm.slane %v819_v31, 0  ;;  %v4107_v34 = vperm.slane %v819_v31, 1 }
  0x2d   : > { %s3955_s20 = scalar_lea.vmem %s5249_s0, %s3340_s5  ;;  %s3799_s16 = smov 16   ;;  %v619_v46 = vld [vmem:[#allocation8 + $0x3] ss:$8 sm:$0x3]  ;;  %vm609_vm2 = vcmp.lt.s32.totalorder %v4067_v12, 1  ;;  %vm713_vm3 = vcmp.lt.s32.totalorder %v4067_v12, 113 }
  0x2e   : > { %v3958_v0 = vld [vmem:[%s3955_s20 + $0x28] sm:$0xff]  ;;  %v3961_v1 = vld [vmem:[%s3955_s20 + $0x20] sm:$0xff]  ;;  %v3970_v2 = vld [vmem:[%s3955_s20 + $0x38] sm:$0xff]  ;;  %v4130_v51 = vperm.slane %v619_v46, 0  ;;  %v4132_v52 = vperm.slane %v619_v46, 1  ;;  %s3800_s25 = smov 17  }
  0x2f   : > { %757 = vrot.lane.b32.xlu1 %v3958_v0, %s3793_s23  ;;  %749 = vrot.lane.b32.xlu0 %v3961_v1, %s3793_s23  ;;  %v3973_v3 = vld [vmem:[%s3955_s20 + $0x30] sm:$0xff]  ;;  %v3997_v5 = vld [vmem:[%s3955_s20] sm:$0xff]  ;;  %vm561_vm4 = vcmp.lt.s32.totalorder %v4067_v12, 15  ;;  %vm665_vm5 = vcmp.lt.s32.totalorder %v4067_v12, 127  ;;  %vm513_vm6 = vcmp.lt.s32.totalorder %v4067_v12, 16  ;;  %vm466_vm8 = vcmp.lt.s32.totalorder %v4067_v12, 17 }
  0x30   : > { %797 = vrot.lane.b32.xlu2 %v3961_v1, %s3794_s26  ;;  %v3994_v4 = vld [vmem:[%s3955_s20 + $0x10] sm:$0xff]  ;;  %v4004_v6 = vld [vmem:[%s3955_s20 + $0x8] sm:$0xff]  ;;  %v4009_v7 = vld [vmem:[%s3955_s20 + $0x18] sm:$0xff]  ;;  %s427_s5 = sand.u32 1, %s3774_s18  }
  0x31   : > { %s2964_s17 = sshll.u32 %s427_s5, 6 }
  0x32   : > { %s5152_s19 = scalar_lea.vmem [#allocation9], %s2964_s17 }
  0x37   : > { %759 = vrot.lane.b32.xlu1 %v3970_v2, %s3793_s23  ;;  %751 = vrot.lane.b32.xlu0 %v3973_v3, %s3793_s23 }
  0x38   : > { %799 = vrot.lane.b32.xlu2 %v3973_v3, %s3794_s26 }
  0x3f   : > { %807 = vrot.lane.b32.xlu1 %v3970_v2, %s3794_s26  ;;  %805 = vrot.lane.b32.xlu0 %v3958_v0, %s3794_s26 }
  0x40   : > { %597 = vrot.lane.b32.xlu2 %v3961_v1, %s3795_s28 }
  0x47   : > { %605 = vrot.lane.b32.xlu1 %v3958_v0, %s3795_s28  ;;  %599 = vrot.lane.b32.xlu0 %v3973_v3, %s3795_s28 }
  0x48   : > { %607 = vrot.lane.b32.xlu2 %v3970_v2, %s3795_s28 }
  0x4f   : > { %747 = vrot.lane.b32.xlu1 %v3994_v4, %s3793_s23  ;;  %745 = vrot.lane.b32.xlu0 %v3997_v5, %s3793_s23 }
  0x50   : > { %753 = vrot.lane.b32.xlu2 %v4004_v6, %s3793_s23 }
  0x57   : > { %793 = vrot.lane.b32.xlu1 %v3997_v5, %s3794_s26  ;;  %755 = vrot.lane.b32.xlu0 %v4009_v7, %s3793_s23 }
  0x58   : > { %795 = vrot.lane.b32.xlu2 %v3994_v4, %s3794_s26 }
  0x5f   : > { %803 = vrot.lane.b32.xlu1 %v4009_v7, %s3794_s26  ;;  %801 = vrot.lane.b32.xlu0 %v4004_v6, %s3794_s26 }
  0x60   : > { %593 = vrot.lane.b32.xlu2 %v3997_v5, %s3795_s28 }
  0x67   : > { %601 = vrot.lane.b32.xlu1 %v4004_v6, %s3795_s28  ;;  %595 = vrot.lane.b32.xlu0 %v3994_v4, %s3795_s28 }
  0x68   : > { %603 = vrot.lane.b32.xlu2 %v4009_v7, %s3795_s28 }
  0x6f   : > { %703 = vrot.lane.b32.xlu1 %v3973_v3, %s3796_s29  ;;  %701 = vrot.lane.b32.xlu0 %v3961_v1, %s3796_s29 }
  0x70   : > { %709 = vrot.lane.b32.xlu2 %v3958_v0, %s3796_s29 }
  0x77   : > { %549 = vrot.lane.b32.xlu1 %v3961_v1, %s3797_s13  ;;  %711 = vrot.lane.b32.xlu0 %v3970_v2, %s3796_s29 }
  0x78   : > { %551 = vrot.lane.b32.xlu2 %v3973_v3, %s3797_s13 }
  0x7f   : > { %559 = vrot.lane.b32.xlu1 %v3970_v2, %s3797_s13  ;;  %557 = vrot.lane.b32.xlu0 %v3958_v0, %s3797_s13 }
  0x80   : > { %697 = vrot.lane.b32.xlu2 %v3997_v5, %s3796_s29 }
  0x87   : > { %705 = vrot.lane.b32.xlu1 %v4004_v6, %s3796_s29  ;;  %699 = vrot.lane.b32.xlu0 %v3994_v4, %s3796_s29 }
  0x88   : > { %707 = vrot.lane.b32.xlu2 %v4009_v7, %s3796_s29 }
  0x8a   : > { %v798_v8 = vpop.permute.xlu2 %797 }
  0x8f   : > { %547 = vrot.lane.b32.xlu1 %v3994_v4, %s3797_s13  ;;  %545 = vrot.lane.b32.xlu0 %v3997_v5, %s3797_s13 }
  0x90   : > { %553 = vrot.lane.b32.xlu2 %v4004_v6, %s3797_s13 }
  0x92   : > { %v800_v9 = vpop.permute.xlu2 %799 }
  0x97   : > { %653 = vrot.lane.b32.xlu1 %v3961_v1, %s3798_s15  ;;  %555 = vrot.lane.b32.xlu0 %v4009_v7, %s3797_s13 }
  0x98   : > { %655 = vrot.lane.b32.xlu2 %v3973_v3, %s3798_s15 }
  0x9a   : > { %v4065_v11 = vpop.permute.xlu2 %597 }
  0x9f   : > { %663 = vrot.lane.b32.xlu1 %v3970_v2, %s3798_s15  ;;  %661 = vrot.lane.b32.xlu0 %v3958_v0, %s3798_s15 }
  0xa0   : > { %501 = vrot.lane.b32.xlu2 %v3961_v1, %s3799_s16 }
  0xa1   : > { %v758_v16 = vpop.permute.xlu1 %757  ;;  %v750_v17 = vpop.permute.xlu0 %749 }
  0xa2   : > { %v764_v18 = vsel %vm761_vm0, %v750_v17, %v758_v16  ;;  %v768_v19 = vsel %vm761_vm0, %v758_v16, %v750_v17  ;;  %v608_v20 = vpop.permute.xlu2 %607 }
  0xa3   : > { %v781_v21 = vmul.f32 %v4074_v14, %v764_v18  ;;  %v782_v22 = vmul.f32 %v4076_v15, %v768_v19 }
  0xa5   : > { %v787_v23 = vpack.c.bf16 %v782_v22, %v781_v21 }
  0xa7   : > { %791 = vst [vmem:[#allocation2 + $0xf0] sm:$0xff] %v787_v23  ;;  %509 = vrot.lane.b32.xlu1 %v3958_v0, %s3799_s16  ;;  %503 = vrot.lane.b32.xlu0 %v3973_v3, %s3799_s16 }
  0xa8   : > { %511 = vrot.lane.b32.xlu2 %v3970_v2, %s3799_s16 }
  0xa9   : > { %v760_v24 = vpop.permute.xlu1 %759  ;;  %v752_v25 = vpop.permute.xlu0 %751 }
  0xaa   : > { %v765_v26 = vsel %vm761_vm0, %v752_v25, %v760_v24  ;;  %v769_v27 = vsel %vm761_vm0, %v760_v24, %v752_v25  ;;  %v4096_v28 = vpop.permute.xlu2 %753 }
  0xab   : > { %v783_v29 = vmul.f32 %v4074_v14, %v765_v26  ;;  %v784_v30 = vmul.f32 %v4076_v15, %v769_v27 }
  0xad   : > { %v788_v32 = vpack.c.bf16 %v784_v30, %v783_v29 }
  0xae   : > { %v3113_v49 = vld [vmem:[#allocation2 + $0xf0] sm:$0xf] }
  0xaf   : > { %792 = vst [vmem:[#allocation2 + $0xf8] sm:$0xff] %v788_v32  ;;  %651 = vrot.lane.b32.xlu1 %v3994_v4, %s3798_s15  ;;  %649 = vrot.lane.b32.xlu0 %v3997_v5, %s3798_s15 }
  0xb0   : > { %657 = vrot.lane.b32.xlu2 %v4004_v6, %s3798_s15 }
  0xb1   : > { %v808_v35 = vpop.permute.xlu1 %807  ;;  %v806_v36 = vpop.permute.xlu0 %805 }
  0xb2   : > { %v813_v37 = vsel %vm809_vm1, %v800_v9, %v808_v35  ;;  %v817_v38 = vsel %vm809_vm1, %v808_v35, %v800_v9  ;;  %v812_v39 = vsel %vm809_vm1, %v798_v8, %v806_v36  ;;  %v816_v40 = vsel %vm809_vm1, %v806_v36, %v798_v8  ;;  %v4119_v41 = vpop.permute.xlu2 %795 }
  0xb3   : > { %v831_v42 = vmul.f32 %v4105_v33, %v813_v37  ;;  %v832_v43 = vmul.f32 %v4107_v34, %v817_v38  ;;  %v829_v44 = vmul.f32 %v4105_v33, %v812_v39  ;;  %v830_v45 = vmul.f32 %v4107_v34, %v816_v40 }
  0xb5   : > { %v836_v47 = vpack.c.bf16 %v832_v43, %v831_v42  ;;  %v835_v48 = vpack.c.bf16 %v830_v45, %v829_v44 }
  0xb6   : > { %v3378_v50 = vld [vmem:[#allocation2 + $0xf4] sm:$0xf0] }
  0xb7   : > { %840 = vst [vmem:[#allocation2 + $0x118] sm:$0xff] %v836_v47  ;;  %497 = vrot.lane.b32.xlu1 %v3997_v5, %s3799_s16  ;;  %659 = vrot.lane.b32.xlu0 %v4009_v7, %s3798_s15  ;;  %v3114_v53 = vor.u32 %v3378_v50, %v3113_v49 }
  0xb8   : > { %839 = vst [vmem:[#allocation2 + $0x110] sm:$0xff] %v835_v48  ;;  %499 = vrot.lane.b32.xlu2 %v3994_v4, %s3799_s16 }
  0xb9   : > { %v606_v54 = vpop.permute.xlu1 %605  ;;  %1145 = vmatpush.bf16.msra.mxu1 %v3114_v53  ;;  %v600_v55 = vpop.permute.xlu0 %599 }
  0xba   : > { %v612_v56 = vsel %vm609_vm2, %v4065_v11, %v606_v54  ;;  %v616_v57 = vsel %vm609_vm2, %v606_v54, %v4065_v11  ;;  %v613_v58 = vsel %vm609_vm2, %v600_v55, %v608_v20  ;;  %v617_v59 = vsel %vm609_vm2, %v608_v20, %v600_v55  ;;  %v4146_v60 = vpop.permute.xlu2 %593 }
  0xbb   : > { %v629_v61 = vmul.f32 %v4130_v51, %v616_v57  ;;  %v630_v62 = vmul.f32 %v4132_v52, %v612_v56  ;;  %v631_v63 = vmul.f32 %v4130_v51, %v617_v59  ;;  %v632_v8 = vmul.f32 %v4132_v52, %v613_v58 }
  0xbd   : > { %v635_v9 = vpack.c.bf16 %v630_v62, %v629_v61  ;;  %v636_v10 = vpack.c.bf16 %v632_v8, %v631_v63 }
  0xbe   : > { %v3382_v13 = vld [vmem:[#allocation2 + $0x114] sm:$0xf0] }
  0xbf   : > { %639 = vst [vmem:[#allocation2 + $0x70] sm:$0xff] %v635_v9  ;;  %507 = vrot.lane.b32.xlu1 %v4009_v7, %s3799_s16  ;;  %505 = vrot.lane.b32.xlu0 %v4004_v6, %s3799_s16  ;;  %v3129_v11 = vld [vmem:[#allocation2 + $0x110] sm:$0xf] }
  0xc0   : > { %640 = vst [vmem:[#allocation2 + $0x78] sm:$0xff] %v636_v10  ;;  %v3130_v16 = vor.u32 %v3382_v13, %v3129_v11  ;;  %452 = vrot.lane.b32.xlu2 %v3961_v1, %s3800_s25  ;;  %v723_v13 = vld [vmem:[#allocation8 + $0x6] ss:$8 sm:$0x3] }
  0xc1   : > { %v748_v17 = vpop.permute.xlu1 %747  ;;  %v746_v18 = vpop.permute.xlu0 %745 }
  0xc2   : > { %1170 = vmatpush.bf16.msra.mxu2 %v3130_v16  ;;  %v762_v19 = vsel %vm761_vm0, %v746_v18, %v4096_v28  ;;  %v766_v20 = vsel %vm761_vm0, %v4096_v28, %v746_v18  ;;  %v604_v21 = vpop.permute.xlu2 %603 }
  0xc3   : > { %v777_v22 = vmul.f32 %v4074_v14, %v762_v19  ;;  %v778_v23 = vmul.f32 %v4076_v15, %v766_v20  ;;  %v4219_v19 = vperm.slane %v723_v13, 0  ;;  %v4221_v20 = vperm.slane %v723_v13, 1 }
  0xc5   : > { %v785_v24 = vpack.c.bf16 %v778_v23, %v777_v22  ;;  %v3377_v22 = vld [vmem:[#allocation2 + $0xf4] sm:$0xf] }
  0xc6   : > { %v3049_v25 = vld [vmem:[#allocation2 + $0x70] sm:$0xf]  ;;  %v3361_v26 = vld [vmem:[#allocation2 + $0x74] sm:$0xf] }
  0xc7   : > { %789 = vst [vmem:[#allocation2 + $0xe0] sm:$0xff] %v785_v24  ;;  %460 = vrot.lane.b32.xlu1 %v3958_v0, %s3800_s25  ;;  %454 = vrot.lane.b32.xlu0 %v3973_v3, %s3800_s25  ;;  %v3362_v27 = vld [vmem:[#allocation2 + $0x74] sm:$0xf0]  ;;  %v3051_v29 = vld [vmem:[#allocation2 + $0x78] sm:$0xf0] }
  0xc8   : > { %v3050_v30 = vor.u32 %v3362_v27, %v3049_v25  ;;  %v3054_v31 = vor.u32 %v3361_v26, %v3051_v29  ;;  %462 = vrot.lane.b32.xlu2 %v3970_v2, %s3800_s25 }
  0xc9   : > { %v794_v28 = vpop.permute.xlu1 %793  ;;  %v756_v32 = vpop.permute.xlu0 %755 }
  0xca   : > { %1126 = vmatpush.bf16.msra.mxu0 %v3050_v30  ;;  %1183 = vmatpush.bf16.msra.mxu3 %v3054_v31  ;;  %v763_v35 = vsel %vm761_vm0, %v748_v17, %v756_v32  ;;  %v767_v36 = vsel %vm761_vm0, %v756_v32, %v748_v17  ;;  %v710_v37 = vpop.permute.xlu2 %709  ;;  %v3115_v17 = vld [vmem:[#allocation2 + $0xf8] sm:$0xf0] }
  0xcb   : > { %v779_v38 = vmul.f32 %v4074_v14, %v763_v35  ;;  %v780_v39 = vmul.f32 %v4076_v15, %v767_v36  ;;  %v3118_v24 = vor.u32 %v3377_v22, %v3115_v17 }
  0xcd   : > { %v786_v40 = vpack.c.bf16 %v780_v39, %v779_v38 }
  0xce   : > { %v3105_v55 = vld [vmem:[#allocation2 + $0xe0] sm:$0xf]  ;;  %v3375_v30 = vld [vmem:[#allocation2 + $0xe4] sm:$0xf] }
  0xcf   : > { %790 = vst [vmem:[#allocation2 + $0xe8] sm:$0xff] %v786_v40  ;;  %448 = vrot.lane.b32.xlu0 %v3997_v5, %s3800_s25  ;;  %450 = vrot.lane.b32.xlu1 %v3994_v4, %s3800_s25 }
  0xd0   : > { %456 = vrot.lane.b32.xlu2 %v4004_v6, %s3800_s25 }
  0xd1   : > { %v804_v42 = vpop.permute.xlu1 %803  ;;  %v802_v43 = vpop.permute.xlu0 %801 }
  0xd2   : > { %v811_v44 = vsel %vm809_vm1, %v4119_v41, %v804_v42  ;;  %v815_v14 = vsel %vm809_vm1, %v804_v42, %v4119_v41  ;;  %v810_v15 = vsel %vm809_vm1, %v794_v28, %v802_v43  ;;  %v814_v45 = vsel %vm809_vm1, %v802_v43, %v794_v28  ;;  %v4194_v46 = vpop.permute.xlu2 %551 }
  0xd3   : > { %v827_v47 = vmul.f32 %v4105_v33, %v811_v44  ;;  %v828_v48 = vmul.f32 %v4107_v34, %v815_v14  ;;  %v825_v49 = vmul.f32 %v4105_v33, %v810_v15  ;;  %v826_v50 = vmul.f32 %v4107_v34, %v814_v45 }
  0xd5   : > { %v834_v53 = vpack.c.bf16 %v828_v48, %v827_v47  ;;  %v833_v54 = vpack.c.bf16 %v826_v50, %v825_v49  ;;  %v571_v47 = vld [vmem:[#allocation8 + $0x2] ss:$8 sm:$0x3] }
  0xd6   : > { %v3376_v41 = vld [vmem:[#allocation2 + $0xe4] sm:$0xf0]  ;;  %v3107_v26 = vld [vmem:[#allocation2 + $0xe8] sm:$0xf0]  ;;  %v4236_v50 = vperm.slane %v571_v47, 0 }
  0xd7   : > { %838 = vst [vmem:[#allocation2 + $0x108] sm:$0xff] %v834_v53  ;;  %458 = vrot.lane.b32.xlu0 %v4009_v7, %s3800_s25  ;;  %v3106_v56 = vor.u32 %v3376_v41, %v3105_v55  ;;  %v3110_v32 = vor.u32 %v3375_v30, %v3107_v26  ;;  %v4238_v53 = vperm.slane %v571_v47, 1 }
  0xd8   : > { %837 = vst [vmem:[#allocation2 + $0x100] sm:$0xff] %v833_v54 }
  0xd9   : > { %v602_v57 = vpop.permute.xlu1 %601  ;;  %1146 = vmatpush.bf16.msra.mxu1 %v3106_v56  ;;  %v596_v58 = vpop.permute.xlu0 %595 }
  0xda   : > { %v610_v59 = vsel %vm609_vm2, %v4146_v60, %v602_v57  ;;  %v614_v33 = vsel %vm609_vm2, %v602_v57, %v4146_v60  ;;  %v611_v34 = vsel %vm609_vm2, %v596_v58, %v604_v21  ;;  %v615_v61 = vsel %vm609_vm2, %v604_v21, %v596_v58  ;;  %v4212_v62 = vpop.permute.xlu2 %697 }
  0xdb   : > { %v625_v63 = vmul.f32 %v4130_v51, %v614_v33  ;;  %v626_v8 = vmul.f32 %v4132_v52, %v610_v59  ;;  %v627_v9 = vmul.f32 %v4130_v51, %v615_v61  ;;  %v628_v10 = vmul.f32 %v4132_v52, %v611_v34 }
  0xdd   : > { %v633_v11 = vpack.c.bf16 %v626_v8, %v625_v63  ;;  %v634_v16 = vpack.c.bf16 %v628_v10, %v627_v9 }
  0xde   : > { %v3380_v60 = vld [vmem:[#allocation2 + $0x104] sm:$0xf0] }
  0xdf   : > { %637 = vst [vmem:[#allocation2 + $0x60] sm:$0xff] %v633_v11  ;;  %v3121_v18 = vld [vmem:[#allocation2 + $0x100] sm:$0xf] }
  0xe0   : > { %638 = vst [vmem:[#allocation2 + $0x68] sm:$0xff] %v634_v16  ;;  %v3122_v21 = vor.u32 %v3380_v60, %v3121_v18 }
  0xe1   : > { %v704_v23 = vpop.permute.xlu1 %703  ;;  %v702_v51 = vpop.permute.xlu0 %701 }
  0xe2   : > { %1171 = vmatpush.bf16.msra.mxu2 %v3122_v21  ;;  %v716_v52 = vsel %vm713_vm3, %v702_v51, %v710_v37  ;;  %v720_v25 = vsel %vm713_vm3, %v710_v37, %v702_v51  ;;  %v708_v31 = vpop.permute.xlu2 %707 }
  0xe3   : > { %v733_v27 = vmul.f32 %v4219_v19, %v716_v52  ;;  %v734_v29 = vmul.f32 %v4221_v20, %v720_v25 }
  0xe5   : > { %v739_v28 = vpack.c.bf16 %v734_v29, %v733_v27 }
  0xe6   : > { %1202 = vmatpush.bf16.msrb.mxu2 %v3118_v24  ;;  %v3041_v35 = vld [vmem:[#allocation2 + $0x60] sm:$0xf]  ;;  %v3359_v36 = vld [vmem:[#allocation2 + $0x64] sm:$0xf] }
  0xe7   : > { %743 = vst [vmem:[#allocation2 + $0xd0] sm:$0xff] %v739_v28  ;;  %v3360_v38 = vld [vmem:[#allocation2 + $0x64] sm:$0xf0]  ;;  %v3043_v39 = vld [vmem:[#allocation2 + $0x68] sm:$0xf0] }
  0xe8   : > { %v3042_v40 = vor.u32 %v3360_v38, %v3041_v35  ;;  %v3046_v42 = vor.u32 %v3359_v36, %v3043_v39 }
  0xe9   : > { %v550_v43 = vpop.permute.xlu1 %549  ;;  %v712_v37 = vpop.permute.xlu0 %711 }
  0xea   : > { %1203 = vmatpush.bf16.msrb.mxu2 %v3110_v32  ;;  %1127 = vmatpush.bf16.msra.mxu0 %v3042_v40  ;;  %v717_v44 = vsel %vm713_vm3, %v704_v23, %v712_v37  ;;  %v721_v14 = vsel %vm713_vm3, %v712_v37, %v704_v23  ;;  %v554_v49 = vpop.permute.xlu2 %553 }
  0xeb   : > { %1184 = vmatpush.bf16.msra.mxu3 %v3046_v42  ;;  %v735_v15 = vmul.f32 %v4219_v19, %v717_v44  ;;  %v736_v45 = vmul.f32 %v4221_v20, %v721_v14 }
  0xed   : > { %v740_v48 = vpack.c.bf16 %v736_v45, %v735_v15 }
  0xee   : > { %v3097_v9 = vld [vmem:[#allocation2 + $0xd0] sm:$0xf]  ;;  %v3373_v13 = vld [vmem:[#allocation2 + $0xd4] sm:$0xf] }
  0xef   : > { %744 = vst [vmem:[#allocation2 + $0xd8] sm:$0xff] %v740_v48 }
  0xf1   : > { %v560_v54 = vpop.permute.xlu1 %559  ;;  %v558_v55 = vpop.permute.xlu0 %557 }
  0xf2   : > { %v565_v41 = vsel %vm561_vm4, %v4194_v46, %v560_v54  ;;  %v569_v56 = vsel %vm561_vm4, %v560_v54, %v4194_v46  ;;  %v564_v57 = vsel %vm561_vm4, %v550_v43, %v558_v55  ;;  %v568_v58 = vsel %vm561_vm4, %v558_v55, %v550_v43  ;;  %v656_v60 = vpop.permute.xlu2 %655 }
  0xf3   : > { %v583_v59 = vmul.f32 %v4236_v50, %v569_v56  ;;  %v584_v33 = vmul.f32 %v4238_v53, %v565_v41  ;;  %v581_v34 = vmul.f32 %v4236_v50, %v568_v58  ;;  %v582_v61 = vmul.f32 %v4238_v53, %v564_v57  ;;  %v675_v57 = vld [vmem:[#allocation8 + $0x5] ss:$8 sm:$0x3] }
  0xf5   : > { %v588_v63 = vpack.c.bf16 %v584_v33, %v583_v59  ;;  %v587_v8 = vpack.c.bf16 %v582_v61, %v581_v34  ;;  %v4283_v33 = vperm.slane %v675_v57, 0  ;;  %v4285_v34 = vperm.slane %v675_v57, 1 }
  0xf6   : > { %v3374_v10 = vld [vmem:[#allocation2 + $0xd4] sm:$0xf0]  ;;  %v3099_v46 = vld [vmem:[#allocation2 + $0xd8] sm:$0xf0] }
  0xf7   : > { %592 = vst [vmem:[#allocation2 + $0x58] sm:$0xff] %v588_v63  ;;  %v3098_v11 = vor.u32 %v3374_v10, %v3097_v9  ;;  %v3102_v16 = vor.u32 %v3373_v13, %v3099_v46 }
  0xf8   : > { %591 = vst [vmem:[#allocation2 + $0x50] sm:$0xff] %v587_v8  ;;  %v523_v8 = vld [vmem:[#allocation8 + $0x1] ss:$8 sm:$0x3] }
  0xf9   : > { %v706_v17 = vpop.permute.xlu1 %705  ;;  %1147 = vmatpush.bf16.msra.mxu1 %v3098_v11  ;;  %1204 = vmatpush.bf16.msrb.mxu2 %v3102_v16  ;;  %v700_v18 = vpop.permute.xlu0 %699 }
  0xfa   : > { %v714_v21 = vsel %vm713_vm3, %v4212_v62, %v706_v17  ;;  %v718_v22 = vsel %vm713_vm3, %v706_v17, %v4212_v62  ;;  %v715_v23 = vsel %vm713_vm3, %v700_v18, %v708_v31  ;;  %v719_v51 = vsel %vm713_vm3, %v708_v31, %v700_v18  ;;  %v3343_v18 = vld [vmem:[%s5250_s1 + $0x10] sm:$0xf0] }
  0xfb   : > { %v729_v24 = vmul.f32 %v4219_v19, %v714_v21  ;;  %v730_v52 = vmul.f32 %v4221_v20, %v718_v22  ;;  %v731_v25 = vmul.f32 %v4219_v19, %v715_v23  ;;  %v732_v26 = vmul.f32 %v4221_v20, %v719_v51  ;;  %v4272_v20 = vpop.permute.xlu2 %501 }
  0xfc   : > { %v4300_v17 = vperm.slane %v523_v8, 0  ;;  %v643_v21 = vpack.c.bf16 %v3958_v0, %v3961_v1 }
  0xfd   : > { %v737_v27 = vpack.c.bf16 %v730_v52, %v729_v24  ;;  %v738_v29 = vpack.c.bf16 %v732_v26, %v731_v25  ;;  %v644_v25 = vpack.c.bf16 %v3970_v2, %v3973_v3 }
  0xfe   : > { %v3358_v30 = vld [vmem:[#allocation2 + $0x54] sm:$0xf0]  ;;  %v3035_v28 = vld [vmem:[#allocation2 + $0x58] sm:$0xf0]  ;;  %647 = vst [vmem:[#allocation2 + $0x90] sm:$0xff] %v643_v21 }
  0xff   : > { %741 = vst [vmem:[#allocation2 + $0xc0] sm:$0xff] %v737_v27  ;;  %v3033_v62 = vld [vmem:[#allocation2 + $0x50] sm:$0xf]  ;;  %v3357_v32 = vld [vmem:[#allocation2 + $0x54] sm:$0xf] }
 0x100   : > { %742 = vst [vmem:[#allocation2 + $0xc8] sm:$0xff] %v738_v29  ;;  %v3034_v35 = vor.u32 %v3358_v30, %v3033_v62  ;;  %v3038_v36 = vor.u32 %v3357_v32, %v3035_v28  ;;  %v641_v30 = vpack.c.bf16 %v4004_v6, %v3997_v5  ;;  %v4316_v28 = vperm.slane %v523_v8, 1 }
 0x101   : > { %v548_v38 = vpop.permute.xlu1 %547  ;;  %v546_v31 = vpop.permute.xlu0 %545  ;;  %v642_v62 = vpack.c.bf16 %v4009_v7, %v3994_v4  ;;  %648 = vst [vmem:[#allocation2 + $0x98] sm:$0xff] %v644_v25 }
 0x102   : > { %1128 = vmatpush.bf16.msra.mxu0 %v3034_v35  ;;  %1185 = vmatpush.bf16.msra.mxu3 %v3038_v36  ;;  %v562_v39 = vsel %vm561_vm4, %v546_v31, %v554_v49  ;;  %v566_v19 = vsel %vm561_vm4, %v554_v49, %v546_v31  ;;  %645 = vst [vmem:[#allocation2 + $0x80] sm:$0xff] %v641_v30 }
 0x103   : > { %v577_v40 = vmul.f32 %v4236_v50, %v566_v19  ;;  %v578_v42 = vmul.f32 %v4238_v53, %v562_v39  ;;  %v512_v58 = vpop.permute.xlu2 %511  ;;  %646 = vst [vmem:[#allocation2 + $0x88] sm:$0xff] %v642_v62 }
 0x105   : > { %v585_v43 = vpack.c.bf16 %v578_v42, %v577_v40 }
 0x106   : > { %v3089_v37 = vld [vmem:[#allocation2 + $0xc0] sm:$0xf]  ;;  %v3371_v44 = vld [vmem:[#allocation2 + $0xc4] sm:$0xf] }
 0x107   : > { %589 = vst [vmem:[#allocation2 + $0x40] sm:$0xff] %v585_v43  ;;  %v3372_v14 = vld [vmem:[#allocation2 + $0xc4] sm:$0xf0]  ;;  %v3091_v15 = vld [vmem:[#allocation2 + $0xc8] sm:$0xf0] }
 0x108   : > { %v3090_v45 = vor.u32 %v3372_v14, %v3089_v37  ;;  %v3094_v47 = vor.u32 %v3371_v44, %v3091_v15 }
 0x109   : > { %v654_v48 = vpop.permute.xlu1 %653  ;;  %v556_v54 = vpop.permute.xlu0 %555 }
 0x10a   : > { %1148 = vmatpush.bf16.msra.mxu1 %v3090_v45  ;;  %1205 = vmatpush.bf16.msrb.mxu2 %v3094_v47  ;;  %v563_v49 = vsel %vm561_vm4, %v548_v38, %v556_v54  ;;  %v567_v55 = vsel %vm561_vm4, %v556_v54, %v548_v38 }
 0x10b   : > { %v579_v41 = vmul.f32 %v4236_v50, %v567_v55  ;;  %v580_v56 = vmul.f32 %v4238_v53, %v563_v49  ;;  %v658_v29 = vpop.permute.xlu2 %657  ;;  %v2989_v49 = vld [vmem:[%s5250_s1 + $0x20] sm:$0xf]  ;;  %v3346_v55 = vld [vmem:[%s5250_s1 + $0x28] sm:$0xf0] }
 0x10d   : > { %v586_v59 = vpack.c.bf16 %v580_v56, %v579_v41  ;;  %v4348_v56 = vor.u32 %v3346_v55, %v2989_v49 }
 0x10e   : > { %v3025_v51 = vld [vmem:[#allocation2 + $0x40] sm:$0xf]  ;;  %v3355_v24 = vld [vmem:[#allocation2 + $0x44] sm:$0xf] }
 0x10f   : > { %590 = vst [vmem:[#allocation2 + $0x48] sm:$0xff] %v586_v59 }
 0x111   : > { %v664_v61 = vpop.permute.xlu1 %663  ;;  %v662_v63 = vpop.permute.xlu0 %661 }
 0x112   : > { %v669_v9 = vsel %vm665_vm5, %v656_v60, %v664_v61  ;;  %v673_v50 = vsel %vm665_vm5, %v664_v61, %v656_v60  ;;  %v668_v53 = vsel %vm665_vm5, %v654_v48, %v662_v63  ;;  %v672_v10 = vsel %vm665_vm5, %v662_v63, %v654_v48  ;;  %v2977_v60 = vld [vmem:[%s5250_s1 + $0x8] sm:$0xf] }
 0x113   : > { %v687_v13 = vmul.f32 %v4283_v33, %v669_v9  ;;  %v688_v46 = vmul.f32 %v4285_v34, %v673_v50  ;;  %v685_v11 = vmul.f32 %v4283_v33, %v668_v53  ;;  %v686_v16 = vmul.f32 %v4285_v34, %v672_v10  ;;  %v500_v44 = vpop.permute.xlu2 %499 }
 0x114   : > { %v4310_v52 = vor.u32 %v3343_v18, %v2977_v60 }
 0x115   : > { %v692_v22 = vpack.c.bf16 %v688_v46, %v687_v13  ;;  %v691_v23 = vpack.c.bf16 %v686_v16, %v685_v11 }
 0x116   : > { %v3356_v26 = vld [vmem:[#allocation2 + $0x44] sm:$0xf0]  ;;  %v3027_v27 = vld [vmem:[#allocation2 + $0x48] sm:$0xf0]  ;;  %3135 = vmatmul.msk.bf16.vlgmr.msra.gmra.mxu2 %vm5268_vm7, %v4310_v52 }
 0x117   : > { %696 = vst [vmem:[#allocation2 + $0xb8] sm:$0xff] %v692_v22  ;;  %v3026_v0 = vor.u32 %v3356_v26, %v3025_v51  ;;  %v3030_v1 = vor.u32 %v3355_v24, %v3027_v27  ;;  %v475_v26 = vld [vmem:[#allocation8] ss:$8 sm:$0x3] }
 0x118   : > { %695 = vst [vmem:[#allocation2 + $0xb0] sm:$0xff] %v691_v23  ;;  %v3065_v27 = vld [vmem:[#allocation2 + $0x90] sm:$0xf] }
 0x119   : > { %v510_v2 = vpop.permute.xlu1 %509  ;;  %1129 = vmatpush.bf16.msra.mxu0 %v3026_v0  ;;  %1186 = vmatpush.bf16.msra.mxu3 %v3030_v1  ;;  %v504_v3 = vpop.permute.xlu0 %503 }
 0x11a   : > { %v516_v5 = vsel %vm513_vm6, %v4272_v20, %v510_v2  ;;  %v520_v6 = vsel %vm513_vm6, %v510_v2, %v4272_v20  ;;  %v517_v32 = vsel %vm513_vm6, %v504_v3, %v512_v58  ;;  %v521_v4 = vsel %vm513_vm6, %v512_v58, %v504_v3  ;;  %v3365_v2 = vld [vmem:[#allocation2 + $0x94] sm:$0xf]  ;;  %v3067_v3 = vld [vmem:[#allocation2 + $0x98] sm:$0xf0] }
 0x11b   : > { %v533_v7 = vmul.f32 %v4300_v17, %v520_v6  ;;  %v534_v35 = vmul.f32 %v4316_v28, %v516_v5  ;;  %v535_v36 = vmul.f32 %v4300_v17, %v521_v4  ;;  %v536_v38 = vmul.f32 %v4316_v28, %v517_v32  ;;  %v453_v11 = vpop.permute.xlu2 %452 }
 0x11c   : > { %v4371_v4 = vperm.slane %v475_v26, 0 }
 0x11d   : > { %v539_v31 = vpack.c.bf16 %v534_v35, %v533_v7  ;;  %v540_v39 = vpack.c.bf16 %v536_v38, %v535_v36 }
 0x11e   : > { %v3370_v19 = vld [vmem:[#allocation2 + $0xb4] sm:$0xf0]  ;;  %v3083_v20 = vld [vmem:[#allocation2 + $0xb8] sm:$0xf0] }
 0x11f   : > { %543 = vst [vmem:[#allocation2 + $0x30] sm:$0xff] %v539_v31  ;;  %v3081_v40 = vld [vmem:[#allocation2 + $0xb0] sm:$0xf]  ;;  %v3369_v42 = vld [vmem:[#allocation2 + $0xb4] sm:$0xf] }
 0x120   : > { %544 = vst [vmem:[#allocation2 + $0x38] sm:$0xff] %v540_v39  ;;  %v3082_v43 = vor.u32 %v3370_v19, %v3081_v40  ;;  %v3086_v37 = vor.u32 %v3369_v42, %v3083_v20  ;;  %v3057_v31 = vld [vmem:[#allocation2 + $0x80] sm:$0xf]  ;;  %v3364_v39 = vld [vmem:[#allocation2 + $0x84] sm:$0xf0]  ;;  %v3070_v19 = vor.u32 %v3365_v2, %v3067_v3 }
 0x121   : > { %v652_v14 = vpop.permute.xlu1 %651  ;;  %v650_v15 = vpop.permute.xlu0 %649 }
 0x122   : > { %1149 = vmatpush.bf16.msra.mxu1 %v3082_v43  ;;  %1206 = vmatpush.bf16.msrb.mxu2 %v3086_v37  ;;  %v666_v45 = vsel %vm665_vm5, %v650_v15, %v658_v29  ;;  %v670_v47 = vsel %vm665_vm5, %v658_v29, %v650_v15  ;;  %v3366_v29 = vld [vmem:[#allocation2 + $0x94] sm:$0xf0]  ;;  %v3363_v37 = vld [vmem:[#allocation2 + $0x84] sm:$0xf] }
 0x123   : > { %v681_v48 = vmul.f32 %v4283_v33, %v666_v45  ;;  %v682_v54 = vmul.f32 %v4285_v34, %v670_v47  ;;  %v463_v1 = vpop.permute.xlu2 %462  ;;  %v3066_v38 = vor.u32 %v3366_v29, %v3065_v27 }
 0x125   : > { %v689_v41 = vpack.c.bf16 %v682_v54, %v681_v48  ;;  %v3058_v48 = vor.u32 %v3364_v39, %v3057_v31  ;;  %v3131_v54 = vld [vmem:[#allocation2 + $0x118] sm:$0xf0]  ;;  %v3342_v31 = vld [vmem:[%s5250_s1 + $0x8] sm:$0xf0] }
 0x126   : > { %v3017_v57 = vld [vmem:[#allocation2 + $0x30] sm:$0xf]  ;;  %v3353_v58 = vld [vmem:[#allocation2 + $0x34] sm:$0xf]  ;;  %3136 = vmatmul.msk.bf16.gmra.mxu2 %vm5268_vm7, %v4348_v56 }
 0x127   : > { %693 = vst [vmem:[#allocation2 + $0xa0] sm:$0xff] %v689_v41  ;;  %v3354_v59 = vld [vmem:[#allocation2 + $0x34] sm:$0xf0]  ;;  %v3019_v61 = vld [vmem:[#allocation2 + $0x38] sm:$0xf0] }
 0x128   : > { %v3018_v63 = vor.u32 %v3354_v59, %v3017_v57  ;;  %v3022_v8 = vor.u32 %v3353_v58, %v3019_v61  ;;  %v3381_v41 = vld [vmem:[#allocation2 + $0x114] sm:$0xf]  ;;  %v3341_v57 = vld [vmem:[%s5250_s1 + $0x4] sm:$0xf]  ;;  %v2971_v58 = vld [vmem:[%s5250_s1 + $0xc] sm:$0xf0] }
 0x129   : > { %v498_v9 = vpop.permute.xlu1 %497  ;;  %v660_v50 = vpop.permute.xlu0 %659 }
 0x12a   : > { %1130 = vmatpush.bf16.msra.mxu0 %v3018_v63  ;;  %1187 = vmatpush.bf16.msra.mxu3 %v3022_v8  ;;  %v667_v53 = vsel %vm665_vm5, %v652_v14, %v660_v50  ;;  %v671_v10 = vsel %vm665_vm5, %v660_v50, %v652_v14  ;;  %v3801_v8 = vmov 0  }
 0x12b   : > { %v683_v13 = vmul.f32 %v4283_v33, %v667_v53  ;;  %v684_v46 = vmul.f32 %v4285_v34, %v671_v10  ;;  %3515 = vset.pattern.permute.xlu1 %v3801_v8  ;;  %3517 = vset.pattern.permute.xlu0 %v3801_v8  ;;  %v457_v50 = vpop.permute.xlu2 %456 }
 0x12c   : > { %3516 = vset.pattern.permute.xlu2 %v3801_v8 }
 0x12d   : > { %v690_v16 = vpack.c.bf16 %v684_v46, %v683_v13 }
 0x12e   : > { %v3073_v62 = vld [vmem:[#allocation2 + $0xa0] sm:$0xf]  ;;  %v3367_v6 = vld [vmem:[#allocation2 + $0xa4] sm:$0xf] }
 0x12f   : > { %694 = vst [vmem:[#allocation2 + $0xa8] sm:$0xff] %v690_v16 }
 0x131   : > { %v508_v60 = vpop.permute.xlu1 %507  ;;  %v506_v18 = vpop.permute.xlu0 %505 }
 0x132   : > { %v515_v21 = vsel %vm513_vm6, %v500_v44, %v508_v60  ;;  %v519_v22 = vsel %vm513_vm6, %v508_v60, %v500_v44  ;;  %v514_v23 = vsel %vm513_vm6, %v498_v9, %v506_v18  ;;  %v518_v51 = vsel %vm513_vm6, %v506_v18, %v498_v9  ;;  %v3059_v44 = vld [vmem:[#allocation2 + $0x88] sm:$0xf0]  ;;  %v888_v9 = vld [vmem:[%s5251_s2 + $0x18] sm:$0xff] }
 0x133   : > { %v531_v33 = vmul.f32 %v4300_v17, %v519_v22  ;;  %v532_v34 = vmul.f32 %v4316_v28, %v515_v21  ;;  %v529_v24 = vmul.f32 %v4300_v17, %v518_v51  ;;  %v530_v25 = vmul.f32 %v4316_v28, %v514_v23  ;;  %906 = vperm.xlu1 %3515, %v888_v9   ;;  %v3379_v22 = vld [vmem:[#allocation2 + $0x104] sm:$0xf]  ;;  %v3123_v23 = vld [vmem:[#allocation2 + $0x108] sm:$0xf0] }
 0x134   : > { %v4373_v17 = vperm.slane %v475_v26, 1  ;;  %v3062_v59 = vor.u32 %v3363_v37, %v3059_v44  ;;  %v3134_v60 = vor.u32 %v3381_v41, %v3131_v54  ;;  %v887_v37 = vld [vmem:[%s5251_s2 + $0x10] sm:$0xff]  ;;  %v2981_v44 = vld [vmem:[%s5250_s1 + $0x18] sm:$0xf] }
 0x135   : > { %v538_v30 = vpack.c.bf16 %v532_v34, %v531_v33  ;;  %v537_v0 = vpack.c.bf16 %v530_v25, %v529_v24  ;;  %v885_v34 = vld [vmem:[%s5251_s2] sm:$0xff]  ;;  %v3126_v25 = vor.u32 %v3379_v22, %v3123_v23  ;;  %901 = vperm.xlu2 %3516, %v887_v37  }
 0x136   : > { %v3368_v5 = vld [vmem:[#allocation2 + $0xa4] sm:$0xf0]  ;;  %v3075_v32 = vld [vmem:[#allocation2 + $0xa8] sm:$0xf0] }
 0x137   : > { %542 = vst [vmem:[#allocation2 + $0x28] sm:$0xff] %v538_v30  ;;  %v3074_v28 = vor.u32 %v3368_v5, %v3073_v62  ;;  %v3078_v7 = vor.u32 %v3367_v6, %v3075_v32 }
 0x138   : > { %541 = vst [vmem:[#allocation2 + $0x20] sm:$0xff] %v537_v0 }
 0x139   : > { %v461_v35 = vpop.permute.xlu1 %460  ;;  %1150 = vmatpush.bf16.msra.mxu1 %v3074_v28  ;;  %1207 = vmatpush.bf16.msrb.mxu2 %v3078_v7  ;;  %v455_v36 = vpop.permute.xlu0 %454  ;;  %v886_v28 = vld [vmem:[%s5251_s2 + $0x8] sm:$0xff] }
 0x13a   : > { %v469_v20 = vsel %vm466_vm8, %v453_v11, %v461_v35  ;;  %v473_v40 = vsel %vm466_vm8, %v461_v35, %v453_v11  ;;  %v470_v42 = vsel %vm466_vm8, %v455_v36, %v463_v1  ;;  %v474_v43 = vsel %vm466_vm8, %v463_v1, %v455_v36  ;;  %v3344_v35 = vld [vmem:[%s5250_s1 + $0x1c] sm:$0xf]  ;;  %v2983_v36 = vld [vmem:[%s5250_s1 + $0x24] sm:$0xf0]  ;;  %896 = vperm.xlu0 %3517, %v886_v28  }
 0x13b   : > { %v485_v14 = vmul.f32 %v4371_v4, %v473_v40  ;;  %v486_v15 = vmul.f32 %v4373_v17, %v469_v20  ;;  %v487_v45 = vmul.f32 %v4371_v4, %v474_v43  ;;  %v488_v47 = vmul.f32 %v4373_v17, %v470_v42  ;;  %891 = vperm.xlu1 %3515, %v885_v34  }
 0x13c   : > { %v2974_v11 = vor.u32 %v3341_v57, %v2971_v58 }
 0x13d   : > { %v491_v49 = vpack.c.bf16 %v486_v15, %v485_v14  ;;  %v492_v55 = vpack.c.bf16 %v488_v47, %v487_v45  ;;  %1151 = vmatpush.bf16.msra.mxu1 %v3066_v38  ;;  %1208 = vmatpush.bf16.msrb.mxu2 %v3070_v19  ;;  %v2986_v38 = vor.u32 %v3344_v35, %v2983_v36  ;;  %v3345_v14 = vld [vmem:[%s5250_s1 + $0x20] sm:$0xf0] }
 0x13e   : > { %v3352_v61 = vld [vmem:[#allocation2 + $0x24] sm:$0xf0]  ;;  %v3011_v63 = vld [vmem:[#allocation2 + $0x28] sm:$0xf0]  ;;  %v2982_v15 = vor.u32 %v3345_v14, %v2981_v44 }
 0x13f   : > { %495 = vst [vmem:[#allocation2 + $0x10] sm:$0xff] %v491_v49  ;;  %v3009_v53 = vld [vmem:[#allocation2 + $0x20] sm:$0xf]  ;;  %v3351_v10 = vld [vmem:[#allocation2 + $0x24] sm:$0xf] }
 0x140   : > { %496 = vst [vmem:[#allocation2 + $0x18] sm:$0xff] %v492_v55  ;;  %v3010_v13 = vor.u32 %v3352_v61, %v3009_v53  ;;  %v3014_v46 = vor.u32 %v3351_v10, %v3011_v63 }
 0x141   : > { %v449_v16 = vpop.permute.xlu0 %448  ;;  %1152 = vmatpush.bf16.msra.mxu1 %v3058_v48  ;;  %1209 = vmatpush.bf16.msrb.mxu2 %v3062_v59  ;;  %v451_v29 = vpop.permute.xlu1 %450 }
 0x142   : > { %1131 = vmatpush.bf16.msra.mxu0 %v3010_v13  ;;  %1188 = vmatpush.bf16.msra.mxu3 %v3014_v46  ;;  %v467_v18 = vsel %vm466_vm8, %v449_v16, %v457_v50  ;;  %v471_v21 = vsel %vm466_vm8, %v457_v50, %v449_v16 }
 0x143   : > { %v481_v51 = vmul.f32 %v4371_v4, %v471_v21  ;;  %v482_v33 = vmul.f32 %v4373_v17, %v467_v18 }
 0x144   : > { %1153 = vmatmul.bf16.vlgmr.msra.gmra.mxu1 %v2974_v11  ;;  %1210 = vmatmul.bf16.vlgmr.msrb.gmra.mxu2 %v2974_v11 }
 0x145   : > { %3426 = vmatpush.bf16.msrb.mxu1 %v3134_v60  ;;  %v489_v24 = vpack.c.bf16 %v482_v33, %v481_v51 }
 0x146   : > { %v3001_v26 = vld [vmem:[#allocation2 + $0x10] sm:$0xf]  ;;  %v3349_v27 = vld [vmem:[#allocation2 + $0x14] sm:$0xf] }
 0x147   : > { %493 = vst [vmem:[#allocation2] sm:$0xff] %v489_v24  ;;  %v3350_v30 = vld [vmem:[#allocation2 + $0x14] sm:$0xf0]  ;;  %v3003_v0 = vld [vmem:[#allocation2 + $0x18] sm:$0xf0] }
 0x148   : > { %v3002_v1 = vor.u32 %v3350_v30, %v3001_v26  ;;  %v3006_v62 = vor.u32 %v3349_v27, %v3003_v0 }
 0x149   : > { %3427 = vmatpush.bf16.msrb.mxu1 %v3126_v25  ;;  %v459_v2 = vpop.permute.xlu0 %458 }
 0x14a   : > { %1132 = vmatpush.bf16.msra.mxu0 %v3002_v1  ;;  %1189 = vmatpush.bf16.msra.mxu3 %v3006_v62  ;;  %v468_v3 = vsel %vm466_vm8, %v451_v29, %v459_v2  ;;  %v472_v5 = vsel %vm466_vm8, %v459_v2, %v451_v29 }
 0x14b   : > { %v483_v6 = vmul.f32 %v4371_v4, %v472_v5  ;;  %v484_v32 = vmul.f32 %v4373_v17, %v468_v3  ;;  %v2969_v17 = vld [vmem:[%s5250_s1] sm:$0xf] }
 0x14c   : > { %v2970_v43 = vor.u32 %v3342_v31, %v2969_v17 }
 0x14d   : > { %v490_v7 = vpack.c.bf16 %v484_v32, %v483_v6 }
 0x14e   : > { %v2993_v4 = vld [vmem:[#allocation2] sm:$0xf]  ;;  %v3347_v19 = vld [vmem:[#allocation2 + $0x4] sm:$0xf] }
 0x14f   : > { %494 = vst [vmem:[#allocation2 + $0x8] sm:$0xff] %v490_v7 }
 0x154   : > { %1158 = vmatmul.bf16.gmra.mxu1 %v2986_v38  ;;  %1215 = vmatmul.bf16.gmra.mxu2 %v2986_v38 }
 0x156   : > { %v3348_v39 = vld [vmem:[#allocation2 + $0x4] sm:$0xf0]  ;;  %v2995_v20 = vld [vmem:[#allocation2 + $0x8] sm:$0xf0] }
 0x157   : > { %v2994_v40 = vor.u32 %v3348_v39, %v2993_v4  ;;  %v2998_v42 = vor.u32 %v3347_v19, %v2995_v20 }
 0x159   : > { %1133 = vmatpush.bf16.msra.mxu0 %v2994_v40  ;;  %1190 = vmatpush.bf16.msra.mxu3 %v2998_v42 }
 0x15c   : > { %1134 = vmatmul.bf16.vlgmr.msra.gmra.mxu0 %v2970_v43  ;;  %1191 = vmatmul.bf16.vlgmr.msra.gmra.mxu3 %v2970_v43 }
 0x15d   : > { %1227 = vmatpush.bf16.msrb.mxu0 %v3134_v60 }
 0x161   : > { %1228 = vmatpush.bf16.msrb.mxu0 %v3126_v25 }
 0x164   : > { %3138 = vmatmul.msk.bf16.vlgmr.msrb.gmra.mxu1 %vm5268_vm7, %v4348_v56 }
 0x16c   : > { %1139 = vmatmul.bf16.gmra.mxu0 %v2982_v15  ;;  %1196 = vmatmul.bf16.gmra.mxu3 %v2982_v15 }
 0x17c   : > { %3137 = vmatmul.msk.bf16.vlgmr.msrb.gmra.mxu0 %vm5268_vm7, %v4310_v52 }
 0x18f   : > { %v902_v9 = vpop.permute.xlu2 %901 }
 0x199   : > { %v1173_v45 = vpop.f32.mrf.mxu2 }
 0x1a1   : > { %v4442_v47 = vpop.f32.mrf.mxu2 }
 0x1a5   : > { %v907_v61 = vpop.permute.xlu1 %906 }
 0x1a9   : > { %v1178_v48 = vpop.f32.mrf.mxu2 }
 0x1ac   : > { %v897_v0 = vpop.permute.xlu0 %896 }
 0x1ad   : > { %v892_v52 = vpop.permute.xlu1 %891 }
 0x1b1   : > { %v1180_v56 = vpop.f32.mrf.mxu2 }
 0x1c1   : > { %v1154_v54 = vpop.f32.mrf.mxu1 }
 0x1c7   : > { %v1211_v41 = vpop.f32.mrf.mxu2 }
 0x1c9   : > { %v1156_v49 = vpop.f32.mrf.mxu1 }
 0x1cf   : > { %v1213_v63 = vpop.f32.mrf.mxu2 }
 0x1d1   : > { %v1159_v57 = vpop.f32.mrf.mxu1 }
 0x1d7   : > { %v1216_v11 = vpop.f32.mrf.mxu2 }
 0x1d9   : > { %v1135_v55 = vpop.f32.mrf.mxu0  ;;  %v1161_v50 = vpop.f32.mrf.mxu1 }
 0x1da   : > { %v1136_v60 = vadd.f32 %v1135_v55, %v892_v52 }
 0x1dc   : > { %v1155_v34 = vadd.f32 %v1154_v54, %v1136_v60 }
 0x1de   : > { %v4454_v62 = vadd.f32 %v1173_v45, %v1155_v34 }
 0x1df   : > { %v1192_v58 = vpop.f32.mrf.mxu3  ;;  %v1218_v6 = vpop.f32.mrf.mxu2 }
 0x1e0   : > { %v1193_v24 = vadd.f32 %v1192_v58, %v892_v52  ;;  %v1260_v31 = vmul.f32 %v4454_v62, %v4454_v62 }
 0x1e1   : > { %v1137_v59 = vpop.f32.mrf.mxu0  ;;  %v1235_v21 = vpop.f32.mrf.mxu1 }
 0x1e2   : > { %v1212_v3 = vadd.f32 %v1211_v41, %v1193_v24  ;;  %v1138_v28 = vadd.f32 %v1137_v59, %v897_v0 }
 0x1e4   : > { %v1157_v19 = vadd.f32 %v1156_v49, %v1138_v28 }
 0x1e6   : > { %v4473_v15 = vadd.f32 %v4442_v47, %v1157_v19 }
 0x1e7   : > { %v1194_v53 = vpop.f32.mrf.mxu3 }
 0x1e8   : > { %v1195_v4 = vadd.f32 %v1194_v53, %v897_v0  ;;  %v1262_v54 = vmul.f32 %v4473_v15, %v4473_v15 }
 0x1e9   : > { %v1140_v10 = vpop.f32.mrf.mxu0  ;;  %v1237_v38 = vpop.f32.mrf.mxu1 }
 0x1ea   : > { %v1141_v13 = vadd.f32 %v1140_v10, %v902_v9  ;;  %v1214_v43 = vadd.f32 %v1213_v63, %v1195_v4 }
 0x1ec   : > { %v1160_v46 = vadd.f32 %v1159_v57, %v1141_v13  ;;  %v436_v13 = vld [vmem:[#allocation6] sm:$0xff] }
 0x1ee   : > { %v4444_v23 = vadd.f32 %v1178_v48, %v1160_v46  ;;  %v437_v46 = vld [vmem:[#allocation6 + $0x8] sm:$0xff] }
 0x1ef   : > { %v1197_v16 = vpop.f32.mrf.mxu3 }
 0x1f0   : > { %v1198_v18 = vadd.f32 %v1197_v16, %v902_v9  ;;  %v1264_v29 = vmul.f32 %v4444_v23, %v4444_v23  ;;  %v439_v16 = vld [vmem:[#allocation6 + $0x18] sm:$0xff] }
 0x1f1   : > { %v1142_v22 = vpop.f32.mrf.mxu0 }
 0x1f2   : > { %v1217_v51 = vadd.f32 %v1216_v11, %v1198_v18  ;;  %v1143_v33 = vadd.f32 %v1142_v22, %v907_v61  ;;  %v438_v11 = vld [vmem:[#allocation6 + $0x10] sm:$0xff]  ;;  %v1242_v22 = vld [vmem:[%s5252_s3 + $0x10] sm:$0xff] }
 0x1f4   : > { %v4446_v25 = vadd.f32 %v1235_v21, %v1217_v51  ;;  %v1162_v26 = vadd.f32 %v1161_v50, %v1143_v33  ;;  %v1241_v33 = vld [vmem:[%s5252_s3 + $0x8] sm:$0xff] }
 0x1f6   : > { %v1254_v27 = vadd.f32 %v4446_v25, %v4444_v23  ;;  %v1265_v30 = vmul.f32 %v4446_v25, %v4446_v25  ;;  %v4456_v7 = vadd.f32 %v1180_v56, %v1162_v26 }
 0x1f7   : > { %v1199_v1 = vpop.f32.mrf.mxu3 }
 0x1f8   : > { %v1200_v2 = vadd.f32 %v1199_v1, %v907_v61  ;;  %1255 = vadd.xlane.f32.xlu0 %v1254_v27  ;;  %v1274_v5 = vadd.f32 %v1265_v30, %v1264_v29  ;;  %v1266_v40 = vmul.f32 %v4456_v7, %v4456_v7  ;;  %v1240_v29 = vld [vmem:[%s5252_s3] sm:$0xff]  ;;  %v1243_v30 = vld [vmem:[%s5252_s3 + $0x18] sm:$0xff] }
 0x1f9   : > { %v1230_v32 = vpop.f32.mrf.mxu0 }
 0x1fa   : > { %v1219_v35 = vadd.f32 %v1218_v6, %v1200_v2  ;;  %v4458_v36 = vadd.f32 %v1230_v32, %v1212_v3  ;;  %1275 = vadd.xlane.f32.xlu2 %v1274_v5  ;;  %v3802_v32 = vmov 1  }
 0x1fb   : > { %3518 = vset.pattern.permute.xlu2 %v3802_v32  ;;  %3520 = vset.pattern.permute.xlu0 %v3802_v32 }
 0x1fc   : > { %v4460_v17 = vadd.f32 %v1237_v38, %v1219_v35  ;;  %v1261_v39 = vmul.f32 %v4458_v36, %v4458_v36  ;;  %v1248_v47 = vadd.f32 %v4458_v36, %v4454_v62  ;;  %3519 = vset.pattern.permute.xlu1 %v3802_v32 }
 0x1fe   : > { %v1268_v20 = vadd.f32 %v1261_v39, %v1260_v31  ;;  %v1267_v42 = vmul.f32 %v4460_v17, %v4460_v17  ;;  %v1257_v44 = vadd.f32 %v4460_v17, %v4456_v7 }
 0x200   : > { %1269 = vadd.xlane.f32.xlu0 %v1268_v20  ;;  %v1277_v37 = vadd.f32 %v1267_v42, %v1266_v40 }
 0x201   : > { %v1232_v14 = vpop.f32.mrf.mxu0 }
 0x202   : > { %v4475_v45 = vadd.f32 %v1232_v14, %v1214_v43  ;;  %1278 = vadd.xlane.f32.xlu1 %v1277_v37  ;;  %1258 = vadd.xlane.f32.xlu2 %v1257_v44 }
 0x204   : > { %v1263_v48 = vmul.f32 %v4475_v45, %v4475_v45  ;;  %v1251_v49 = vadd.f32 %v4475_v45, %v4473_v15 }
 0x206   : > { %v1271_v56 = vadd.f32 %v1263_v48, %v1262_v54 }
 0x20a   : > { %1272 = vadd.xlane.f32.xlu1 %v1271_v56  ;;  %1252 = vadd.xlane.f32.xlu2 %v1251_v49 }
 0x212   : > { %1249 = vadd.xlane.f32.xlu2 %v1248_v47 }
 0x26b   : > { %v1256_v59 = vpop.xlane.xlu0 %1255 }
 0x26d   : > { %v1276_v55 = vpop.xlane.xlu2 %1275 }
 0x26e   : > { %v1283_v61 = vsel %vm5267_vm9, %v1256_v59, %v1276_v55 }
 0x273   : > { %v1270_v53 = vpop.xlane.xlu0 %1269 }
 0x275   : > { %v1279_v41 = vpop.xlane.xlu1 %1278  ;;  %v1259_v57 = vpop.xlane.xlu2 %1258 }
 0x276   : > { %v1284_v58 = vsel %vm5267_vm9, %v1259_v57, %v1279_v41 }
 0x277   : > { %1309 = vmatpush.msra.mxu1 %v1284_v58 }
 0x279   : > { %1310 = vmatpush.msra.mxu1 %v1283_v61 }
 0x27d   : > { %v1273_v63 = vpop.xlane.xlu1 %1272  ;;  %v1253_v9 = vpop.xlane.xlu2 %1252 }
 0x27e   : > { %v1282_v50 = vsel %vm5267_vm9, %v1253_v9, %v1273_v63 }
 0x27f   : > { %1311 = vmatpush.msra.mxu1 %v1282_v50 }
 0x285   : > { %v1250_v10 = vpop.xlane.xlu2 %1249 }
 0x286   : > { %v1281_v52 = vsel %vm5267_vm9, %v1250_v10, %v1270_v53 }
 0x287   : > { %1312 = vmatpush.msra.mxu1 %v1281_v52 }
 0x288   : > { %3139 = vmatmul.msk.f32.vlgmr.msra.gmra.mxu1 %vm5268_vm7, %v436_v13 }
 0x290   : > { %3140 = vmatmul.msk.f32.gmra.mxu1 %vm5268_vm7, %v437_v46 }
 0x298   : > { %3141 = vmatmul.msk.f32.gmra.mxu1 %vm5268_vm7, %v438_v11 }
 0x2a0   : > { %3142 = vmatmul.msk.f32.gmra.mxu1 %vm5268_vm7, %v439_v16 }
 0x305   : > { %v4493_v60 = vpop.f32.mrf.mxu1 }
 0x306   : > { %v1326_v18 = vmul.f32 %v4493_v60, %v4493_v60 }
 0x308   : > { %1334 = vrot.lane.b32.xlu0 %v1326_v18, %s3795_s28 }
 0x30d   : > { %v4498_v21 = vpop.f32.mrf.mxu1 }
 0x30e   : > { %v1327_v26 = vmul.f32 %v4498_v21, %v4498_v21 }
 0x310   : > { %1406 = vrot.lane.b32.xlu0 %v1242_v22, %s3795_s28 }
 0x315   : > { %v4504_v51 = vpop.f32.mrf.mxu1 }
 0x316   : > { %v1328_v34 = vmul.f32 %v4504_v51, %v4504_v51 }
 0x318   : > { %1338 = vrot.lane.b32.xlu1 %v1328_v34, %s3795_s28  ;;  %1404 = vrot.lane.b32.xlu0 %v1241_v33, %s3795_s28 }
 0x31d   : > { %v4513_v24 = vpop.f32.mrf.mxu1 }
 0x31e   : > { %v1329_v27 = vmul.f32 %v4513_v24, %v4513_v24 }
 0x320   : > { %1336 = vrot.lane.b32.xlu1 %v1327_v26, %s3795_s28  ;;  %1340 = vrot.lane.b32.xlu2 %v1329_v27, %s3795_s28 }
 0x328   : > { %1402 = vrot.lane.b32.xlu1 %v1240_v29, %s3795_s28  ;;  %1408 = vrot.lane.b32.xlu2 %v1243_v30, %s3795_s28 }
 0x37a   : > { %v1335_v0 = vpop.permute.xlu0 %1334  ;;  %v1341_v1 = vpop.permute.xlu2 %1340 }
 0x37b   : > { %v1346_v2 = vsub.f32 %v4493_v60, %v1335_v0  ;;  %v1349_v3 = vsub.f32 %v4513_v24, %v1341_v1 }
 0x37d   : > { %v1350_v5 = vmax.f32 %v1346_v2, 0.0  ;;  %v1353_v6 = vmax.f32 %v1349_v3, 0.0 }
 0x37f   : > { %v1354_v28 = vadd.f32 1e-05, %v1350_v5  ;;  %v1357_v35 = vadd.f32 1e-05, %v1353_v6  ;;  %v1245_v5 = vld [vmem:[%s5253_s4 + $0x8] sm:$0xff] }
 0x381   : > { %3530 = vrsqrt.f32 %v1354_v28  ;;  %vm1364_vm11 = vweird.f32 %v1354_v28  ;;  %vm1394_vm13 = vweird.f32 %v1357_v35 }
 0x382   : > { %3532 = vrsqrt.f32 %v1357_v35  ;;  %v1407_v50 = vpop.permute.xlu0 %1406  ;;  %v1409_v46 = vpop.permute.xlu2 %1408 }
 0x387   : > { %v3531_v38 = vpop.eup %3530 }
 0x388   : > { %v1359_v4 = vmul.f32 %v3531_v38, %v1354_v28  ;;  %v3533_v31 = vpop.eup %3532  ;;  %vm1365_vm10 = vweird.f32 %v3531_v38 }
 0x389   : > { %v1389_v40 = vmul.f32 %v3533_v31, %v1357_v35  ;;  %vm1366_vm12 = vmor %vm1364_vm11, %vm1365_vm10  ;;  %vm1395_vm14 = vweird.f32 %v3533_v31 }
 0x38a   : > { %v1360_v39 = vmul.f32 %v3531_v38, %v1359_v4  ;;  %v1339_v19 = vpop.permute.xlu1 %1338  ;;  %vm1396_vm15 = vmor %vm1394_vm13, %vm1395_vm14  ;;  %v1405_v26 = vpop.permute.xlu0 %1404 }
 0x38b   : > { %v1348_v20 = vsub.f32 %v4504_v51, %v1339_v19  ;;  %v1390_v44 = vmul.f32 %v3533_v31, %v1389_v40 }
 0x38c   : > { %v1361_v43 = vmul.f32 0.5, %v1360_v39 }
 0x38d   : > { %v1352_v42 = vmax.f32 %v1348_v20, 0.0  ;;  %v1391_v56 = vmul.f32 0.5, %v1390_v44 }
 0x38e   : > { %v1362_v48 = vsub.f32 1.5, %v1361_v43 }
 0x38f   : > { %v1356_v37 = vadd.f32 1e-05, %v1352_v42  ;;  %v1392_v41 = vsub.f32 1.5, %v1391_v56 }
 0x390   : > { %v1363_v47 = vmul.f32 %v3531_v38, %v1362_v48 }
 0x391   : > { %3534 = vrsqrt.f32 %v1356_v37  ;;  %v1393_v9 = vmul.f32 %v3533_v31, %v1392_v41  ;;  %vm1384_vm14 = vweird.f32 %v1356_v37 }
 0x392   : > { %v1337_v14 = vpop.permute.xlu1 %1336  ;;  %v1367_v58 = vsel %vm1366_vm12, %v3531_v38, %v1363_v47  ;;  %v1244_v38 = vld [vmem:[%s5253_s4] sm:$0xff] }
 0x393   : > { %v1347_v54 = vsub.f32 %v4498_v21, %v1337_v14  ;;  %v1397_v52 = vsel %vm1396_vm15, %v3533_v31, %v1393_v9  ;;  %v1246_v31 = vld [vmem:[%s5253_s4 + $0x10] sm:$0xff] }
 0x394   : > { %v1417_v16 = vmul.f32 %v1409_v46, %v1397_v52 }
 0x395   : > { %v1351_v49 = vmax.f32 %v1347_v54, 0.0 }
 0x397   : > { %v1355_v55 = vadd.f32 1e-05, %v1351_v49  ;;  %v3535_v57 = vpop.eup %3534 }
 0x398   : > { %v1379_v63 = vmul.f32 %v3535_v57, %v1356_v37  ;;  %vm1385_vm13 = vweird.f32 %v3535_v57  ;;  %v1247_v37 = vld [vmem:[%s5253_s4 + $0x18] sm:$0xff] }
 0x399   : > { %3536 = vrsqrt.f32 %v1355_v55  ;;  %vm1374_vm11 = vweird.f32 %v1355_v55  ;;  %vm1386_vm15 = vmor %vm1384_vm14, %vm1385_vm13 }
 0x39a   : > { %v1403_v59 = vpop.permute.xlu1 %1402  ;;  %v1380_v10 = vmul.f32 %v3535_v57, %v1379_v63 }
 0x39b   : > { %v1414_v61 = vmul.f32 %v1403_v59, %v1367_v58 }
 0x39c   : > { %v1381_v18 = vmul.f32 0.5, %v1380_v10 }
 0x39d   : > { %1422 = vrot.lane.b32.xlu0 %v1414_v61, %s3798_s15  ;;  %1443 = vperm.xlu2 %3518, %v1414_v61  }
 0x39e   : > { %v1382_v34 = vsub.f32 1.5, %v1381_v18 }
 0x39f   : > { %v3537_v53 = vpop.eup %3536 }
 0x3a0   : > { %v1369_v13 = vmul.f32 %v3537_v53, %v1355_v55  ;;  %vm1375_vm10 = vweird.f32 %v3537_v53  ;;  %v1383_v0 = vmul.f32 %v3535_v57, %v1382_v34 }
 0x3a1   : > { %vm1376_vm12 = vmor %vm1374_vm11, %vm1375_vm10 }
 0x3a2   : > { %v1370_v11 = vmul.f32 %v3537_v53, %v1369_v13  ;;  %v1387_v1 = vsel %vm1386_vm15, %v3535_v57, %v1383_v0 }
 0x3a3   : > { %v1416_v2 = vmul.f32 %v1407_v50, %v1387_v1 }
 0x3a4   : > { %v1371_v22 = vmul.f32 0.5, %v1370_v11 }
 0x3a5   : > { %1455 = vperm.xlu0 %3520, %v1417_v16   ;;  %3522 = vset.pattern.permute.xlu2 %v3801_v8 }
 0x3a6   : > { %v1372_v33 = vsub.f32 1.5, %v1371_v22 }
 0x3a8   : > { %v1373_v27 = vmul.f32 %v3537_v53, %v1372_v33 }
 0x3aa   : > { %v1377_v29 = vsel %vm1376_vm12, %v3537_v53, %v1373_v27 }
 0x3ab   : > { %v1415_v30 = vmul.f32 %v1405_v26, %v1377_v29 }
 0x3ad   : > { %1447 = vperm.xlu1 %3519, %v1415_v30   ;;  %1424 = vrot.lane.b32.xlu2 %v1415_v30, %s3798_s15 }
 0x3ae   : > { %3521 = vset.pattern.permute.xlu0 %v3801_v8 }
 0x3b5   : > { %1451 = vperm.xlu1 %3519, %v1416_v2   ;;  %1426 = vrot.lane.b32.xlu2 %v1416_v2, %s3798_s15 }
 0x3bd   : > { %1428 = vrot.lane.b32.xlu1 %v1417_v16, %s3798_s15 }
 0x3be   : > { %3523 = vset.pattern.permute.xlu1 %v3801_v8 }
 0x3f7   : > { %v4543_v3 = vpop.permute.xlu2 %1443 }
 0x407   : > { %v1425_v6 = vpop.permute.xlu2 %1424 }
 0x408   : > { %v1435_v28 = vmul.f32 %v1425_v6, %v4498_v21 }
 0x40a   : > { %v1439_v35 = vsub.f32 %v1245_v5, %v1435_v28 }
 0x40c   : > { %1473 = vperm.xlu2 %3522, %v1439_v35  }
 0x40f   : > { %v1423_v4 = vpop.permute.xlu0 %1422  ;;  %v1427_v39 = vpop.permute.xlu2 %1426 }
 0x410   : > { %v1434_v19 = vmul.f32 %v1423_v4, %v4493_v60  ;;  %v1436_v20 = vmul.f32 %v1427_v39, %v4504_v51 }
 0x412   : > { %v1438_v40 = vsub.f32 %v1244_v38, %v1434_v19  ;;  %v1440_v42 = vsub.f32 %v1246_v31, %v1436_v20  ;;  %v1458_v38 = vmul.f32 %v4543_v3, %v4454_v62  ;;  %v1459_v19 = vmul.f32 %v4543_v3, %v4458_v36 }
 0x414   : > { %1468 = vperm.xlu0 %3521, %v1438_v40   ;;  %1478 = vperm.xlu2 %3522, %v1440_v42  }
 0x417   : > { %v4576_v18 = vpop.permute.xlu0 %1455 }
 0x41f   : > { %v1448_v21 = vpop.permute.xlu1 %1447 }
 0x420   : > { %v1460_v54 = vmul.f32 %v1448_v21, %v4473_v15  ;;  %v1461_v60 = vmul.f32 %v1448_v21, %v4475_v45 }
 0x427   : > { %v1452_v43 = vpop.permute.xlu1 %1451 }
 0x428   : > { %v1462_v41 = vmul.f32 %v1452_v43, %v4444_v23  ;;  %v1463_v57 = vmul.f32 %v1452_v43, %v4446_v25 }
 0x42f   : > { %v1429_v44 = vpop.permute.xlu1 %1428 }
 0x430   : > { %v1437_v14 = vmul.f32 %v1429_v44, %v4513_v24 }
 0x432   : > { %v1441_v48 = vsub.f32 %v1247_v37, %v1437_v14 }
 0x434   : > { %1483 = vperm.xlu1 %3523, %v1441_v48  }
 0x466   : > { %v1474_v51 = vpop.permute.xlu2 %1473 }
 0x467   : > { %v1488_v56 = vadd.f32 %v1474_v51, %v1460_v54  ;;  %v1489_v49 = vadd.f32 %v1474_v51, %v1461_v60 }
 0x469   : > { %v3145_v47 = vmul.f32 -1.442695, %v1488_v56  ;;  %v3146_v55 = vmul.f32 -1.442695, %v1489_v49 }
 0x46b   : > { %3538 = vpow2.f32 %v3145_v47 }
 0x46c   : > { %3540 = vpow2.f32 %v3146_v55 }
 0x46e   : > { %v1479_v58 = vpop.permute.xlu2 %1478 }
 0x46f   : > { %v4565_v59 = vadd.f32 %v1479_v58, %v1462_v41  ;;  %v4567_v24 = vadd.f32 %v1479_v58, %v1463_v57 }
 0x471   : > { %v3539_v61 = vpop.eup %3538  ;;  %v3147_v15 = vmul.f32 -1.442695, %v4565_v59  ;;  %v3148_v9 = vmul.f32 -1.442695, %v4567_v24 }
 0x472   : > { %v3541_v45 = vpop.eup %3540  ;;  %v1520_v63 = vadd.f32 1.0, %v3539_v61 }
 0x473   : > { %v1521_v50 = vadd.f32 1.0, %v3541_v45  ;;  %3542 = vpow2.f32 %v3147_v15 }
 0x474   : > { %3544 = vrcp.f32 %v1520_v63  ;;  %v1565_v22 = vand.u32 2147483647, %v1520_v63  ;;  %v1567_v33 = vand.u32 2147483648, %v1520_v63  ;;  %vm1561_vm12 = vweird.f32 %v1520_v63 }
 0x475   : > { %3546 = vrcp.f32 %v1521_v50  ;;  %v1582_v27 = vand.u32 2147483648, %v1521_v50  ;;  %v1580_v30 = vand.u32 2147483647, %v1521_v50  ;;  %vm1576_vm14 = vweird.f32 %v1521_v50 }
 0x476   : > { %3548 = vpow2.f32 %v3148_v9  ;;  %v1568_v2 = vor.u32 1.1754944e-38, %v1567_v33  ;;  %vm1566_vm15 = vcmp.eq.f32.partialorder %v1565_v22, 8.507059e+37 }
 0x477   : > { %v1583_v28 = vor.u32 1.1754944e-38, %v1582_v27  ;;  %vm1581_vm7 = vcmp.eq.f32.partialorder %v1580_v30, 8.507059e+37 }
 0x479   : > { %v3543_v23 = vpop.eup %3542 }
 0x47a   : > { %v3545_v53 = vpop.eup %3544  ;;  %v4571_v25 = vadd.f32 1.0, %v3543_v23 }
 0x47b   : > { %v3547_v10 = vpop.eup %3546  ;;  %v1557_v13 = vmul.f32 %v3545_v53, %v1520_v63  ;;  %vm1562_vm10 = vweird.f32 %v3545_v53 }
 0x47c   : > { %v3549_v52 = vpop.eup %3548  ;;  %v1572_v46 = vmul.f32 %v3547_v10, %v1521_v50  ;;  %3550 = vrcp.f32 %v4571_v25  ;;  %vm1577_vm11 = vweird.f32 %v3547_v10  ;;  %vm1563_vm13 = vmor %vm1561_vm12, %vm1562_vm10  ;;  %v1595_v43 = vand.u32 2147483647, %v4571_v25 }
 0x47d   : > { %v1558_v11 = vsub.f32 1.0, %v1557_v13  ;;  %v4574_v16 = vadd.f32 1.0, %v3549_v52  ;;  %vm1578_vm9 = vmor %vm1576_vm14, %vm1577_vm11  ;;  %v1597_v37 = vand.u32 2147483648, %v4571_v25 }
 0x47e   : > { %v1573_v34 = vsub.f32 1.0, %v1572_v46  ;;  %vm1596_vm12 = vcmp.eq.f32.partialorder %v1595_v43, 8.507059e+37 }
 0x47f   : > { %v1559_v26 = vmul.f32 %v3545_v53, %v1558_v11  ;;  %3552 = vrcp.f32 %v4574_v16  ;;  %v1612_v51 = vand.u32 2147483648, %v4574_v16  ;;  %v1598_v47 = vor.u32 1.1754944e-38, %v1597_v37 }
 0x480   : > { %v1574_v29 = vmul.f32 %v3547_v10, %v1573_v34  ;;  %v1610_v41 = vand.u32 2147483647, %v4574_v16 }
 0x481   : > { %v1560_v0 = vadd.f32 %v3545_v53, %v1559_v26  ;;  %v1613_v15 = vor.u32 1.1754944e-38, %v1612_v51 }
 0x482   : > { %v3551_v1 = vpop.eup %3550  ;;  %v1575_v5 = vadd.f32 %v3547_v10, %v1574_v29 }
 0x483   : > { %v1564_v6 = vsel %vm1563_vm13, %v3545_v53, %v1560_v0  ;;  %v1587_v35 = vmul.f32 %v3551_v1, %v4571_v25  ;;  %vm1606_vm13 = vweird.f32 %v4574_v16 }
 0x484   : > { %v1569_v4 = vsel %vm1566_vm15, %v1568_v2, %v1564_v6  ;;  %v1579_v31 = vsel %vm1578_vm9, %v3547_v10, %v1575_v5  ;;  %vm1592_vm9 = vweird.f32 %v3551_v1  ;;  %vm1611_vm15 = vcmp.eq.f32.partialorder %v1610_v41, 8.507059e+37 }
 0x485   : > { %v3553_v39 = vpop.eup %3552  ;;  %v1584_v20 = vsel %vm1581_vm7, %v1583_v28, %v1579_v31  ;;  %v4584_v40 = vmul.f32 %v1569_v4, %v1488_v56  ;;  %v1588_v42 = vsub.f32 1.0, %v1587_v35  ;;  %vm1591_vm7 = vweird.f32 %v4571_v25 }
 0x486   : > { %v4586_v21 = vmul.f32 %v1584_v20, %v1489_v49  ;;  %v1602_v44 = vmul.f32 %v3553_v39, %v4574_v16  ;;  %v1469_v62 = vpop.permute.xlu0 %1468  ;;  %vm1593_vm10 = vmor %vm1591_vm7, %vm1592_vm9  ;;  %vm1607_vm11 = vweird.f32 %v3553_v39  ;;  %v1464_v35 = vmul.f32 %v4576_v18, %v4456_v7 }
 0x487   : > { %v1589_v14 = vmul.f32 %v3551_v1, %v1588_v42  ;;  %v4591_v48 = vadd.f32 %v1469_v62, %v1458_v38  ;;  %v4593_v54 = vadd.f32 %v1469_v62, %v1459_v19  ;;  %vm1608_vm14 = vmor %vm1606_vm13, %vm1607_vm11  ;;  %v1465_v38 = vmul.f32 %v4576_v18, %v4460_v17 }
 0x488   : > { %v1839_v36 = vpack.c.bf16 %v4586_v21, %v4584_v40  ;;  %v1603_v3 = vsub.f32 1.0, %v1602_v44 }
 0x489   : > { %v1590_v60 = vadd.f32 %v3551_v1, %v1589_v14  ;;  %v3143_v56 = vmul.f32 -1.442695, %v4591_v48  ;;  %v3144_v49 = vmul.f32 -1.442695, %v4593_v54 }
 0x48a   : > { %1843 = vst [vmem:[#allocation2 + $0x88] sm:$0xff] %v1839_v36  ;;  %v1604_v55 = vmul.f32 %v3553_v39, %v1603_v3 }
 0x48b   : > { %v1594_v57 = vsel %vm1593_vm10, %v3551_v1, %v1590_v60  ;;  %3554 = vpow2.f32 %v3143_v56 }
 0x48c   : > { %v1599_v58 = vsel %vm1596_vm12, %v1598_v47, %v1594_v57  ;;  %v1605_v61 = vadd.f32 %v3553_v39, %v1604_v55  ;;  %3556 = vpow2.f32 %v3144_v49 }
 0x48d   : > { %v4604_v63 = vmul.f32 %v1599_v58, %v4565_v59 }
 0x48e   : > { %v1609_v45 = vsel %vm1608_vm14, %v3553_v39, %v1605_v61 }
 0x48f   : > { %v1614_v9 = vsel %vm1611_vm15, %v1613_v15, %v1609_v45 }
 0x490   : > { %v4607_v50 = vmul.f32 %v1614_v9, %v4567_v24 }
 0x491   : > { %v3555_v23 = vpop.eup %3554 }
 0x492   : > { %v3557_v53 = vpop.eup %3556  ;;  %v1840_v25 = vpack.c.bf16 %v4607_v50, %v4604_v63  ;;  %v1518_v10 = vadd.f32 1.0, %v3555_v23 }
 0x493   : > { %v1519_v13 = vadd.f32 1.0, %v3557_v53 }
 0x494   : > { %1844 = vst [vmem:[#allocation2 + $0x90] sm:$0xff] %v1840_v25  ;;  %3558 = vrcp.f32 %v1518_v10  ;;  %v1537_v22 = vand.u32 2147483648, %v1518_v10  ;;  %v1535_v24 = vand.u32 2147483647, %v1518_v10  ;;  %vm1531_vm10 = vweird.f32 %v1518_v10 }
 0x495   : > { %3560 = vrcp.f32 %v1519_v13  ;;  %v1552_v26 = vand.u32 2147483648, %v1519_v13  ;;  %v1550_v29 = vand.u32 2147483647, %v1519_v13  ;;  %vm1546_vm12 = vweird.f32 %v1519_v13 }
 0x496   : > { %v1538_v0 = vor.u32 1.1754944e-38, %v1537_v22  ;;  %vm1536_vm13 = vcmp.eq.f32.partialorder %v1535_v24, 8.507059e+37 }
 0x497   : > { %v1553_v5 = vor.u32 1.1754944e-38, %v1552_v26  ;;  %vm1551_vm15 = vcmp.eq.f32.partialorder %v1550_v29, 8.507059e+37 }
 0x49a   : > { %v3559_v52 = vpop.eup %3558 }
 0x49b   : > { %v3561_v46 = vpop.eup %3560  ;;  %v1527_v11 = vmul.f32 %v3559_v52, %v1518_v10  ;;  %vm1532_vm9 = vweird.f32 %v3559_v52 }
 0x49c   : > { %v1542_v16 = vmul.f32 %v3561_v46, %v1519_v13  ;;  %vm1547_vm7 = vweird.f32 %v3561_v46  ;;  %vm1533_vm11 = vmor %vm1531_vm10, %vm1532_vm9 }
 0x49d   : > { %v1528_v59 = vsub.f32 1.0, %v1527_v11  ;;  %vm1548_vm14 = vmor %vm1546_vm12, %vm1547_vm7 }
 0x49e   : > { %v1543_v33 = vsub.f32 1.0, %v1542_v16  ;;  %v1816_v16 = vld [vmem:[#allocation8 + $0x3] ss:$8 sm:$0x3] }
 0x49f   : > { %v1529_v34 = vmul.f32 %v3559_v52, %v1528_v59  ;;  %v4719_v59 = vperm.slane %v1816_v16, 0  ;;  %v4721_v22 = vperm.slane %v1816_v16, 1 }
 0x4a0   : > { %v1544_v27 = vmul.f32 %v3561_v46, %v1543_v33 }
 0x4a1   : > { %v1530_v30 = vadd.f32 %v3559_v52, %v1529_v34 }
 0x4a2   : > { %v1545_v1 = vadd.f32 %v3561_v46, %v1544_v27 }
 0x4a3   : > { %v1534_v2 = vsel %vm1533_vm11, %v3559_v52, %v1530_v30 }
 0x4a4   : > { %v1539_v6 = vsel %vm1536_vm13, %v1538_v0, %v1534_v2  ;;  %v1549_v28 = vsel %vm1548_vm14, %v3561_v46, %v1545_v1  ;;  %v1962_v0 = vld [vmem:[#allocation8 + $0x7] ss:$8 sm:$0x3] }
 0x4a5   : > { %v1554_v4 = vsel %vm1551_vm15, %v1553_v5, %v1549_v28  ;;  %v4616_v31 = vmul.f32 %v1539_v6, %v4591_v48  ;;  %v4735_v2 = vperm.slane %v1962_v0, 0  ;;  %v4737_v5 = vperm.slane %v1962_v0, 1 }
 0x4a6   : > { %v4619_v39 = vmul.f32 %v1554_v4, %v4593_v54  ;;  %v1484_v19 = vpop.permute.xlu1 %1483 }
 0x4a7   : > { %v1492_v20 = vadd.f32 %v1484_v19, %v1464_v35  ;;  %v1493_v42 = vadd.f32 %v1484_v19, %v1465_v38  ;;  %1938 = vrot.lane.b32.xlu0 %v4616_v31, %s3793_s23  ;;  %1792 = vrot.lane.b32.xlu1 %v4616_v31, %s3795_s28 }
 0x4a8   : > { %v1838_v7 = vpack.c.bf16 %v4619_v39, %v4616_v31  ;;  %1800 = vrot.lane.b32.xlu2 %v4619_v39, %s3795_s28 }
 0x4a9   : > { %v3149_v17 = vmul.f32 -1.442695, %v1492_v20  ;;  %v3150_v18 = vmul.f32 -1.442695, %v1493_v42 }
 0x4aa   : > { %1842 = vst [vmem:[#allocation2 + $0x80] sm:$0xff] %v1838_v7  ;;  %v1770_v7 = vld [vmem:[#allocation8 + $0x2] ss:$8 sm:$0x3] }
 0x4ab   : > { %3562 = vpow2.f32 %v3149_v17 }
 0x4ac   : > { %3564 = vpow2.f32 %v3150_v18 }
 0x4af   : > { %1746 = vrot.lane.b32.xlu0 %v4616_v31, %s3797_s13  ;;  %1946 = vrot.lane.b32.xlu1 %v4619_v39, %s3793_s23 }
 0x4b0   : > { %1892 = vrot.lane.b32.xlu2 %v4616_v31, %s3796_s29 }
 0x4b1   : > { %v3563_v43 = vpop.eup %3562 }
 0x4b2   : > { %v3565_v37 = vpop.eup %3564  ;;  %v1524_v44 = vadd.f32 1.0, %v3563_v43 }
 0x4b3   : > { %v1525_v62 = vadd.f32 1.0, %v3565_v37  ;;  %v4757_v37 = vperm.slane %v1770_v7, 0 }
 0x4b4   : > { %3566 = vrcp.f32 %v1524_v44  ;;  %v1627_v60 = vand.u32 2147483648, %v1524_v44  ;;  %v1625_v49 = vand.u32 2147483647, %v1524_v44  ;;  %vm1621_vm10 = vweird.f32 %v1524_v44 }
 0x4b5   : > { %3568 = vrcp.f32 %v1525_v62  ;;  %v1642_v47 = vand.u32 2147483648, %v1525_v62  ;;  %v1640_v41 = vand.u32 2147483647, %v1525_v62  ;;  %vm1636_vm12 = vweird.f32 %v1525_v62 }
 0x4b6   : > { %v1628_v58 = vor.u32 1.1754944e-38, %v1627_v60  ;;  %vm1626_vm13 = vcmp.eq.f32.partialorder %v1625_v49, 8.507059e+37 }
 0x4b7   : > { %1900 = vrot.lane.b32.xlu0 %v4619_v39, %s3796_s29  ;;  %1754 = vrot.lane.b32.xlu1 %v4619_v39, %s3797_s13  ;;  %v1643_v45 = vor.u32 1.1754944e-38, %v1642_v47  ;;  %vm1641_vm15 = vcmp.eq.f32.partialorder %v1640_v41, 8.507059e+37  ;;  %v1870_v41 = vld [vmem:[#allocation8 + $0x5] ss:$8 sm:$0x3] }
 0x4b8   : > { %1700 = vrot.lane.b32.xlu2 %v4616_v31, %s3799_s16 }
 0x4ba   : > { %v3567_v14 = vpop.eup %3566 }
 0x4bb   : > { %v3569_v48 = vpop.eup %3568  ;;  %v1617_v54 = vmul.f32 %v3567_v14, %v1524_v44  ;;  %vm1622_vm9 = vweird.f32 %v3567_v14  ;;  %v4759_v44 = vperm.slane %v1770_v7, 1 }
 0x4bc   : > { %v1632_v36 = vmul.f32 %v3569_v48, %v1525_v62  ;;  %vm1637_vm7 = vweird.f32 %v3569_v48  ;;  %vm1623_vm11 = vmor %vm1621_vm10, %vm1622_vm9 }
 0x4bd   : > { %v1618_v3 = vsub.f32 1.0, %v1617_v54  ;;  %vm1638_vm14 = vmor %vm1636_vm12, %vm1637_vm7 }
 0x4be   : > { %v1633_v51 = vsub.f32 1.0, %v1632_v36 }
 0x4bf   : > { %v1619_v56 = vmul.f32 %v3567_v14, %v1618_v3  ;;  %1708 = vrot.lane.b32.xlu0 %v4619_v39, %s3799_s16  ;;  %1846 = vrot.lane.b32.xlu1 %v4616_v31, %s3798_s15 }
 0x4c0   : > { %v1634_v55 = vmul.f32 %v3569_v48, %v1633_v51  ;;  %1854 = vrot.lane.b32.xlu2 %v4619_v39, %s3798_s15 }
 0x4c1   : > { %v1620_v57 = vadd.f32 %v3567_v14, %v1619_v56 }
 0x4c2   : > { %v1635_v61 = vadd.f32 %v3569_v48, %v1634_v55  ;;  %v1724_v55 = vld [vmem:[#allocation8 + $0x1] ss:$8 sm:$0x3] }
 0x4c3   : > { %v1624_v15 = vsel %vm1623_vm11, %v3567_v14, %v1620_v57 }
 0x4c4   : > { %v1629_v9 = vsel %vm1626_vm13, %v1628_v58, %v1624_v15  ;;  %v1639_v23 = vsel %vm1638_vm14, %v3569_v48, %v1635_v61  ;;  %v4781_v61 = vperm.slane %v1724_v55, 0  ;;  %v4783_v15 = vperm.slane %v1724_v55, 1 }
 0x4c5   : > { %v1644_v53 = vsel %vm1641_vm15, %v1643_v45, %v1639_v23  ;;  %v4647_v25 = vmul.f32 %v1629_v9, %v1492_v20  ;;  %v4785_v45 = vperm.slane %v1870_v41, 0  ;;  %v4787_v9 = vperm.slane %v1870_v41, 1 }
 0x4c6   : > { %v4649_v10 = vmul.f32 %v1644_v53, %v1493_v42  ;;  %v1916_v42 = vld [vmem:[#allocation8 + $0x6] ss:$8 sm:$0x3] }
 0x4c7   : > { %1802 = vrot.lane.b32.xlu1 %v4586_v21, %s3795_s28  ;;  %1794 = vrot.lane.b32.xlu0 %v4584_v40, %s3795_s28  ;;  %v4753_v18 = vperm.slane %v1916_v42, 0  ;;  %v4755_v43 = vperm.slane %v1916_v42, 1 }
 0x4c8   : > { %v1841_v13 = vpack.c.bf16 %v4649_v10, %v4647_v25  ;;  %1940 = vrot.lane.b32.xlu2 %v4584_v40, %s3793_s23 }
 0x4ca   : > { %1845 = vst [vmem:[#allocation2 + $0x98] sm:$0xff] %v1841_v13 }
 0x4cf   : > { %1894 = vrot.lane.b32.xlu1 %v4584_v40, %s3796_s29  ;;  %1948 = vrot.lane.b32.xlu0 %v4586_v21, %s3793_s23 }
 0x4d0   : > { %1748 = vrot.lane.b32.xlu2 %v4584_v40, %s3797_s13 }
 0x4d7   : > { %1702 = vrot.lane.b32.xlu1 %v4584_v40, %s3799_s16  ;;  %1756 = vrot.lane.b32.xlu0 %v4586_v21, %s3797_s13 }
 0x4d8   : > { %1902 = vrot.lane.b32.xlu2 %v4586_v21, %s3796_s29 }
 0x4df   : > { %1856 = vrot.lane.b32.xlu1 %v4586_v21, %s3798_s15  ;;  %1848 = vrot.lane.b32.xlu0 %v4584_v40, %s3798_s15 }
 0x4e0   : > { %1710 = vrot.lane.b32.xlu2 %v4586_v21, %s3799_s16 }
 0x4e7   : > { %1950 = vrot.lane.b32.xlu0 %v4607_v50, %s3793_s23  ;;  %1796 = vrot.lane.b32.xlu1 %v4604_v63, %s3795_s28 }
 0x4e8   : > { %1942 = vrot.lane.b32.xlu2 %v4604_v63, %s3793_s23 }
 0x4ef   : > { %1758 = vrot.lane.b32.xlu0 %v4607_v50, %s3797_s13  ;;  %1804 = vrot.lane.b32.xlu1 %v4607_v50, %s3795_s28 }
 0x4f0   : > { %1750 = vrot.lane.b32.xlu2 %v4604_v63, %s3797_s13 }
 0x4f7   : > { %1850 = vrot.lane.b32.xlu0 %v4604_v63, %s3798_s15  ;;  %1896 = vrot.lane.b32.xlu1 %v4604_v63, %s3796_s29 }
 0x4f8   : > { %1904 = vrot.lane.b32.xlu2 %v4607_v50, %s3796_s29 }
 0x4ff   : > { %1658 = vrot.lane.b32.xlu0 %v4604_v63, %s3800_s25  ;;  %1704 = vrot.lane.b32.xlu1 %v4604_v63, %s3799_s16 }
 0x500   : > { %1712 = vrot.lane.b32.xlu2 %v4607_v50, %s3799_s16 }
 0x502   : > { %v1801_v52 = vpop.permute.xlu2 %1800 }
 0x507   : > { %1806 = vrot.lane.b32.xlu0 %v4649_v10, %s3795_s28  ;;  %1858 = vrot.lane.b32.xlu1 %v4607_v50, %s3798_s15 }
 0x508   : > { %1798 = vrot.lane.b32.xlu2 %v4647_v25, %s3795_s28 }
 0x50a   : > { %v1893_v46 = vpop.permute.xlu2 %1892 }
 0x50f   : > { %1898 = vrot.lane.b32.xlu0 %v4647_v25, %s3796_s29  ;;  %1944 = vrot.lane.b32.xlu1 %v4647_v25, %s3793_s23 }
 0x510   : > { %1952 = vrot.lane.b32.xlu2 %v4649_v10, %s3793_s23 }
 0x512   : > { %v4713_v11 = vpop.permute.xlu2 %1700 }
 0x517   : > { %1706 = vrot.lane.b32.xlu0 %v4647_v25, %s3799_s16  ;;  %1752 = vrot.lane.b32.xlu1 %v4647_v25, %s3797_s13 }
 0x518   : > { %1760 = vrot.lane.b32.xlu2 %v4649_v10, %s3797_s13 }
 0x519   : > { %v1939_v33 = vpop.permute.xlu0 %1938  ;;  %v1793_v34 = vpop.permute.xlu1 %1792 }
 0x51a   : > { %v1808_v24 = vsel %vm609_vm2, %v1793_v34, %v1801_v52  ;;  %v1812_v26 = vsel %vm609_vm2, %v1801_v52, %v1793_v34  ;;  %v1855_v27 = vpop.permute.xlu2 %1854 }
 0x51b   : > { %v1822_v29 = vmul.f32 %v4719_v59, %v1812_v26  ;;  %v1823_v30 = vmul.f32 %v4721_v22, %v1808_v24 }
 0x51d   : > { %v1830_v1 = vpack.c.bf16 %v1823_v30, %v1822_v29 }
 0x51f   : > { %1834 = vst [vmem:[#allocation2 + $0x60] sm:$0xff] %v1830_v1  ;;  %1860 = vrot.lane.b32.xlu0 %v4649_v10, %s3798_s15  ;;  %1906 = vrot.lane.b32.xlu1 %v4649_v10, %s3796_s29  ;;  %s2846_s29 = scalar_lea.sflag [#allocation5], %s427_s5 }
 0x520   : > { %1654 = vrot.lane.b32.xlu2 %v4616_v31, %s3800_s25 }
 0x521   : > { %v1747_v6 = vpop.permute.xlu0 %1746  ;;  %v1947_v28 = vpop.permute.xlu1 %1946 }
 0x522   : > { %v1954_v35 = vsel %vm761_vm0, %v1939_v33, %v1947_v28  ;;  %v1958_v38 = vsel %vm761_vm0, %v1947_v28, %v1939_v33  ;;  %v4745_v4 = vpop.permute.xlu2 %1940 }
 0x523   : > { %v1968_v19 = vmul.f32 %v4735_v2, %v1954_v35  ;;  %v1969_v20 = vmul.f32 %v4737_v5, %v1958_v38 }
 0x525   : > { %v1976_v17 = vpack.c.bf16 %v1969_v20, %v1968_v19 }
 0x527   : > { %1980 = vst [vmem:[#allocation2 + $0xe0] sm:$0xff] %v1976_v17  ;;  %1668 = vrot.lane.b32.xlu0 %v4649_v10, %s3800_s25  ;;  %1714 = vrot.lane.b32.xlu1 %v4649_v10, %s3799_s16 }
 0x528   : > { %1852 = vrot.lane.b32.xlu2 %v4647_v25, %s3798_s15 }
 0x529   : > { %v1901_v62 = vpop.permute.xlu0 %1900  ;;  %v1755_v14 = vpop.permute.xlu1 %1754 }
 0x52a   : > { %v1908_v48 = vsel %vm713_vm3, %v1893_v46, %v1901_v62  ;;  %v1912_v54 = vsel %vm713_vm3, %v1901_v62, %v1893_v46  ;;  %v1762_v36 = vsel %vm561_vm4, %v1747_v6, %v1755_v14  ;;  %v1766_v3 = vsel %vm561_vm4, %v1755_v14, %v1747_v6  ;;  %v4771_v60 = vpop.permute.xlu2 %1748 }
 0x52b   : > { %v1922_v51 = vmul.f32 %v4753_v18, %v1908_v48  ;;  %v1923_v56 = vmul.f32 %v4755_v43, %v1912_v54  ;;  %v1776_v49 = vmul.f32 %v4757_v37, %v1766_v3  ;;  %v1777_v47 = vmul.f32 %v4759_v44, %v1762_v36 }
 0x52d   : > { %v1930_v57 = vpack.c.bf16 %v1923_v56, %v1922_v51  ;;  %v1784_v58 = vpack.c.bf16 %v1777_v47, %v1776_v49 }
 0x52f   : > { %1934 = vst [vmem:[#allocation2 + $0xc0] sm:$0xff] %v1930_v57  ;;  %1662 = vrot.lane.b32.xlu0 %v4619_v39, %s3800_s25  ;;  %1666 = vrot.lane.b32.xlu1 %v4607_v50, %s3800_s25  ;;  %v2075_v57 = vld [vmem:[%s5255_s6 + $0x8] sm:$0xff] }
 0x530   : > { %1788 = vst [vmem:[#allocation2 + $0x40] sm:$0xff] %v1784_v58  ;;  %1660 = vrot.lane.b32.xlu2 %v4647_v25, %s3800_s25 }
 0x531   : > { %v1709_v23 = vpop.permute.xlu0 %1708  ;;  %v1847_v53 = vpop.permute.xlu1 %1846 }
 0x532   : > { %v1716_v13 = vsel %vm513_vm6, %v4713_v11, %v1709_v23  ;;  %v1720_v52 = vsel %vm513_vm6, %v1709_v23, %v4713_v11  ;;  %v1862_v46 = vsel %vm665_vm5, %v1847_v53, %v1855_v27  ;;  %v1866_v16 = vsel %vm665_vm5, %v1855_v27, %v1847_v53  ;;  %v1903_v33 = vpop.permute.xlu2 %1902  ;;  %v2077_v53 = vld [vmem:[%s5255_s6 + $0x18] sm:$0xff] }
 0x533   : > { %v1730_v34 = vmul.f32 %v4781_v61, %v1720_v52  ;;  %v1731_v24 = vmul.f32 %v4783_v15, %v1716_v13  ;;  %v1876_v26 = vmul.f32 %v4785_v45, %v1862_v46  ;;  %v1877_v29 = vmul.f32 %v4787_v9, %v1866_v16 }
 0x535   : > { %v1738_v30 = vpack.c.bf16 %v1731_v24, %v1730_v34  ;;  %v1884_v0 = vpack.c.bf16 %v1877_v29, %v1876_v26  ;;  %v2076_v24 = vld [vmem:[%s5255_s6 + $0x10] sm:$0xff]  ;;  %v2074_v26 = vld [vmem:[%s5255_s6] sm:$0xff] }
 0x537   : > { %1742 = vst [vmem:[#allocation2 + $0x20] sm:$0xff] %v1738_v30  ;;  %1984 = vrot.lane.b32.xlu0 %v4616_v31, %s3794_s26  ;;  %1656 = vrot.lane.b32.xlu1 %v4584_v40, %s3800_s25 }
 0x538   : > { %1888 = vst [vmem:[#allocation2 + $0xa0] sm:$0xff] %v1884_v0  ;;  %1664 = vrot.lane.b32.xlu2 %v4586_v21, %s3800_s25 }
 0x539   : > { %v1803_v11 = vpop.permute.xlu1 %1802  ;;  %v1795_v27 = vpop.permute.xlu0 %1794 }
 0x53a   : > { %v1809_v1 = vsel %vm609_vm2, %v1795_v27, %v1803_v11  ;;  %v1813_v6 = vsel %vm609_vm2, %v1803_v11, %v1795_v27  ;;  %v1711_v28 = vpop.permute.xlu2 %1710 }
 0x53b   : > { %v1824_v35 = vmul.f32 %v4719_v59, %v1813_v6  ;;  %v1825_v31 = vmul.f32 %v4721_v22, %v1809_v1 }
 0x53d   : > { %v1831_v38 = vpack.c.bf16 %v1825_v31, %v1824_v35 }
 0x53f   : > { %1835 = vst [vmem:[#allocation2 + $0x68] sm:$0xff] %v1831_v38  ;;  %1990 = vrot.lane.b32.xlu0 %v4647_v25, %s3794_s26  ;;  %1988 = vrot.lane.b32.xlu1 %v4604_v63, %s3794_s26 }
 0x540   : > { %1996 = vrot.lane.b32.xlu2 %v4607_v50, %s3794_s26 }
 0x541   : > { %v1895_v19 = vpop.permute.xlu1 %1894  ;;  %v1949_v20 = vpop.permute.xlu0 %1948 }
 0x542   : > { %v1909_v42 = vsel %vm713_vm3, %v1895_v19, %v1903_v33  ;;  %v1913_v7 = vsel %vm713_vm3, %v1903_v33, %v1895_v19  ;;  %v1955_v17 = vsel %vm761_vm0, %v4745_v4, %v1949_v20  ;;  %v1959_v25 = vsel %vm761_vm0, %v1949_v20, %v4745_v4  ;;  %v1943_v63 = vpop.permute.xlu2 %1942 }
 0x543   : > { %v1924_v62 = vmul.f32 %v4753_v18, %v1909_v42  ;;  %v1925_v50 = vmul.f32 %v4755_v43, %v1913_v7  ;;  %v1970_v14 = vmul.f32 %v4735_v2, %v1955_v17  ;;  %v1971_v48 = vmul.f32 %v4737_v5, %v1959_v25 }
 0x545   : > { %v1931_v54 = vpack.c.bf16 %v1925_v50, %v1924_v62  ;;  %v1977_v36 = vpack.c.bf16 %v1971_v48, %v1970_v14 }
 0x547   : > { %1935 = vst [vmem:[#allocation2 + $0xc8] sm:$0xff] %v1931_v54  ;;  %1994 = vrot.lane.b32.xlu0 %v4586_v21, %s3794_s26  ;;  %1998 = vrot.lane.b32.xlu1 %v4649_v10, %s3794_s26 }
 0x548   : > { %1981 = vst [vmem:[#allocation2 + $0xe8] sm:$0xff] %v1977_v36  ;;  %1986 = vrot.lane.b32.xlu2 %v4584_v40, %s3794_s26 }
 0x549   : > { %v1703_v4 = vpop.permute.xlu1 %1702  ;;  %v1757_v3 = vpop.permute.xlu0 %1756 }
 0x54a   : > { %v1717_v51 = vsel %vm513_vm6, %v1703_v4, %v1711_v28  ;;  %v1721_v56 = vsel %vm513_vm6, %v1711_v28, %v1703_v4  ;;  %v1763_v49 = vsel %vm561_vm4, %v4771_v60, %v1757_v3  ;;  %v1767_v21 = vsel %vm561_vm4, %v1757_v3, %v4771_v60  ;;  %v1751_v10 = vpop.permute.xlu2 %1750 }
 0x54b   : > { %v1732_v47 = vmul.f32 %v4781_v61, %v1721_v56  ;;  %v1733_v40 = vmul.f32 %v4783_v15, %v1717_v51  ;;  %v1778_v55 = vmul.f32 %v4757_v37, %v1767_v21  ;;  %v1779_v41 = vmul.f32 %v4759_v44, %v1763_v49 }
 0x54d   : > { %v1739_v58 = vpack.c.bf16 %v1733_v40, %v1732_v47  ;;  %v1785_v23 = vpack.c.bf16 %v1779_v41, %v1778_v55 }
 0x54f   : > { %1743 = vst [vmem:[#allocation2 + $0x28] sm:$0xff] %v1739_v58  ;;  %2085 = vperm.xlu0 %3521, %v2075_v57   ;;  %1992 = vrot.lane.b32.xlu1 %v4619_v39, %s3794_s26 }
 0x550   : > { %1789 = vst [vmem:[#allocation2 + $0x48] sm:$0xff] %v1785_v23  ;;  %2095 = vperm.xlu2 %3522, %v2077_v53  }
 0x551   : > { %v1857_v60 = vpop.permute.xlu1 %1856  ;;  %v1849_v13 = vpop.permute.xlu0 %1848 }
 0x552   : > { %v1863_v52 = vsel %vm665_vm5, %v1849_v13, %v1857_v60  ;;  %v1867_v46 = vsel %vm665_vm5, %v1857_v60, %v1849_v13  ;;  %v1905_v16 = vpop.permute.xlu2 %1904 }
 0x553   : > { %v1878_v33 = vmul.f32 %v4785_v45, %v1863_v52  ;;  %v1879_v34 = vmul.f32 %v4787_v9, %v1867_v46 }
 0x555   : > { %v1885_v39 = vpack.c.bf16 %v1879_v34, %v1878_v33 }
 0x557   : > { %1889 = vst [vmem:[#allocation2 + $0xa8] sm:$0xff] %v1885_v39  ;;  %2090 = vperm.xlu1 %3523, %v2076_v24   ;;  %3525 = vset.pattern.permute.xlu0 %v3802_v32 }
 0x558   : > { %2080 = vperm.xlu2 %3522, %v2074_v26  }
 0x559   : > { %v1951_v29 = vpop.permute.xlu0 %1950  ;;  %v1797_v30 = vpop.permute.xlu1 %1796 }
 0x55a   : > { %v1956_v0 = vsel %vm761_vm0, %v1943_v63, %v1951_v29  ;;  %v1960_v11 = vsel %vm761_vm0, %v1951_v29, %v1943_v63  ;;  %v1713_v6 = vpop.permute.xlu2 %1712 }
 0x55b   : > { %v1972_v27 = vmul.f32 %v4735_v2, %v1956_v0  ;;  %v1973_v1 = vmul.f32 %v4737_v5, %v1960_v11 }
 0x55d   : > { %v1978_v28 = vpack.c.bf16 %v1973_v1, %v1972_v27 }
 0x55f   : > { %1982 = vst [vmem:[#allocation2 + $0xf0] sm:$0xff] %v1978_v28  ;;  %3526 = vset.pattern.permute.xlu1 %v3802_v32 }
 0x560   : > { %3524 = vset.pattern.permute.xlu2 %v3802_v32 }
 0x561   : > { %v1759_v35 = vpop.permute.xlu0 %1758  ;;  %v1805_v31 = vpop.permute.xlu1 %1804 }
 0x562   : > { %v1764_v38 = vsel %vm561_vm4, %v1751_v10, %v1759_v35  ;;  %v1768_v19 = vsel %vm561_vm4, %v1759_v35, %v1751_v10  ;;  %v1810_v20 = vsel %vm609_vm2, %v1797_v30, %v1805_v31  ;;  %v1814_v42 = vsel %vm609_vm2, %v1805_v31, %v1797_v30  ;;  %v1799_v50 = vpop.permute.xlu2 %1798 }
 0x563   : > { %v1780_v7 = vmul.f32 %v4757_v37, %v1768_v19  ;;  %v1781_v17 = vmul.f32 %v4759_v44, %v1764_v38  ;;  %v1826_v32 = vmul.f32 %v4719_v59, %v1814_v42  ;;  %v1827_v25 = vmul.f32 %v4721_v22, %v1810_v20  ;;  %v3402_v19 = vld [vmem:[#allocation2 + $0x64] sm:$0xf0]  ;;  %v3227_v20 = vld [vmem:[#allocation2 + $0x68] sm:$0xf0] }
 0x565   : > { %v1786_v63 = vpack.c.bf16 %v1781_v17, %v1780_v7  ;;  %v1832_v62 = vpack.c.bf16 %v1827_v25, %v1826_v32  ;;  %v3225_v17 = vld [vmem:[#allocation2 + $0x60] sm:$0xf]  ;;  %v3401_v32 = vld [vmem:[#allocation2 + $0x64] sm:$0xf] }
 0x567   : > { %1790 = vst [vmem:[#allocation2 + $0x50] sm:$0xff] %v1786_v63 }
 0x568   : > { %1836 = vst [vmem:[#allocation2 + $0x70] sm:$0xff] %v1832_v62  ;;  %v3226_v62 = vor.u32 %v3402_v19, %v3225_v17 }
 0x569   : > { %v1851_v14 = vpop.permute.xlu0 %1850  ;;  %v1897_v48 = vpop.permute.xlu1 %1896 }
 0x56a   : > { %v1910_v54 = vsel %vm713_vm3, %v1897_v48, %v1905_v16  ;;  %v1914_v36 = vsel %vm713_vm3, %v1905_v16, %v1897_v48  ;;  %v1953_v56 = vpop.permute.xlu2 %1952 }
 0x56b   : > { %v1926_v4 = vmul.f32 %v4753_v18, %v1910_v54  ;;  %v1927_v3 = vmul.f32 %v4755_v43, %v1914_v36  ;;  %v3297_v54 = vld [vmem:[#allocation2 + $0xf0] sm:$0xf] }
 0x56d   : > { %v1932_v51 = vpack.c.bf16 %v1927_v3, %v1926_v4  ;;  %v3418_v4 = vld [vmem:[#allocation2 + $0xe4] sm:$0xf0] }
 0x56f   : > { %1936 = vst [vmem:[#allocation2 + $0xd0] sm:$0xff] %v1932_v51  ;;  %v3233_v1 = vld [vmem:[#allocation2 + $0x70] sm:$0xf]  ;;  %v3403_v28 = vld [vmem:[#allocation2 + $0x74] sm:$0xf] }
 0x570   : > { %v3289_v51 = vld [vmem:[#allocation2 + $0xe0] sm:$0xf] }
 0x571   : > { %v4904_v49 = vpop.permute.xlu0 %1658  ;;  %v1705_v21 = vpop.permute.xlu1 %1704 }
 0x572   : > { %v1718_v10 = vsel %vm513_vm6, %v1705_v21, %v1713_v6  ;;  %v1722_v47 = vsel %vm513_vm6, %v1713_v6, %v1705_v21  ;;  %v1761_v23 = vpop.permute.xlu2 %1760 }
 0x573   : > { %v1734_v40 = vmul.f32 %v4781_v61, %v1722_v47  ;;  %v1735_v55 = vmul.f32 %v4783_v15, %v1718_v10  ;;  %v3290_v10 = vor.u32 %v3418_v4, %v3289_v51 }
 0x575   : > { %v1740_v41 = vpack.c.bf16 %v1735_v55, %v1734_v40 }
 0x577   : > { %1744 = vst [vmem:[#allocation2 + $0x30] sm:$0xff] %v1740_v41 }
 0x579   : > { %v1807_v57 = vpop.permute.xlu0 %1806  ;;  %v1859_v58 = vpop.permute.xlu1 %1858 }
 0x57a   : > { %v1811_v53 = vsel %vm609_vm2, %v1799_v50, %v1807_v57  ;;  %v1815_v60 = vsel %vm609_vm2, %v1807_v57, %v1799_v50  ;;  %v1864_v13 = vsel %vm665_vm5, %v1851_v14, %v1859_v58  ;;  %v1868_v52 = vsel %vm665_vm5, %v1859_v58, %v1851_v14  ;;  %v4930_v11 = vpop.permute.xlu2 %1654 }
 0x57b   : > { %v1828_v46 = vmul.f32 %v4719_v59, %v1815_v60  ;;  %v1829_v16 = vmul.f32 %v4721_v22, %v1811_v53  ;;  %v1880_v33 = vmul.f32 %v4785_v45, %v1864_v13  ;;  %v1881_v34 = vmul.f32 %v4787_v9, %v1868_v52  ;;  %v3217_v13 = vld [vmem:[#allocation2 + $0x50] sm:$0xf]  ;;  %v3398_v52 = vld [vmem:[#allocation2 + $0x44] sm:$0xf0] }
 0x57c   : > { %v3230_v50 = vor.u32 %v3401_v32, %v3227_v20 }
 0x57d   : > { %v1833_v24 = vpack.c.bf16 %v1829_v16, %v1828_v46  ;;  %v1886_v39 = vpack.c.bf16 %v1881_v34, %v1880_v33  ;;  %v3211_v46 = vld [vmem:[#allocation2 + $0x48] sm:$0xf0]  ;;  %v3399_v33 = vld [vmem:[#allocation2 + $0x54] sm:$0xf] }
 0x57f   : > { %1837 = vst [vmem:[#allocation2 + $0x78] sm:$0xff] %v1833_v24 }
 0x580   : > { %1890 = vst [vmem:[#allocation2 + $0xb0] sm:$0xff] %v1886_v39 }
 0x581   : > { %v1899_v26 = vpop.permute.xlu0 %1898  ;;  %v1945_v29 = vpop.permute.xlu1 %1944 }
 0x582   : > { %v1957_v30 = vsel %vm761_vm0, %v1945_v29, %v1953_v56  ;;  %v1961_v0 = vsel %vm761_vm0, %v1953_v56, %v1945_v29  ;;  %v1853_v48 = vpop.permute.xlu2 %1852  ;;  %vm5283_vm0 = vcmask 261120  }
 0x583   : > { %v1974_v59 = vmul.f32 %v4735_v2, %v1957_v30  ;;  %v1975_v22 = vmul.f32 %v4737_v5, %v1961_v0  ;;  %vm5285_vm2 = vmmov %vm5283_vm0 }
 0x584   : > { %vm5291_vm9 = vmmov %vm5283_vm0 }
 0x585   : > { %v1979_v27 = vpack.c.bf16 %v1975_v22, %v1974_v59  ;;  %vm5292_vm7 = vmmov %vm5283_vm0 }
 0x586   : > { %v3404_v6 = vld [vmem:[#allocation2 + $0x74] sm:$0xf0]  ;;  %v3235_v35 = vld [vmem:[#allocation2 + $0x78] sm:$0xf0]  ;;  %vm5293_vm10 = vmmov %vm5283_vm0 }
 0x587   : > { %1983 = vst [vmem:[#allocation2 + $0xf8] sm:$0xff] %v1979_v27  ;;  %v3234_v31 = vor.u32 %v3404_v6, %v3233_v1  ;;  %v3238_v38 = vor.u32 %v3403_v28, %v3235_v35  ;;  %vm5294_vm11 = vmmov %vm5283_vm0 }
 0x589   : > { %v4932_v42 = vpop.permute.xlu0 %1706  ;;  %v1753_v7 = vpop.permute.xlu1 %1752  ;;  %2314 = vmatpush.bf16.msrb.mxu3 %v3234_v31  ;;  %2371 = vmatpush.bf16.msrb.mxu1 %v3238_v38 }
 0x58a   : > { %v1765_v2 = vsel %vm561_vm4, %v1753_v7, %v1761_v23  ;;  %v1769_v5 = vsel %vm561_vm4, %v1761_v23, %v1753_v7  ;;  %v1678_v23 = vld [vmem:[#allocation8] ss:$8 sm:$0x3]  ;;  %vm5287_vm4 = vcmask 7168  }
 0x58b   : > { %v1782_v25 = vmul.f32 %v4757_v37, %v1769_v5  ;;  %v1783_v63 = vmul.f32 %v4759_v44, %v1765_v2  ;;  %v4952_v24 = vperm.slane %v1678_v23, 0  ;;  %v3281_v7 = vld [vmem:[#allocation2 + $0xd0] sm:$0xf] }
 0x58d   : > { %v1787_v14 = vpack.c.bf16 %v1783_v63, %v1782_v25  ;;  %2315 = vmatpush.bf16.msrb.mxu3 %v3226_v62  ;;  %2372 = vmatpush.bf16.msrb.mxu1 %v3230_v50 }
 0x58e   : > { %v3420_v36 = vld [vmem:[#allocation2 + $0xf4] sm:$0xf0] }
 0x58f   : > { %1791 = vst [vmem:[#allocation2 + $0x58] sm:$0xff] %v1787_v14  ;;  %v3298_v3 = vor.u32 %v3420_v36, %v3297_v54  ;;  %v3273_v54 = vld [vmem:[#allocation2 + $0xc0] sm:$0xf] }
 0x591   : > { %v1861_v56 = vpop.permute.xlu0 %1860  ;;  %v1907_v21 = vpop.permute.xlu1 %1906  ;;  %2333 = vmatpush.bf16.msra.mxu2 %v3298_v3 }
 0x592   : > { %v1865_v37 = vsel %vm665_vm5, %v1853_v48, %v1861_v56  ;;  %v1869_v44 = vsel %vm665_vm5, %v1861_v56, %v1853_v48  ;;  %v1911_v47 = vsel %vm713_vm3, %v1899_v26, %v1907_v21  ;;  %v1915_v40 = vsel %vm713_vm3, %v1907_v21, %v1899_v26  ;;  %v3397_v26 = vld [vmem:[#allocation2 + $0x44] sm:$0xf]  ;;  %v3201_v56 = vld [vmem:[#allocation2 + $0x30] sm:$0xf]  ;;  %vm5286_vm3 = vmmov %vm5283_vm0 }
 0x593   : > { %v1882_v55 = vmul.f32 %v4785_v45, %v1865_v37  ;;  %v1883_v41 = vmul.f32 %v4787_v9, %v1869_v44  ;;  %v1928_v57 = vmul.f32 %v4753_v18, %v1911_v47  ;;  %v1929_v58 = vmul.f32 %v4755_v43, %v1915_v40  ;;  %v1661_v18 = vpop.permute.xlu2 %1660  ;;  %v3209_v43 = vld [vmem:[#allocation2 + $0x40] sm:$0xf]  ;;  %v3265_v21 = vld [vmem:[#allocation2 + $0xb0] sm:$0xf]  ;;  %vm5288_vm5 = vmmov %vm5287_vm4 }
 0x594   : > { %v4954_v45 = vperm.slane %v1678_v23, 1  ;;  %v3210_v0 = vor.u32 %v3398_v52, %v3209_v43  ;;  %v3214_v59 = vor.u32 %v3397_v26, %v3211_v46  ;;  %v3249_v26 = vld [vmem:[#allocation2 + $0x90] sm:$0xf] }
 0x595   : > { %v1887_v53 = vpack.c.bf16 %v1883_v41, %v1882_v55  ;;  %v1933_v60 = vpack.c.bf16 %v1929_v58, %v1928_v57  ;;  %2334 = vmatpush.bf16.msra.mxu2 %v3290_v10  ;;  %v3395_v10 = vld [vmem:[#allocation2 + $0x34] sm:$0xf]  ;;  %v3394_v57 = vld [vmem:[#allocation2 + $0x24] sm:$0xf0] }
 0x596   : > { %v3400_v16 = vld [vmem:[#allocation2 + $0x54] sm:$0xf0]  ;;  %v3219_v34 = vld [vmem:[#allocation2 + $0x58] sm:$0xf0]  ;;  %v3410_v58 = vld [vmem:[#allocation2 + $0xa4] sm:$0xf0] }
 0x597   : > { %1891 = vst [vmem:[#allocation2 + $0xb8] sm:$0xff] %v1887_v53  ;;  %v3218_v9 = vor.u32 %v3400_v16, %v3217_v13  ;;  %v3222_v39 = vor.u32 %v3399_v33, %v3219_v34  ;;  %v3195_v13 = vld [vmem:[#allocation2 + $0x28] sm:$0xf0]  ;;  %v3257_v16 = vld [vmem:[#allocation2 + $0xa0] sm:$0xf] }
 0x598   : > { %1937 = vst [vmem:[#allocation2 + $0xd8] sm:$0xff] %v1933_v60  ;;  %v3193_v60 = vld [vmem:[#allocation2 + $0x20] sm:$0xf] }
 0x599   : > { %v1669_v29 = vpop.permute.xlu0 %1668  ;;  %v1715_v30 = vpop.permute.xlu1 %1714  ;;  %2316 = vmatpush.bf16.msrb.mxu3 %v3218_v9  ;;  %2373 = vmatpush.bf16.msrb.mxu1 %v3222_v39  ;;  %v2008_v33 = vld [vmem:[#allocation8 + $0x10] ss:$8 sm:$0x3]  ;;  %v3194_v34 = vor.u32 %v3394_v57, %v3193_v60  ;;  %v3258_v9 = vor.u32 %v3410_v58, %v3257_v16  ;;  %v3393_v39 = vld [vmem:[#allocation2 + $0x24] sm:$0xf] }
 0x59a   : > { %v1673_v22 = vsel %vm466_vm8, %v1661_v18, %v1669_v29  ;;  %v1677_v27 = vsel %vm466_vm8, %v1669_v29, %v1661_v18  ;;  %v1719_v1 = vsel %vm513_vm6, %v4932_v42, %v1715_v30  ;;  %v1723_v6 = vsel %vm513_vm6, %v1715_v30, %v4932_v42  ;;  %v3414_v42 = vld [vmem:[#allocation2 + $0xc4] sm:$0xf0]  ;;  %v3408_v29 = vld [vmem:[#allocation2 + $0x94] sm:$0xf0]  ;;  %v3415_v16 = vld [vmem:[#allocation2 + $0xd4] sm:$0xf] }
 0x59b   : > { %v1690_v28 = vmul.f32 %v4952_v24, %v1677_v27  ;;  %v1691_v35 = vmul.f32 %v4954_v45, %v1673_v22  ;;  %v1736_v31 = vmul.f32 %v4781_v61, %v1723_v6  ;;  %v1737_v38 = vmul.f32 %v4783_v15, %v1719_v1  ;;  %v1665_v36 = vpop.permute.xlu2 %1664  ;;  %vm5289_vm6 = vmmov %vm5287_vm4 }
 0x59c   : > { %v3198_v43 = vor.u32 %v3393_v39, %v3195_v13  ;;  %v3250_v6 = vor.u32 %v3408_v29, %v3249_v26  ;;  %v3167_v26 = vld [vmem:[#allocation3 + $0x24] sm:$0xf0] }
 0x59d   : > { %v1695_v19 = vpack.c.bf16 %v1691_v35, %v1690_v28  ;;  %v1741_v20 = vpack.c.bf16 %v1737_v38, %v1736_v31  ;;  %2317 = vmatpush.bf16.msrb.mxu3 %v3210_v0  ;;  %2374 = vmatpush.bf16.msrb.mxu1 %v3214_v59  ;;  %v4994_v0 = vperm.slane %v2008_v33, 0  ;;  %v3241_v38 = vld [vmem:[#allocation2 + $0x80] sm:$0xf] }
 0x59e   : > { %v3412_v51 = vld [vmem:[#allocation2 + $0xb4] sm:$0xf0] }
 0x59f   : > { %1699 = vst [vmem:[#allocation2 + $0x18] sm:$0xff] %v1695_v19  ;;  %v3416_v2 = vld [vmem:[#allocation2 + $0xd4] sm:$0xf0]  ;;  %v3266_v47 = vor.u32 %v3412_v51, %v3265_v21 }
 0x5a0   : > { %1745 = vst [vmem:[#allocation2 + $0x38] sm:$0xff] %v1741_v20  ;;  %v3282_v5 = vor.u32 %v3416_v2, %v3281_v7  ;;  %v3383_v7 = vld [vmem:[#allocation3 + $0x4] sm:$0xf]  ;;  %v3155_v2 = vld [vmem:[#allocation3 + $0xc] sm:$0xf0] }
 0x5a1   : > { %v1663_v17 = vpop.permute.xlu0 %1662  ;;  %v1667_v32 = vpop.permute.xlu1 %1666 }
 0x5a2   : > { %v1670_v25 = vsel %vm466_vm8, %v4930_v11, %v1663_v17  ;;  %v1674_v61 = vsel %vm466_vm8, %v1663_v17, %v4930_v11  ;;  %v1672_v15 = vsel %vm466_vm8, %v4904_v49, %v1667_v32  ;;  %v1676_v63 = vsel %vm466_vm8, %v1667_v32, %v4904_v49  ;;  %2335 = vmatpush.bf16.msra.mxu2 %v3282_v5  ;;  %v3406_v32 = vld [vmem:[#allocation2 + $0x84] sm:$0xf0] }
 0x5a3   : > { %v1684_v62 = vmul.f32 %v4952_v24, %v1674_v61  ;;  %v1685_v50 = vmul.f32 %v4954_v45, %v1670_v25  ;;  %v1688_v14 = vmul.f32 %v4952_v24, %v1676_v63  ;;  %v1689_v48 = vmul.f32 %v4954_v45, %v1672_v15  ;;  %v1997_v30 = vpop.permute.xlu2 %1996  ;;  %v3299_v25 = vld [vmem:[#allocation2 + $0xf8] sm:$0xf0] }
 0x5a4   : > { %v3274_v11 = vor.u32 %v3414_v42, %v3273_v54  ;;  %v3242_v42 = vor.u32 %v3406_v32, %v3241_v38  ;;  %v5004_v15 = vor.u32 %v3383_v7, %v3155_v2  ;;  %v3259_v7 = vld [vmem:[#allocation2 + $0xa8] sm:$0xf0]  ;;  %v3409_v2 = vld [vmem:[#allocation2 + $0xa4] sm:$0xf] }
 0x5a5   : > { %v1692_v4 = vpack.c.bf16 %v1685_v50, %v1684_v62  ;;  %v1694_v3 = vpack.c.bf16 %v1689_v48, %v1688_v14  ;;  %v3153_v62 = vld [vmem:[#allocation3] sm:$0xf]  ;;  %v3384_v50 = vld [vmem:[#allocation3 + $0x8] sm:$0xf0] }
 0x5a6   : > { %2336 = vmatpush.bf16.msra.mxu2 %v3274_v11  ;;  %v3392_v59 = vld [vmem:[#allocation2 + $0x14] sm:$0xf0]  ;;  %v3187_v22 = vld [vmem:[#allocation2 + $0x18] sm:$0xf0]  ;;  %v3154_v51 = vor.u32 %v3384_v50, %v3153_v62 }
 0x5a7   : > { %1696 = vst [vmem:[#allocation2] sm:$0xff] %v1692_v4  ;;  %v3396_v49 = vld [vmem:[#allocation2 + $0x34] sm:$0xf0]  ;;  %v3203_v37 = vld [vmem:[#allocation2 + $0x38] sm:$0xf0] }
 0x5a8   : > { %1698 = vst [vmem:[#allocation2 + $0x10] sm:$0xff] %v1694_v3  ;;  %v3202_v44 = vor.u32 %v3396_v49, %v3201_v56  ;;  %v3206_v40 = vor.u32 %v3395_v10, %v3203_v37  ;;  %v3419_v3 = vld [vmem:[#allocation2 + $0xf4] sm:$0xf] }
 0x5a9   : > { %v4986_v55 = vpop.permute.xlu0 %1984  ;;  %v1657_v41 = vpop.permute.xlu1 %1656  ;;  %v3302_v10 = vor.u32 %v3419_v3, %v3299_v25  ;;  %v3385_v25 = vld [vmem:[#allocation3 + $0x10] sm:$0xf0] }
 0x5aa   : > { %v1671_v23 = vsel %vm466_vm8, %v1657_v41, %v1665_v36  ;;  %v1675_v53 = vsel %vm466_vm8, %v1665_v36, %v1657_v41  ;;  %2318 = vmatpush.bf16.msrb.mxu3 %v3202_v44  ;;  %2337 = vmatpush.bf16.msra.mxu2 %v3266_v47  ;;  %vm5290_vm8 = vmmov %vm5287_vm4 }
 0x5ab   : > { %v1686_v52 = vmul.f32 %v4952_v24, %v1675_v53  ;;  %v1687_v46 = vmul.f32 %v4954_v45, %v1671_v23  ;;  %2375 = vmatpush.bf16.msrb.mxu1 %v3206_v40  ;;  %v4996_v24 = vperm.slane %v2008_v33, 1  ;;  %v1987_v4 = vpop.permute.xlu2 %1986  ;;  %v3291_v40 = vld [vmem:[#allocation2 + $0xe8] sm:$0xf0]  ;;  %v3417_v53 = vld [vmem:[#allocation2 + $0xe4] sm:$0xf] }
 0x5ad   : > { %v1693_v18 = vpack.c.bf16 %v1687_v46, %v1686_v52  ;;  %v3294_v52 = vor.u32 %v3417_v53, %v3291_v40  ;;  %v3283_v46 = vld [vmem:[#allocation2 + $0xd8] sm:$0xf0] }
 0x5ae   : > { %2319 = vmatpush.bf16.msrb.mxu3 %v3194_v34  ;;  %2338 = vmatpush.bf16.msra.mxu2 %v3258_v9  ;;  %v3177_v63 = vld [vmem:[#allocation2] sm:$0xf]  ;;  %v3389_v48 = vld [vmem:[#allocation2 + $0x4] sm:$0xf]  ;;  %v3286_v34 = vor.u32 %v3415_v16, %v3283_v46 }
 0x5af   : > { %1697 = vst [vmem:[#allocation2 + $0x8] sm:$0xff] %v1693_v18  ;;  %2376 = vmatpush.bf16.msrb.mxu1 %v3198_v43  ;;  %v3185_v45 = vld [vmem:[#allocation2 + $0x10] sm:$0xf]  ;;  %v3391_v27 = vld [vmem:[#allocation2 + $0x14] sm:$0xf] }
 0x5b0   : > { %v3186_v1 = vor.u32 %v3392_v59, %v3185_v45  ;;  %v3190_v28 = vor.u32 %v3391_v27, %v3187_v22  ;;  %v3275_v18 = vld [vmem:[#allocation2 + $0xc8] sm:$0xf0]  ;;  %v3386_v43 = vld [vmem:[#allocation3 + $0x1c] sm:$0xf]  ;;  %v3413_v59 = vld [vmem:[#allocation2 + $0xc4] sm:$0xf] }
 0x5b1   : > { %v1991_v35 = vpop.permute.xlu0 %1990  ;;  %v1989_v31 = vpop.permute.xlu1 %1988  ;;  %v3278_v45 = vor.u32 %v3413_v59, %v3275_v18  ;;  %v3170_v27 = vor.u32 %v3386_v43, %v3167_v26 }
 0x5b2   : > { %v2002_v19 = vsel %vm809_vm1, %v1989_v31, %v1997_v30  ;;  %v2006_v20 = vsel %vm809_vm1, %v1997_v30, %v1989_v31  ;;  %2320 = vmatpush.bf16.msrb.mxu3 %v3186_v1  ;;  %2339 = vmatpush.bf16.msra.mxu2 %v3250_v6  ;;  %v3165_v1 = vld [vmem:[#allocation3 + $0x18] sm:$0xf]  ;;  %v3387_v6 = vld [vmem:[#allocation3 + $0x20] sm:$0xf0]  ;;  %v3267_v31 = vld [vmem:[#allocation2 + $0xb8] sm:$0xf0] }
 0x5b3   : > { %v2018_v5 = vmul.f32 %v4994_v0, %v2002_v19  ;;  %v2019_v17 = vmul.f32 %v4996_v24, %v2006_v20  ;;  %2377 = vmatpush.bf16.msrb.mxu1 %v3190_v28  ;;  %v3411_v20 = vld [vmem:[#allocation2 + $0xb4] sm:$0xf] }
 0x5b5   : > { %v2024_v61 = vpack.c.bf16 %v2019_v17, %v2018_v5  ;;  %v3251_v5 = vld [vmem:[#allocation2 + $0x98] sm:$0xf0]  ;;  %v3262_v17 = vor.u32 %v3409_v2, %v3259_v7 }
 0x5b6   : > { %2340 = vmatpush.bf16.msra.mxu2 %v3242_v42  ;;  %v3390_v14 = vld [vmem:[#allocation2 + $0x4] sm:$0xf0]  ;;  %v3179_v54 = vld [vmem:[#allocation2 + $0x8] sm:$0xf0] }
 0x5b7   : > { %2028 = vst [vmem:[#allocation2 + $0x110] sm:$0xff] %v2024_v61  ;;  %v3178_v36 = vor.u32 %v3390_v14, %v3177_v63  ;;  %v3182_v11 = vor.u32 %v3389_v48, %v3179_v54  ;;  %v3161_v42 = vld [vmem:[#allocation3 + $0x8] sm:$0xf]  ;;  %v3407_v48 = vld [vmem:[#allocation2 + $0x94] sm:$0xf] }
 0x5b8   : > { %v3162_v54 = vor.u32 %v3385_v25, %v3161_v42 }
 0x5b9   : > { %2341 = vmatmul.bf16.vlgmr.msra.gmra.mxu2 %v5004_v15  ;;  %v1995_v56 = vpop.permute.xlu0 %1994  ;;  %v1999_v21 = vpop.permute.xlu1 %1998  ;;  %2321 = vmatpush.bf16.msrb.mxu3 %v3178_v36  ;;  %v3254_v36 = vor.u32 %v3407_v48, %v3251_v5 }
 0x5ba   : > { %v2001_v49 = vsel %vm809_vm1, %v1987_v4, %v1995_v56  ;;  %v2005_v37 = vsel %vm809_vm1, %v1995_v56, %v1987_v4  ;;  %v2003_v44 = vsel %vm809_vm1, %v1991_v35, %v1999_v21  ;;  %v2007_v47 = vsel %vm809_vm1, %v1999_v21, %v1991_v35  ;;  %2378 = vmatpush.bf16.msrb.mxu1 %v3182_v11  ;;  %v3405_v11 = vld [vmem:[#allocation2 + $0x84] sm:$0xf]  ;;  %v3243_v4 = vld [vmem:[#allocation2 + $0x88] sm:$0xf0] }
 0x5bb   : > { %v2016_v41 = vmul.f32 %v4994_v0, %v2001_v49  ;;  %v2017_v57 = vmul.f32 %v4996_v24, %v2005_v37  ;;  %v2020_v58 = vmul.f32 %v4994_v0, %v2003_v44  ;;  %v2021_v23 = vmul.f32 %v4996_v24, %v2007_v47  ;;  %v3388_v56 = vld [vmem:[#allocation3 + $0x28] sm:$0xf0] }
 0x5bc   : > { %2322 = vmatmul.bf16.vlgmr.msrb.gmra.mxu3 %v3154_v51  ;;  %v3246_v3 = vor.u32 %v3405_v11, %v3243_v4 }
 0x5bd   : > { %2390 = vmatpush.bf16.msra.mxu3 %v3302_v10  ;;  %v2023_v60 = vpack.c.bf16 %v2017_v57, %v2016_v41  ;;  %v2025_v13 = vpack.c.bf16 %v2021_v23, %v2020_v58  ;;  %2379 = vmatmul.bf16.vlgmr.msrb.gmra.mxu1 %v3154_v51  ;;  %v3173_v51 = vld [vmem:[#allocation3 + $0x20] sm:$0xf] }
 0x5be   : > { %v3313_v28 = vld [vmem:[#allocation2 + $0x110] sm:$0xf]  ;;  %v3423_v35 = vld [vmem:[#allocation2 + $0x114] sm:$0xf]  ;;  %v3174_v21 = vor.u32 %v3388_v56, %v3173_v51 }
 0x5bf   : > { %2027 = vst [vmem:[#allocation2 + $0x108] sm:$0xff] %v2023_v60 }
 0x5c0   : > { %2029 = vst [vmem:[#allocation2 + $0x118] sm:$0xff] %v2025_v13 }
 0x5c1   : > { %2391 = vmatpush.bf16.msra.mxu3 %v3294_v52  ;;  %v1993_v33 = vpop.permute.xlu1 %1992  ;;  %v2086_v52 = vpop.permute.xlu0 %2085 }
 0x5c2   : > { %v2000_v9 = vsel %vm809_vm1, %v4986_v55, %v1993_v33  ;;  %v2004_v39 = vsel %vm809_vm1, %v1993_v33, %v4986_v55  ;;  %vm5284_vm1 = vmmov %vm5283_vm0 }
 0x5c3   : > { %v2014_v29 = vmul.f32 %v4994_v0, %v2000_v9  ;;  %v2015_v30 = vmul.f32 %v4996_v24, %v2004_v39  ;;  %v3166_v0 = vor.u32 %v3387_v6, %v3165_v1  ;;  %v3270_v24 = vor.u32 %v3411_v20, %v3267_v31 }
 0x5c5   : > { %2392 = vmatpush.bf16.msra.mxu3 %v3286_v34  ;;  %v2022_v22 = vpack.c.bf16 %v2015_v30, %v2014_v29 }
 0x5c6   : > { %v3422_v32 = vld [vmem:[#allocation2 + $0x104] sm:$0xf0]  ;;  %v3307_v62 = vld [vmem:[#allocation2 + $0x108] sm:$0xf0] }
 0x5c7   : > { %2026 = vst [vmem:[#allocation2 + $0x100] sm:$0xff] %v2022_v22  ;;  %v3424_v12 = vld [vmem:[#allocation2 + $0x114] sm:$0xf0]  ;;  %v3315_v55 = vld [vmem:[#allocation2 + $0x118] sm:$0xf0] }
 0x5c8   : > { %v3314_v38 = vor.u32 %v3424_v12, %v3313_v28  ;;  %v3318_v19 = vor.u32 %v3423_v35, %v3315_v55 }
 0x5c9   : > { %2393 = vmatpush.bf16.msra.mxu3 %v3278_v45  ;;  %2346 = vmatmul.bf16.gmra.mxu2 %v3170_v27  ;;  %v2091_v18 = vpop.permute.xlu1 %2090  ;;  %v2096_v45 = vpop.permute.xlu2 %2095 }
 0x5ca   : > { %2358 = vmatpush.bf16.msra.mxu0 %v3314_v38  ;;  %2415 = vmatpush.bf16.msrb.mxu2 %v3318_v19 }
 0x5cc   : > { %2327 = vmatmul.bf16.gmra.mxu3 %v3166_v0 }
 0x5cd   : > { %2394 = vmatpush.bf16.msra.mxu3 %v3270_v24  ;;  %2384 = vmatmul.bf16.gmra.mxu1 %v3166_v0 }
 0x5ce   : > { %v3305_v61 = vld [vmem:[#allocation2 + $0x100] sm:$0xf]  ;;  %v3421_v63 = vld [vmem:[#allocation2 + $0x104] sm:$0xf] }
 0x5cf   : > { %v3306_v50 = vor.u32 %v3422_v32, %v3305_v61  ;;  %v3310_v14 = vor.u32 %v3421_v63, %v3307_v62 }
 0x5d1   : > { %2395 = vmatpush.bf16.msra.mxu3 %v3262_v17  ;;  %2359 = vmatpush.bf16.msra.mxu0 %v3306_v50  ;;  %v2081_v17 = vpop.permute.xlu2 %2080 }
 0x5d2   : > { %2416 = vmatpush.bf16.msrb.mxu2 %v3310_v14 }
 0x5d4   : > { %3319 = vmatmul.msk.bf16.vlgmr.msra.gmra.mxu0 %vm5283_vm0, %v3162_v54 }
 0x5d5   : > { %2396 = vmatpush.bf16.msra.mxu3 %v3254_v36 }
 0x5d9   : > { %2397 = vmatpush.bf16.msra.mxu3 %v3246_v3  ;;  %3321 = vmatmul.msk.bf16.vlgmr.msrb.gmra.mxu2 %vm5284_vm1, %v3162_v54 }
 0x5dc   : > { %2398 = vmatmul.bf16.vlgmr.msra.gmra.mxu3 %v5004_v15 }
 0x5e4   : > { %3320 = vmatmul.msk.bf16.gmra.mxu0 %vm5285_vm2, %v3174_v21 }
 0x5e9   : > { %3322 = vmatmul.msk.bf16.gmra.mxu2 %vm5286_vm3, %v3174_v21 }
 0x5ec   : > { %2403 = vmatmul.bf16.gmra.mxu3 %v3170_v27 }
 0x63a   : > { %v2380_v57 = vpop.f32.mrf.mxu1 }
 0x63b   : > { %v2381_v42 = vadd.f32 %v2380_v57, %v2081_v17 }
 0x63c   : > { %v2342_v10 = vpop.f32.mrf.mxu2 }
 0x63f   : > { %v2323_v49 = vpop.f32.mrf.mxu3 }
 0x640   : > { %v2324_v50 = vadd.f32 %v2323_v49, %v2081_v17 }
 0x642   : > { %v2382_v15 = vpop.f32.mrf.mxu1  ;;  %v2343_v3 = vadd.f32 %v2342_v10, %v2324_v50 }
 0x643   : > { %v2383_v33 = vadd.f32 %v2382_v15, %v2086_v52 }
 0x644   : > { %v2344_v37 = vpop.f32.mrf.mxu2 }
 0x647   : > { %v2325_v44 = vpop.f32.mrf.mxu3 }
 0x648   : > { %v2326_v46 = vadd.f32 %v2325_v44, %v2086_v52 }
 0x64a   : > { %v2345_v9 = vadd.f32 %v2344_v37, %v2326_v46  ;;  %v2385_v43 = vpop.f32.mrf.mxu1 }
 0x64b   : > { %v2386_v27 = vadd.f32 %v2385_v43, %v2091_v18 }
 0x64c   : > { %v2347_v47 = vpop.f32.mrf.mxu2 }
 0x64f   : > { %v2328_v40 = vpop.f32.mrf.mxu3 }
 0x650   : > { %v2329_v26 = vadd.f32 %v2328_v40, %v2091_v18 }
 0x651   : > { %v2361_v58 = vpop.f32.mrf.mxu0 }
 0x652   : > { %v2348_v1 = vadd.f32 %v2347_v47, %v2329_v26  ;;  %v2387_v38 = vpop.f32.mrf.mxu1  ;;  %v5064_v49 = vadd.f32 %v2361_v58, %v2343_v3 }
 0x653   : > { %v2388_v7 = vadd.f32 %v2387_v38, %v2096_v45 }
 0x654   : > { %v2349_v41 = vpop.f32.mrf.mxu2  ;;  %v2448_v44 = vmul.f32 %v5064_v49, %v5064_v49 }
 0x657   : > { %v2330_v23 = vpop.f32.mrf.mxu3 }
 0x658   : > { %v2331_v12 = vadd.f32 %v2330_v23, %v2096_v45  ;;  %v2429_v45 = vld [vmem:[%s5256_s7 + $0x8] sm:$0xff] }
 0x659   : > { %v2363_v13 = vpop.f32.mrf.mxu0 }
 0x65a   : > { %v5032_v29 = vadd.f32 %v2363_v13, %v2345_v9  ;;  %v2350_v2 = vadd.f32 %v2349_v41, %v2331_v12  ;;  %v3612_v9 = vld [vmem:[#allocation6 + $0x10] sm:$0xff]  ;;  %v2430_v12 = vld [vmem:[%s5256_s7 + $0x10] sm:$0xff] }
 0x65c   : > { %v2418_v53 = vpop.f32.mrf.mxu2  ;;  %v2450_v14 = vmul.f32 %v5032_v29, %v5032_v29 }
 0x65f   : > { %v2399_v60 = vpop.f32.mrf.mxu3 }
 0x660   : > { %v2400_v48 = vadd.f32 %v2399_v60, %v2381_v42 }
 0x661   : > { %v2366_v59 = vpop.f32.mrf.mxu0 }
 0x662   : > { %v5038_v35 = vadd.f32 %v2366_v59, %v2348_v1  ;;  %v5060_v51 = vadd.f32 %v2418_v53, %v2400_v48 }
 0x664   : > { %v2420_v16 = vpop.f32.mrf.mxu2  ;;  %v2452_v19 = vmul.f32 %v5038_v35, %v5038_v35  ;;  %v2449_v37 = vmul.f32 %v5060_v51, %v5060_v51  ;;  %v2436_v10 = vadd.f32 %v5060_v51, %v5064_v49 }
 0x666   : > { %v2456_v47 = vadd.f32 %v2449_v37, %v2448_v44 }
 0x667   : > { %v2401_v34 = vpop.f32.mrf.mxu3 }
 0x668   : > { %v2402_v39 = vadd.f32 %v2401_v34, %v2383_v33  ;;  %v3610_v33 = vld [vmem:[#allocation6] sm:$0xff]  ;;  %v3611_v34 = vld [vmem:[#allocation6 + $0x8] sm:$0xff] }
 0x669   : > { %v2368_v24 = vpop.f32.mrf.mxu0 }
 0x66a   : > { %v5034_v30 = vadd.f32 %v2420_v16, %v2402_v39  ;;  %v5048_v25 = vadd.f32 %v2368_v24, %v2350_v2  ;;  %v3613_v39 = vld [vmem:[#allocation6 + $0x18] sm:$0xff] }
 0x66c   : > { %v2439_v22 = vadd.f32 %v5034_v30, %v5032_v29  ;;  %v2423_v6 = vpop.f32.mrf.mxu2  ;;  %v2451_v63 = vmul.f32 %v5034_v30, %v5034_v30  ;;  %v2454_v36 = vmul.f32 %v5048_v25, %v5048_v25 }
 0x66e   : > { %2440 = vadd.xlane.f32.xlu0 %v2439_v22  ;;  %v2459_v11 = vadd.f32 %v2451_v63, %v2450_v14 }
 0x66f   : > { %v2404_v28 = vpop.f32.mrf.mxu3 }
 0x670   : > { %v2405_v31 = vadd.f32 %v2404_v28, %v2386_v27 }
 0x672   : > { %v5040_v55 = vadd.f32 %v2423_v6, %v2405_v31  ;;  %v2428_v6 = vld [vmem:[%s5256_s7] sm:$0xff]  ;;  %v2431_v31 = vld [vmem:[%s5256_s7 + $0x18] sm:$0xff] }
 0x674   : > { %v2442_v20 = vadd.f32 %v5040_v55, %v5038_v35  ;;  %v2453_v0 = vmul.f32 %v5040_v55, %v5040_v55  ;;  %v2425_v62 = vpop.f32.mrf.mxu2 }
 0x676   : > { %2443 = vadd.xlane.f32.xlu2 %v2442_v20  ;;  %v2462_v5 = vadd.f32 %v2453_v0, %v2452_v19 }
 0x677   : > { %v2406_v32 = vpop.f32.mrf.mxu3 }
 0x678   : > { %v2407_v61 = vadd.f32 %v2406_v32, %v2388_v7  ;;  %2463 = vadd.xlane.f32.xlu1 %v2462_v5 }
 0x67a   : > { %v5054_v54 = vadd.f32 %v2425_v62, %v2407_v61 }
 0x67c   : > { %v2455_v4 = vmul.f32 %v5054_v54, %v5054_v54  ;;  %v2445_v21 = vadd.f32 %v5054_v54, %v5048_v25 }
 0x67e   : > { %2460 = vadd.xlane.f32.xlu2 %v2459_v11  ;;  %v2465_v56 = vadd.f32 %v2455_v4, %v2454_v36 }
 0x680   : > { %2466 = vadd.xlane.f32.xlu0 %v2465_v56  ;;  %2446 = vadd.xlane.f32.xlu1 %v2445_v21 }
 0x688   : > { %2457 = vadd.xlane.f32.xlu0 %v2456_v47  ;;  %2437 = vadd.xlane.f32.xlu1 %v2436_v10 }
 0x6e1   : > { %v2441_v40 = vpop.xlane.xlu0 %2440 }
 0x6e9   : > { %v2444_v41 = vpop.xlane.xlu2 %2443 }
 0x6eb   : > { %v2464_v57 = vpop.xlane.xlu1 %2463 }
 0x6ec   : > { %v2470_v60 = vsel %vm5288_vm5, %v2444_v41, %v2464_v57 }
 0x6f1   : > { %v2461_v15 = vpop.xlane.xlu2 %2460 }
 0x6f2   : > { %v2469_v13 = vsel %vm5289_vm6, %v2441_v40, %v2461_v15 }
 0x6f3   : > { %v2467_v23 = vpop.xlane.xlu0 %2466  ;;  %v2447_v58 = vpop.xlane.xlu1 %2446 }
 0x6f4   : > { %v2471_v53 = vsel %vm5287_vm4, %v2447_v58, %v2467_v23 }
 0x6f5   : > { %2484 = vmatpush.msrb.mxu0 %v2471_v53 }
 0x6f7   : > { %2485 = vmatpush.msrb.mxu0 %v2470_v60 }
 0x6f9   : > { %2486 = vmatpush.msrb.mxu0 %v2469_v13 }
 0x6fb   : > { %v2458_v52 = vpop.xlane.xlu0 %2457  ;;  %v2438_v46 = vpop.xlane.xlu1 %2437 }
 0x6fc   : > { %v2468_v16 = vsel %vm5290_vm8, %v2438_v46, %v2458_v52 }
 0x6fd   : > { %2487 = vmatpush.msrb.mxu0 %v2468_v16 }
 0x6fe   : > { %3323 = vmatmul.msk.f32.vlgmr.msrb.gmra.mxu0 %vm5291_vm9, %v3610_v33 }
 0x706   : > { %3324 = vmatmul.msk.f32.gmra.mxu0 %vm5292_vm7, %v3611_v34 }
 0x70e   : > { %3325 = vmatmul.msk.f32.gmra.mxu0 %vm5293_vm10, %v3612_v9 }
 0x716   : > { %3326 = vmatmul.msk.f32.gmra.mxu0 %vm5294_vm11, %v3613_v39 }
 0x77b   : > { %v5080_v18 = vpop.f32.mrf.mxu0 }
 0x77c   : > { %v2501_v43 = vmul.f32 %v5080_v18, %v5080_v18 }
 0x77e   : > { %2509 = vrot.lane.b32.xlu2 %v2501_v43, %s3795_s28 }
 0x783   : > { %v5085_v26 = vpop.f32.mrf.mxu0 }
 0x784   : > { %v2502_v59 = vmul.f32 %v5085_v26, %v5085_v26 }
 0x786   : > { %2511 = vrot.lane.b32.xlu1 %v2502_v59, %s3795_s28 }
 0x78b   : > { %v5090_v22 = vpop.f32.mrf.mxu0 }
 0x78c   : > { %v2503_v27 = vmul.f32 %v5090_v22, %v5090_v22 }
 0x78e   : > { %2513 = vrot.lane.b32.xlu0 %v2503_v27, %s3795_s28  ;;  %2579 = vrot.lane.b32.xlu1 %v2429_v45, %s3795_s28 }
 0x793   : > { %v5099_v1 = vpop.f32.mrf.mxu0 }
 0x794   : > { %v2504_v28 = vmul.f32 %v5099_v1, %v5099_v1 }
 0x796   : > { %2577 = vrot.lane.b32.xlu0 %v2428_v6, %s3795_s28  ;;  %2515 = vrot.lane.b32.xlu2 %v2504_v28, %s3795_s28 }
 0x79e   : > { %2583 = vrot.lane.b32.xlu0 %v2431_v31, %s3795_s28  ;;  %2581 = vrot.lane.b32.xlu2 %v2430_v12, %s3795_s28 }
 0x7d8   : > { %v2510_v38 = vpop.permute.xlu2 %2509 }
 0x7d9   : > { %v2521_v19 = vsub.f32 %v5080_v18, %v2510_v38 }
 0x7db   : > { %v2525_v20 = vmax.f32 %v2521_v19, 0.0  ;;  %v2433_v19 = vld [vmem:[%s5257_s8 + $0x8] sm:$0xff] }
 0x7dd   : > { %v2529_v0 = vadd.f32 1e-05, %v2525_v20 }
 0x7df   : > { %3570 = vrsqrt.f32 %v2529_v0  ;;  %vm2539_vm13 = vweird.f32 %v2529_v0 }
 0x7e5   : > { %v3571_v7 = vpop.eup %3570 }
 0x7e6   : > { %v2534_v17 = vmul.f32 %v3571_v7, %v2529_v0  ;;  %vm2540_vm12 = vweird.f32 %v3571_v7 }
 0x7e7   : > { %vm2541_vm14 = vmor %vm2539_vm13, %vm2540_vm12 }
 0x7e8   : > { %v2535_v42 = vmul.f32 %v3571_v7, %v2534_v17 }
 0x7ea   : > { %v2536_v50 = vmul.f32 0.5, %v2535_v42 }
 0x7ec   : > { %v2537_v3 = vsub.f32 1.5, %v2536_v50 }
 0x7ee   : > { %v2538_v37 = vmul.f32 %v3571_v7, %v2537_v3 }
 0x7f0   : > { %v2516_v24 = vpop.permute.xlu2 %2515  ;;  %v2542_v57 = vsel %vm2541_vm14, %v3571_v7, %v2538_v37  ;;  %v2432_v7 = vld [vmem:[%s5257_s8] sm:$0xff]  ;;  %v3615_v37 = vld [vmem:[%s3955_s20 + $0x18] sm:$0xff] }
 0x7f1   : > { %v2524_v2 = vsub.f32 %v5099_v1, %v2516_v24 }
 0x7f3   : > { %v2528_v5 = vmax.f32 %v2524_v2, 0.0 }
 0x7f5   : > { %v2532_v32 = vadd.f32 1e-05, %v2528_v5 }
 0x7f7   : > { %3572 = vrsqrt.f32 %v2532_v32  ;;  %vm2569_vm1 = vweird.f32 %v2532_v32 }
 0x7f8   : > { %v2512_v61 = vpop.permute.xlu1 %2511  ;;  %v2582_v31 = vpop.permute.xlu2 %2581 }
 0x7f9   : > { %v2522_v63 = vsub.f32 %v5085_v26, %v2512_v61  ;;  %v2434_v61 = vld [vmem:[%s5257_s8 + $0x10] sm:$0xff] }
 0x7fb   : > { %v2526_v62 = vmax.f32 %v2522_v63, 0.0 }
 0x7fd   : > { %v3573_v14 = vpop.eup %3572  ;;  %v2530_v48 = vadd.f32 1e-05, %v2526_v62 }
 0x7fe   : > { %v2564_v36 = vmul.f32 %v3573_v14, %v2532_v32  ;;  %vm2570_vm15 = vweird.f32 %v3573_v14 }
 0x7ff   : > { %3574 = vrsqrt.f32 %v2530_v48  ;;  %vm2549_vm2 = vweird.f32 %v2530_v48  ;;  %vm2571_vm3 = vmor %vm2569_vm1, %vm2570_vm15 }
 0x800   : > { %v2565_v11 = vmul.f32 %v3573_v14, %v2564_v36  ;;  %v2514_v4 = vpop.permute.xlu0 %2513  ;;  %v2580_v33 = vpop.permute.xlu1 %2579 }
 0x801   : > { %v2523_v56 = vsub.f32 %v5090_v22, %v2514_v4 }
 0x802   : > { %v2566_v44 = vmul.f32 0.5, %v2565_v11 }
 0x803   : > { %v2527_v21 = vmax.f32 %v2523_v56, 0.0  ;;  %v3614_v56 = vld [vmem:[%s3955_s20 + $0x10] sm:$0xff] }
 0x804   : > { %v2567_v58 = vsub.f32 1.5, %v2566_v44 }
 0x805   : > { %v3575_v47 = vpop.eup %3574  ;;  %v2531_v10 = vadd.f32 1e-05, %v2527_v21 }
 0x806   : > { %v2544_v40 = vmul.f32 %v3575_v47, %v2530_v48  ;;  %vm2550_vm0 = vweird.f32 %v3575_v47  ;;  %v2568_v13 = vmul.f32 %v3573_v14, %v2567_v58 }
 0x807   : > { %3576 = vrsqrt.f32 %v2531_v10  ;;  %vm2551_vm4 = vmor %vm2549_vm2, %vm2550_vm0  ;;  %vm2559_vm6 = vweird.f32 %v2531_v10 }
 0x808   : > { %v2545_v41 = vmul.f32 %v3575_v47, %v2544_v40  ;;  %v2578_v23 = vpop.permute.xlu0 %2577  ;;  %v2572_v43 = vsel %vm2571_vm3, %v3573_v14, %v2568_v13 }
 0x809   : > { %v2589_v53 = vmul.f32 %v2578_v23, %v2542_v57 }
 0x80a   : > { %v2546_v15 = vmul.f32 0.5, %v2545_v41 }
 0x80b   : > { %2597 = vrot.lane.b32.xlu1 %v2589_v53, %s3798_s15 }
 0x80c   : > { %v2547_v60 = vsub.f32 1.5, %v2546_v15 }
 0x80d   : > { %v3577_v52 = vpop.eup %3576 }
 0x80e   : > { %v2554_v46 = vmul.f32 %v3577_v52, %v2531_v10  ;;  %v2548_v16 = vmul.f32 %v3575_v47, %v2547_v60  ;;  %vm2560_vm5 = vweird.f32 %v3577_v52 }
 0x80f   : > { %vm2561_vm8 = vmor %vm2559_vm6, %vm2560_vm5 }
 0x810   : > { %v2555_v34 = vmul.f32 %v3577_v52, %v2554_v46  ;;  %v2552_v9 = vsel %vm2551_vm4, %v3575_v47, %v2548_v16  ;;  %v2584_v39 = vpop.permute.xlu0 %2583 }
 0x811   : > { %v2590_v59 = vmul.f32 %v2580_v33, %v2552_v9  ;;  %v2592_v45 = vmul.f32 %v2584_v39, %v2572_v43 }
 0x812   : > { %v2556_v27 = vmul.f32 0.5, %v2555_v34 }
 0x813   : > { %2599 = vrot.lane.b32.xlu2 %v2590_v59, %s3798_s15  ;;  %2603 = vrot.lane.b32.xlu1 %v2592_v45, %s3798_s15 }
 0x814   : > { %v2557_v6 = vsub.f32 1.5, %v2556_v27 }
 0x816   : > { %v2558_v28 = vmul.f32 %v3577_v52, %v2557_v6 }
 0x818   : > { %v2562_v12 = vsel %vm2561_vm8, %v3577_v52, %v2558_v28 }
 0x819   : > { %v2591_v38 = vmul.f32 %v2582_v31, %v2562_v12 }
 0x81b   : > { %2618 = vperm.xlu2 %3524, %v2589_v53   ;;  %2626 = vperm.xlu1 %3526, %v2591_v38  }
 0x81c   : > { %2601 = vrot.lane.b32.xlu0 %v2591_v38, %s3798_s15  ;;  %s3732_s15 = scalar_lea.hbm %s5260_s11, 128 }
 0x823   : > { %2630 = vperm.xlu2 %3524, %v2592_v45   ;;  %3527 = vset.pattern.permute.xlu1 %v3801_v8 }
 0x824   : > { %2622 = vperm.xlu0 %3525, %v2590_v59  }
 0x82b   : > { %3528 = vset.pattern.permute.xlu2 %v3801_v8 }
 0x82c   : > { %3529 = vset.pattern.permute.xlu0 %v3801_v8  ;;  %v2435_v8 = vld [vmem:[%s5257_s8 + $0x18] sm:$0xff] }
 0x86d   : > { %v2600_v20 = vpop.permute.xlu2 %2599 }
 0x86e   : > { %v2610_v0 = vmul.f32 %v2600_v20, %v5085_v26 }
 0x870   : > { %v2614_v24 = vsub.f32 %v2433_v19, %v2610_v0 }
 0x872   : > { %2648 = vperm.xlu2 %3528, %v2614_v24  }
 0x875   : > { %v2619_v50 = vpop.permute.xlu2 %2618 }
 0x876   : > { %v2633_v38 = vmul.f32 %v2619_v50, %v5064_v49  ;;  %v2634_v19 = vmul.f32 %v2619_v50, %v5060_v51 }
 0x87d   : > { %v2598_v2 = vpop.permute.xlu1 %2597  ;;  %v5143_v14 = vpop.permute.xlu2 %2630 }
 0x87e   : > { %v2609_v5 = vmul.f32 %v2598_v2, %v5080_v18  ;;  %v2639_v49 = vmul.f32 %v5143_v14, %v5048_v25  ;;  %v2640_v51 = vmul.f32 %v5143_v14, %v5054_v54 }
 0x880   : > { %v2613_v17 = vsub.f32 %v2432_v7, %v2609_v5  ;;  %v3616_v7 = vld [vmem:[%s3955_s20] sm:$0xff]  ;;  %v3617_v5 = vld [vmem:[%s3955_s20 + $0x8] sm:$0xff] }
 0x882   : > { %2643 = vperm.xlu1 %3527, %v2613_v17  }
 0x885   : > { %v2604_v32 = vpop.permute.xlu1 %2603 }
 0x886   : > { %v2612_v42 = vmul.f32 %v2604_v32, %v5099_v1 }
 0x888   : > { %v2616_v26 = vsub.f32 %v2435_v8, %v2612_v42 }
 0x88a   : > { %2658 = vperm.xlu1 %3527, %v2616_v26  }
 0x88d   : > { %v2627_v45 = vpop.permute.xlu1 %2626 }
 0x88e   : > { %v2602_v63 = vpop.permute.xlu0 %2601 }
 0x88f   : > { %v2611_v18 = vmul.f32 %v2602_v63, %v5090_v22  ;;  %v3618_v63 = vld [vmem:[%s3955_s20 + $0x30] sm:$0xff] }
 0x891   : > { %v2615_v62 = vsub.f32 %v2434_v61, %v2611_v18 }
 0x893   : > { %2653 = vperm.xlu0 %3529, %v2615_v62   ;;  %v3619_v62 = vld [vmem:[%s3955_s20 + $0x38] sm:$0xff] }
 0x896   : > { %v2623_v48 = vpop.permute.xlu0 %2622 }
 0x897   : > { %v2635_v36 = vmul.f32 %v2623_v48, %v5032_v29  ;;  %v2636_v1 = vmul.f32 %v2623_v48, %v5034_v30 }
 0x8cc   : > { %v2649_v11 = vpop.permute.xlu2 %2648 }
 0x8cd   : > { %v2663_v4 = vadd.f32 %v2649_v11, %v2635_v36  ;;  %v2664_v3 = vadd.f32 %v2649_v11, %v2636_v1  ;;  %v2637_v11 = vmul.f32 %v2627_v45, %v5038_v35 }
 0x8cf   : > { %v2671_v21 = vadd.f32 %v3614_v56, %v2663_v4  ;;  %v2672_v44 = vadd.f32 %v3615_v37, %v2664_v3  ;;  %v2638_v4 = vmul.f32 %v2627_v45, %v5040_v55  ;;  %v3620_v37 = vld [vmem:[%s3955_s20 + $0x20] sm:$0xff] }
 0x8d1   : > { %v3329_v47 = vmul.f32 -1.442695, %v2671_v21  ;;  %v3330_v22 = vmul.f32 -1.442695, %v2672_v44 }
 0x8d3   : > { %3578 = vpow2.f32 %v3329_v47 }
 0x8d4   : > { %3580 = vpow2.f32 %v3330_v22  ;;  %v3621_v22 = vld [vmem:[%s3955_s20 + $0x28] sm:$0xff]  ;;  %s3425_s20 = sshll.u32 %s3885_s21, 6  ;;  %s2858_s21 = sshll.u32 %s5152_s19, 4  ;;  %s2859_s21 = int_to_ptr.vmem [resolvable:$true] %s2858_s21 }
 0x8d5   : > { %s2857_s14 = scalar_lea.hbm %s5260_s11, %s3425_s20 }
 0x8d6   : > { %s2860_s23 = sshll.u32 %s2857_s14, 4  ;;  %s2861_s23 = int_to_ptr.hbm [resolvable:$true] %s2860_s23 }
 0x8d7   : > { %s3726_s28 = sshra.s32 %s2861_s23, 4  ;;  %s3727_s28 = int_to_ptr.hbm [resolvable:$true] %s3726_s28 }
 0x8d8   : > { %s3728_s13 = scalar_lea.hbm %s3727_s28, 64  ;;  %p3733_p3 = scmp.lt.s32.totalorder %s3727_s28, %s5260_s11 }
 0x8d9   : > { %v3579_v10 = vpop.eup %3578  ;;  %p3729_p0 = scmp.ne.s32.totalorder %s3727_s28, %s3728_s13  ;;  %p3734_p4 = scmp.lt.s32.totalorder %s3732_s15, %s3728_s13 }
 0x8da   : > { %v3581_v40 = vpop.eup %3580  ;;  %v2703_v41 = vadd.f32 1.0, %v3579_v10 }
 0x8db   : > { %v2704_v57 = vadd.f32 1.0, %v3581_v40  ;;  %p3730_p1 = pnand %p3729_p0, %p3902_p5  ;;  %p3735_p7 = por %p3734_p4, %p3733_p3 }
 0x8dc   : > { %3582 = vrcp.f32 %v2703_v41  ;;  %v2750_v15 = vand.u32 2147483648, %v2703_v41  ;;  %v2748_v52 = vand.u32 2147483647, %v2703_v41  ;;  %vm2744_vm10 = vweird.f32 %v2703_v41 }
 0x8dd   : > { %3584 = vrcp.f32 %v2704_v57  ;;  %v2765_v46 = vand.u32 2147483648, %v2704_v57  ;;  %v2763_v33 = vand.u32 2147483647, %v2704_v57  ;;  %vm2759_vm12 = vweird.f32 %v2704_v57  ;;  %p3731_p2 = pneg %p3730_p1 }
 0x8de   : > { %v2751_v9 = vor.u32 1.1754944e-38, %v2750_v15  ;;  %vm2749_vm13 = vcmp.eq.f32.partialorder %v2748_v52, 8.507059e+37 }
 0x8df   : > { %v2766_v59 = vor.u32 1.1754944e-38, %v2765_v46  ;;  %vm2764_vm15 = vcmp.eq.f32.partialorder %v2763_v33, 8.507059e+37  ;;  %p3736_p8 = pnand %p3735_p7, %p3731_p2 }
 0x8e2   : > { %v3583_v29 = vpop.eup %3582 }
 0x8e3   : > { %v3585_v30 = vpop.eup %3584  ;;  %v2740_v23 = vmul.f32 %v3583_v29, %v2703_v41  ;;  %vm2745_vm9 = vweird.f32 %v3583_v29 }
 0x8e4   : > { %v2755_v58 = vmul.f32 %v3585_v30, %v2704_v57  ;;  %vm2760_vm7 = vweird.f32 %v3585_v30  ;;  %vm2746_vm11 = vmor %vm2744_vm10, %vm2745_vm9 }
 0x8e5   : > { %v2741_v53 = vsub.f32 1.0, %v2740_v23  ;;  %vm2761_vm14 = vmor %vm2759_vm12, %vm2760_vm7 }
 0x8e6   : > { %v2756_v60 = vsub.f32 1.0, %v2755_v58 }
 0x8e7   : > { %v2742_v13 = vmul.f32 %v3583_v29, %v2741_v53 }
 0x8e8   : > { %v2757_v16 = vmul.f32 %v3585_v30, %v2756_v60 }
 0x8e9   : > { %v2743_v34 = vadd.f32 %v3583_v29, %v2742_v13 }
 0x8ea   : > { %v2758_v39 = vadd.f32 %v3585_v30, %v2757_v16 }
 0x8eb   : > { %v2747_v43 = vsel %vm2746_vm11, %v3583_v29, %v2743_v34 }
 0x8ec   : > { %v2752_v27 = vsel %vm2749_vm13, %v2751_v9, %v2747_v43  ;;  %v2762_v6 = vsel %vm2761_vm14, %v3585_v30, %v2758_v39 }
 0x8ed   : > { %v2767_v28 = vsel %vm2764_vm15, %v2766_v59, %v2762_v6  ;;  %v2831_v31 = vmul.f32 %v2752_v27, %v2671_v21 }
 0x8ee   : > { %v2832_v12 = vmul.f32 %v2767_v28, %v2672_v44 }
 0x8ef   : > { %2839 = vst [vmem:[%s5152_s19 + $0x10] sm:$0xff] %v2831_v31 }
 0x8f0   : > { %2840 = vst [vmem:[%s5152_s19 + $0x18] sm:$0xff] %v2832_v12 }
 0x8f4   : > { %v2644_v20 = vpop.permute.xlu1 %2643 }
 0x8f5   : > { %v2661_v0 = vadd.f32 %v2644_v20, %v2633_v38  ;;  %v2662_v24 = vadd.f32 %v2644_v20, %v2634_v19 }
 0x8f7   : > { %v5159_v2 = vadd.f32 %v3616_v7, %v2661_v0  ;;  %v5162_v17 = vadd.f32 %v3617_v5, %v2662_v24 }
 0x8f9   : > { %v3327_v8 = vmul.f32 -1.442695, %v5159_v2  ;;  %v3328_v32 = vmul.f32 -1.442695, %v5162_v17 }
 0x8fb   : > { %3586 = vpow2.f32 %v3327_v8 }
 0x8fc   : > { %3588 = vpow2.f32 %v3328_v32  ;;  %v2659_v42 = vpop.permute.xlu1 %2658 }
 0x8fd   : > { %v2667_v26 = vadd.f32 %v2659_v42, %v2639_v49  ;;  %v2668_v61 = vadd.f32 %v2659_v42, %v2640_v51 }
 0x8ff   : > { %v5171_v18 = vadd.f32 %v3618_v63, %v2667_v26  ;;  %v5174_v50 = vadd.f32 %v3619_v62, %v2668_v61 }
 0x901   : > { %v3587_v48 = vpop.eup %3586  ;;  %v3333_v36 = vmul.f32 -1.442695, %v5171_v18  ;;  %v3334_v54 = vmul.f32 -1.442695, %v5174_v50 }
 0x902   : > { %v3589_v1 = vpop.eup %3588  ;;  %v2701_v25 = vadd.f32 1.0, %v3587_v48 }
 0x903   : > { %v2702_v14 = vadd.f32 1.0, %v3589_v1  ;;  %3590 = vpow2.f32 %v3333_v36 }
 0x904   : > { %3592 = vrcp.f32 %v2701_v25  ;;  %v2718_v15 = vand.u32 2147483647, %v2701_v25  ;;  %v2720_v60 = vand.u32 2147483648, %v2701_v25  ;;  %vm2714_vm2 = vweird.f32 %v2701_v25 }
 0x905   : > { %3594 = vrcp.f32 %v2702_v14  ;;  %v2654_v3 = vpop.permute.xlu0 %2653  ;;  %v2735_v46 = vand.u32 2147483648, %v2702_v14  ;;  %v2733_v33 = vand.u32 2147483647, %v2702_v14  ;;  %vm2729_vm4 = vweird.f32 %v2702_v14 }
 0x906   : > { %3596 = vpow2.f32 %v3334_v54  ;;  %v2665_v56 = vadd.f32 %v2654_v3, %v2637_v11  ;;  %v2666_v21 = vadd.f32 %v2654_v3, %v2638_v4  ;;  %v2721_v39 = vor.u32 1.1754944e-38, %v2720_v60 }
 0x907   : > { %vm2719_vm5 = vcmp.eq.f32.partialorder %v2718_v15, 8.507059e+37  ;;  %v2736_v45 = vor.u32 1.1754944e-38, %v2735_v46  ;;  %vm2734_vm8 = vcmp.eq.f32.partialorder %v2733_v33, 8.507059e+37 }
 0x908   : > { %v5181_v44 = vadd.f32 %v3620_v37, %v2665_v56  ;;  %v5184_v10 = vadd.f32 %v3621_v22, %v2666_v21 }
 0x909   : > { %v3591_v47 = vpop.eup %3590 }
 0x90a   : > { %v3593_v40 = vpop.eup %3592  ;;  %v5186_v41 = vadd.f32 1.0, %v3591_v47  ;;  %v3331_v35 = vmul.f32 -1.442695, %v5181_v44  ;;  %v3332_v53 = vmul.f32 -1.442695, %v5184_v10 }
 0x90b   : > { %v3595_v57 = vpop.eup %3594  ;;  %v2710_v29 = vmul.f32 %v3593_v40, %v2701_v25  ;;  %vm2715_vm0 = vweird.f32 %v3593_v40 }
 0x90c   : > { %v3597_v55 = vpop.eup %3596  ;;  %v2725_v30 = vmul.f32 %v3595_v57, %v2702_v14  ;;  %3598 = vrcp.f32 %v5186_v41  ;;  %vm2730_vm1 = vweird.f32 %v3595_v57  ;;  %vm2716_vm3 = vmor %vm2714_vm2, %vm2715_vm0  ;;  %v2810_v12 = vand.u32 2147483648, %v5186_v41 }
 0x90d   : > { %v2711_v23 = vsub.f32 1.0, %v2710_v29  ;;  %v5190_v58 = vadd.f32 1.0, %v3597_v55  ;;  %3600 = vpow2.f32 %v3331_v35  ;;  %vm2731_vm6 = vmor %vm2729_vm4, %vm2730_vm1  ;;  %v2808_v49 = vand.u32 2147483647, %v5186_v41 }
 0x90e   : > { %v2726_v13 = vsub.f32 1.0, %v2725_v30  ;;  %vm2804_vm7 = vweird.f32 %v5186_v41 }
 0x90f   : > { %v2712_v52 = vmul.f32 %v3593_v40, %v2711_v23  ;;  %3602 = vrcp.f32 %v5190_v58  ;;  %v2825_v61 = vand.u32 2147483648, %v5190_v58  ;;  %v2823_v63 = vand.u32 2147483647, %v5190_v58 }
 0x910   : > { %v2727_v16 = vmul.f32 %v3595_v57, %v2726_v13  ;;  %3604 = vpow2.f32 %v3332_v53  ;;  %vm2809_vm12 = vcmp.eq.f32.partialorder %v2808_v49, 8.507059e+37  ;;  %vm2819_vm13 = vweird.f32 %v5190_v58 }
 0x911   : > { %v2713_v34 = vadd.f32 %v3593_v40, %v2712_v52  ;;  %v2826_v25 = vor.u32 1.1754944e-38, %v2825_v61  ;;  %vm2824_vm15 = vcmp.eq.f32.partialorder %v2823_v63, 8.507059e+37 }
 0x912   : > { %v3599_v9 = vpop.eup %3598  ;;  %v2728_v43 = vadd.f32 %v3595_v57, %v2727_v16 }
 0x913   : > { %v2717_v59 = vsel %vm2716_vm3, %v3593_v40, %v2713_v34  ;;  %v2800_v27 = vmul.f32 %v3599_v9, %v5186_v41  ;;  %v3601_v6 = vpop.eup %3600  ;;  %vm2805_vm9 = vweird.f32 %v3599_v9 }
 0x914   : > { %v2722_v28 = vsel %vm2719_vm5, %v2721_v39, %v2717_v59  ;;  %v2732_v31 = vsel %vm2731_vm6, %v3595_v57, %v2728_v43  ;;  %v2705_v24 = vadd.f32 1.0, %v3601_v6  ;;  %vm2806_vm10 = vmor %vm2804_vm7, %vm2805_vm9 }
 0x915   : > { %v3603_v38 = vpop.eup %3602  ;;  %v2737_v19 = vsel %vm2734_vm8, %v2736_v45, %v2732_v31  ;;  %v2829_v20 = vmul.f32 %v2722_v28, %v5159_v2  ;;  %v2801_v0 = vsub.f32 1.0, %v2800_v27  ;;  %v2811_v2 = vor.u32 1.1754944e-38, %v2810_v12 }
 0x916   : > { %v2830_v7 = vmul.f32 %v2737_v19, %v5162_v17  ;;  %v2815_v5 = vmul.f32 %v3603_v38, %v5190_v58  ;;  %v3605_v8 = vpop.eup %3604  ;;  %3606 = vrcp.f32 %v2705_v24  ;;  %vm2820_vm11 = vweird.f32 %v3603_v38 }
 0x917   : > { %2837 = vst [vmem:[%s5152_s19] sm:$0xff] %v2829_v20  ;;  %v2802_v32 = vmul.f32 %v3599_v9, %v2801_v0  ;;  %v2706_v42 = vadd.f32 1.0, %v3605_v8  ;;  %vm2821_vm14 = vmor %vm2819_vm13, %vm2820_vm11  ;;  %v2780_v37 = vand.u32 2147483648, %v2705_v24  ;;  %v2778_v40 = vand.u32 2147483647, %v2705_v24 }
 0x918   : > { %2838 = vst [vmem:[%s5152_s19 + $0x8] sm:$0xff] %v2830_v7  ;;  %v2816_v51 = vsub.f32 1.0, %v2815_v5  ;;  %vm2774_vm1 = vweird.f32 %v2705_v24 }
 0x919   : > { %v2803_v26 = vadd.f32 %v3599_v9, %v2802_v32  ;;  %3608 = vrcp.f32 %v2706_v42  ;;  %v2781_v57 = vor.u32 1.1754944e-38, %v2780_v37  ;;  %v2793_v55 = vand.u32 2147483647, %v2706_v42 }
 0x91a   : > { %v2817_v17 = vmul.f32 %v3603_v38, %v2816_v51  ;;  %vm2779_vm4 = vcmp.eq.f32.partialorder %v2778_v40, 8.507059e+37  ;;  %vm2789_vm5 = vweird.f32 %v2706_v42 }
 0x91b   : > { %v2807_v62 = vsel %vm2806_vm10, %v3599_v9, %v2803_v26  ;;  %vm2794_vm8 = vcmp.eq.f32.partialorder %v2793_v55, 8.507059e+37 }
 0x91c   : > { %v2812_v48 = vsel %vm2809_vm12, %v2811_v2, %v2807_v62  ;;  %v2818_v36 = vadd.f32 %v3603_v38, %v2817_v17  ;;  %v3607_v1 = vpop.eup %3606 }
 0x91d   : > { %v2835_v54 = vmul.f32 %v2812_v48, %v5171_v18  ;;  %v2770_v11 = vmul.f32 %v3607_v1, %v2705_v24  ;;  %vm2775_vm0 = vweird.f32 %v3607_v1  ;;  %v2795_v18 = vand.u32 2147483648, %v2706_v42 }
 0x91e   : > { %v2822_v14 = vsel %vm2821_vm14, %v3603_v38, %v2818_v36  ;;  %vm2776_vm2 = vmor %vm2774_vm1, %vm2775_vm0 }
 0x91f   : > { %v2827_v4 = vsel %vm2824_vm15, %v2826_v25, %v2822_v14  ;;  %2843 = vst [vmem:[%s5152_s19 + $0x30] sm:$0xff] %v2835_v54  ;;  %v3609_v3 = vpop.eup %3608  ;;  %v2771_v21 = vsub.f32 1.0, %v2770_v11  ;;  %v2796_v58 = vor.u32 1.1754944e-38, %v2795_v18 }
 0x920   : > { %v2836_v56 = vmul.f32 %v2827_v4, %v5174_v50  ;;  %v2785_v47 = vmul.f32 %v3609_v3, %v2706_v42  ;;  %vm2790_vm3 = vweird.f32 %v3609_v3 }
 0x921   : > { %v2772_v22 = vmul.f32 %v3607_v1, %v2771_v21  ;;  %vm2791_vm6 = vmor %vm2789_vm5, %vm2790_vm3 }
 0x922   : > { %2844 = vst [vmem:[%s5152_s19 + $0x38] sm:$0xff] %v2836_v56  ;;  %v2786_v41 = vsub.f32 1.0, %v2785_v47 }
 0x923   : > { %v2773_v35 = vadd.f32 %v3607_v1, %v2772_v22 }
 0x924   : > { %v2787_v29 = vmul.f32 %v3609_v3, %v2786_v41 }
 0x925   : > { %v2777_v50 = vsel %vm2776_vm2, %v3607_v1, %v2773_v35 }
 0x926   : > { %v2782_v30 = vsel %vm2779_vm4, %v2781_v57, %v2777_v50  ;;  %v2788_v23 = vadd.f32 %v3609_v3, %v2787_v29 }
 0x927   : > { %v2833_v53 = vmul.f32 %v2782_v30, %v5181_v44 }
 0x928   : > { %v2792_v15 = vsel %vm2791_vm6, %v3609_v3, %v2788_v23 }
 0x929   : > { %v2797_v60 = vsel %vm2794_vm8, %v2796_v58, %v2792_v15  ;;  %2841 = vst [vmem:[%s5152_s19 + $0x20] sm:$0xff] %v2833_v53 }
 0x92a   : > { %v2834_v13 = vmul.f32 %v2797_v60, %v5184_v10 }
 0x92c   : > { %2842 = vst [vmem:[%s5152_s19 + $0x28] sm:$0xff] %v2834_v13 }
 0x92d   : > { %3739 = shalt.err (!%p3736_p8)
}
 0x92e   : > { %s3803_s9 = smov 256  }
 0x92f   : > { %3440 = dma.vmem_to_hbm [thread:$0]  (%p3902_p5), %s2859_s21, 1024, %s2861_s23, %s2846_s29, %s3803_s9, %s3803_s9, %s3799_s16  }
 0x930 PF: > { %s5295_s5 = sld [smem:[#allocation15_spill]] }
 0x931   : > { %s5296_s17 = sld [smem:[#allocation13_spill]] }
 0x936   : > { %p3462_p9 = scmp.ge.s32.totalorder %s5295_s5, 2 }
 0x937   : > { %s2875_s20 = sand.u32 1, %s5296_s17  }
 0x938   : > { %p3453_p10 = pnand %p3462_p9, %p3906_p6  ;;  %s2876_s30 = scalar_lea.sflag [#allocation5], %s2875_s20 }
 0x93a   : > { %p3454_p11 = pneg %p3453_p10 }
 0x93c   : > { %3765 = dma.done.wait (%p3454_p11), %s2876_s30, 1024  }
 0x93d   : > { %3767 = vsyncadd (%p3454_p11), %s2876_s30, 4294966272  ;;  %s5298_s20 = sld [smem:[#allocation16_spill]]  ;;  %s5301_s17 = smov %s3774_s18 }
 0x93e   : > { %s5299_s12 = sld [smem:[#allocation14_spill]] }
 0x93f   : > { %s5300_s19 = sld [smem:[#allocation17_spill]] }
 0x943   : > { %p23_p12 = scmp.ge.s32.totalorder %s5298_s20, 4  }
 0x944   : > { %s5302_s18 = smov %s5299_s12 }
 0x945   :  { %25 = sbr.rel (!%p23_p12) target bundleno = 8 (0x8), region = 119 }
 0x94a   :  { %2882 = vsyncpa [#allocation4], 1 }
 0x94b   :  { %2884 = vsyncpa [#allocation4 + $0x1], 1 }
 0x94c   :  { %2885 = vsyncpa [#allocation7], 1 }
 0x94d   :  { %2886 = vsyncpa [#allocation5], 1 }
 0x94e   :  { %2888 = vsyncpa [#allocation5 + $0x1], 1 }

</bundles_post_ra>
